<compile_context>
chip_gen: v7x
topology: tpu7x:2x2x1
jax: 0.10.0
libtpu: 0.0.40
codegen_flags: <defaults>
</compile_context>

<pallas_src>
import jax
import jax.numpy as jnp
from jax.experimental import pallas as pl
from jax.experimental.pallas import tpu as pltpu

# ----------------------------- problem sizes -----------------------------
N, C_IN, H, W = 2, 4, 16, 16          # input  (NCHW)
C_OUT, KH, KW = 8, 3, 3               # Conv2d(4, 8, kernel_size=3, padding=1)
H_PAD, W_PAD = H + 2, W + 2           # spatial padding = 1

M = N * H * W                          # 512 output columns (flattened n, h, w)
K_DIM = KH * KW * C_IN                 # 36  contraction dim (kh, kw, cin)


# ------------------------------ Pallas kernel ----------------------------
def _conv_relu_kernel(x_ref, w_ref, b_ref, o_ref, p_ref):
    """Single invocation; whole problem resident in VMEM.

    x_ref : (N, H_PAD, W_PAD, C_IN)  zero-padded NHWC input
    w_ref : (C_OUT, K_DIM)           weight, feature order (kh, kw, cin)
    b_ref : (C_OUT, 1)               bias column
    o_ref : (C_OUT, M)               output, columns ordered (n, h, w)
    p_ref : (M, K_DIM)               im2col patch scratch (VMEM)
    """
    # ---- in-kernel im2col: 9 static-slice copies into the patch matrix ----
    # tap (N, H, W, C_IN) -> (M, C_IN) is a layout-preserving reshape (the
    # lane dim C_IN is unchanged; all leading dims collapse into sublanes).
    for kh in range(KH):
        for kw in range(KW):
            tap = x_ref[:, kh:kh + H, kw:kw + W, :]            # (N, H, W, C_IN)
            col = (kh * KW + kw) * C_IN
            p_ref[:, col:col + C_IN] = tap.reshape(M, C_IN)

    # ---- one MXU dot: (8, 36) x (512, 36)^T -> (8, 512) -------------------
    acc = jax.lax.dot_general(
        w_ref[...], p_ref[...],
        dimension_numbers=(((1,), (1,)), ((), ())),            # contract K_DIM
        preferred_element_type=jnp.float32)

    acc = acc + b_ref[...]                                     # lane broadcast
    o_ref[...] = jnp.maximum(acc, 0.0).astype(o_ref.dtype)     # ReLU


def _conv_relu_pallas(x_pad_nhwc, w2d, b2d):
    """x_pad_nhwc: (N, H_PAD, W_PAD, C_IN); w2d: (C_OUT, K_DIM); b2d: (C_OUT, 1)."""
    bytes_accessed = 4 * (N * H_PAD * W_PAD * C_IN + C_OUT * K_DIM + C_OUT
                          + C_OUT * M)
    return pl.pallas_call(
        _conv_relu_kernel,
        out_shape=jax.ShapeDtypeStruct((C_OUT, M), jnp.float32),
        in_specs=[
            pl.BlockSpec(memory_space=pltpu.MemorySpace.VMEM),
            pl.BlockSpec(memory_space=pltpu.MemorySpace.VMEM),
            pl.BlockSpec(memory_space=pltpu.MemorySpace.VMEM),
        ],
        out_specs=pl.BlockSpec(memory_space=pltpu.MemorySpace.VMEM),
        scratch_shapes=[pltpu.VMEM((M, K_DIM), jnp.float32)],
        cost_estimate=pl.CostEstimate(
            flops=2 * M * K_DIM * C_OUT,
            transcendentals=0,
            bytes_accessed=bytes_accessed),
    )(x_pad_nhwc, w2d, b2d)


# ---------------------------- QuantWrapper fwd ---------------------------
@jax.jit
def quant_wrapper_forward(x_nchw, w_oihw, b):
    """Equivalent of QuantWrapper(Conv2d+ReLU).forward(x) in eager float mode.

    x_nchw : (N, C_IN, H, W) float32
    w_oihw : (C_OUT, C_IN, KH, KW) float32  (PyTorch Conv2d weight layout)
    b      : (C_OUT,) float32
    returns: (N, C_OUT, H, W) float32
    """
    # quant_stubs: QuantStub in un-converted eager mode is an identity.
    # TODO(synk): observer statistics collection (MinMaxObserver etc.) has no
    # Pallas equivalent and does not affect forward values; skipped.
    x_q = x_nchw

    # ---- module: Conv2d + ReLU, everything heavy inside the kernel --------
    x_nhwc = jnp.transpose(x_q, (0, 2, 3, 1))                     # N,H,W,Cin (~8 KB)
    x_pad = jnp.pad(x_nhwc, ((0, 0), (1, 1), (1, 1), (0, 0)))     # padding=1

    # Weight: (O,I,KH,KW) -> (O,KH,KW,I) -> (8, 36); column order (kh, kw, cin)
    # matches the in-kernel patch-matrix column order.
    w2d = jnp.transpose(w_oihw, (0, 2, 3, 1)).reshape(C_OUT, K_DIM)
    b2d = b.reshape(C_OUT, 1)

    y = _conv_relu_pallas(x_pad, w2d, b2d)                        # (8, 512)

    # dequant_stubs: DeQuantStub in eager float mode is an identity.
    y = y.reshape(C_OUT, N, H, W)                                 # columns = (n,h,w)
    return jnp.transpose(y, (1, 0, 2, 3))                         # back to NCHW


# --------------------------------- main ----------------------------------
if __name__ == "__main__":
    key = jax.random.PRNGKey(0)
    kx, kw, kb = jax.random.split(key, 3)

    x = jax.random.normal(kx, (N, C_IN, H, W), dtype=jnp.float32)
    # Deterministic "module" parameters (Conv2d(4, 8, 3, padding=1)).
    w = jax.random.normal(kw, (C_OUT, C_IN, KH, KW), dtype=jnp.float32) * 0.1
    b = jax.random.normal(kb, (C_OUT,), dtype=jnp.float32) * 0.1

    y = quant_wrapper_forward(x, w, b)
    y = jax.block_until_ready(y)

    # Reference check against XLA conv (same semantics as the PyTorch module).
    # Reference pinned to HIGHEST precision; tolerance loosened slightly so the
    # check cannot flicker on the MXU's multi-pass f32 decomposition.
    y_ref = jax.lax.conv_general_dilated(
        x, w, window_strides=(1, 1), padding="SAME",
        dimension_numbers=("NCHW", "OIHW", "NCHW"),
        precision=jax.lax.Precision.HIGHEST)
    y_ref = jnp.maximum(y_ref + b[None, :, None, None], 0.0)
    assert y.shape == (N, C_OUT, H, W)
    assert jnp.allclose(y, y_ref, atol=2e-3, rtol=2e-3)

    print("KERNEL_OK")
</pallas_src>

<mosaic_0001>
module attributes {stable_mosaic.version = 11 : i64} {
  func.func @_conv_relu_kernel(%arg0: memref<2x18x18x4xf32, #tpu.memory_space<vmem>>, %arg1: memref<8x36xf32, #tpu.memory_space<vmem>>, %arg2: memref<8x1xf32, #tpu.memory_space<vmem>>, %arg3: memref<8x512xf32, #tpu.memory_space<vmem>>, %arg4: memref<512x36xf32, #tpu.memory_space<vmem>>) attributes {dimension_semantics = [], scalar_prefetch = 0 : i64, scratch_operands = 1 : i64, tpu.core_type = #tpu.core_type<tc>} {
    %c0 = arith.constant 0 : index
    %c0_0 = arith.constant 0 : index
    %c0_1 = arith.constant 0 : index
    %c0_2 = arith.constant 0 : index
    %0 = vector.load %arg0[%c0, %c0_0, %c0_1, %c0_2] : memref<2x18x18x4xf32, #tpu.memory_space<vmem>>, vector<2x16x16x4xf32>
    %1 = vector.shape_cast %0 : vector<2x16x16x4xf32> to vector<512x4xf32>
    %c0_3 = arith.constant 0 : index
    %c0_4 = arith.constant 0 : index
    %2 = vector.load %arg4[%c0_3, %c0_4] : memref<512x36xf32, #tpu.memory_space<vmem>>, vector<512x4xf32>
    tpu.vector_store %arg4[%c0_3, %c0_4], %1 {strides = array<i32>} : memref<512x36xf32, #tpu.memory_space<vmem>>, vector<512x4xf32>,
    %c0_5 = arith.constant 0 : index
    %c0_6 = arith.constant 0 : index
    %c1 = arith.constant 1 : index
    %c0_7 = arith.constant 0 : index
    %3 = vector.load %arg0[%c0_5, %c0_6, %c1, %c0_7] : memref<2x18x18x4xf32, #tpu.memory_space<vmem>>, vector<2x16x16x4xf32>
    %4 = vector.shape_cast %3 : vector<2x16x16x4xf32> to vector<512x4xf32>
    %c0_8 = arith.constant 0 : index
    %c4 = arith.constant 4 : index
    %5 = vector.load %arg4[%c0_8, %c4] : memref<512x36xf32, #tpu.memory_space<vmem>>, vector<512x4xf32>
    tpu.vector_store %arg4[%c0_8, %c4], %4 {strides = array<i32>} : memref<512x36xf32, #tpu.memory_space<vmem>>, vector<512x4xf32>,
    %c0_9 = arith.constant 0 : index
    %c0_10 = arith.constant 0 : index
    %c2 = arith.constant 2 : index
    %c0_11 = arith.constant 0 : index
    %6 = vector.load %arg0[%c0_9, %c0_10, %c2, %c0_11] : memref<2x18x18x4xf32, #tpu.memory_space<vmem>>, vector<2x16x16x4xf32>
    %7 = vector.shape_cast %6 : vector<2x16x16x4xf32> to vector<512x4xf32>
    %c0_12 = arith.constant 0 : index
    %c8 = arith.constant 8 : index
    %8 = vector.load %arg4[%c0_12, %c8] : memref<512x36xf32, #tpu.memory_space<vmem>>, vector<512x4xf32>
    tpu.vector_store %arg4[%c0_12, %c8], %7 {strides = array<i32>} : memref<512x36xf32, #tpu.memory_space<vmem>>, vector<512x4xf32>,
    %c0_13 = arith.constant 0 : index
    %c1_14 = arith.constant 1 : index
    %c0_15 = arith.constant 0 : index
    %c0_16 = arith.constant 0 : index
    %9 = vector.load %arg0[%c0_13, %c1_14, %c0_15, %c0_16] : memref<2x18x18x4xf32, #tpu.memory_space<vmem>>, vector<2x16x16x4xf32>
    %10 = vector.shape_cast %9 : vector<2x16x16x4xf32> to vector<512x4xf32>
    %c0_17 = arith.constant 0 : index
    %c12 = arith.constant 12 : index
    %11 = vector.load %arg4[%c0_17, %c12] : memref<512x36xf32, #tpu.memory_space<vmem>>, vector<512x4xf32>
    tpu.vector_store %arg4[%c0_17, %c12], %10 {strides = array<i32>} : memref<512x36xf32, #tpu.memory_space<vmem>>, vector<512x4xf32>,
    %c0_18 = arith.constant 0 : index
    %c1_19 = arith.constant 1 : index
    %c1_20 = arith.constant 1 : index
    %c0_21 = arith.constant 0 : index
    %12 = vector.load %arg0[%c0_18, %c1_19, %c1_20, %c0_21] : memref<2x18x18x4xf32, #tpu.memory_space<vmem>>, vector<2x16x16x4xf32>
    %13 = vector.shape_cast %12 : vector<2x16x16x4xf32> to vector<512x4xf32>
    %c0_22 = arith.constant 0 : index
    %c16 = arith.constant 16 : index
    %14 = vector.load %arg4[%c0_22, %c16] : memref<512x36xf32, #tpu.memory_space<vmem>>, vector<512x4xf32>
    tpu.vector_store %arg4[%c0_22, %c16], %13 {strides = array<i32>} : memref<512x36xf32, #tpu.memory_space<vmem>>, vector<512x4xf32>,
    %c0_23 = arith.constant 0 : index
    %c1_24 = arith.constant 1 : index
    %c2_25 = arith.constant 2 : index
    %c0_26 = arith.constant 0 : index
    %15 = vector.load %arg0[%c0_23, %c1_24, %c2_25, %c0_26] : memref<2x18x18x4xf32, #tpu.memory_space<vmem>>, vector<2x16x16x4xf32>
    %16 = vector.shape_cast %15 : vector<2x16x16x4xf32> to vector<512x4xf32>
    %c0_27 = arith.constant 0 : index
    %c20 = arith.constant 20 : index
    %17 = vector.load %arg4[%c0_27, %c20] : memref<512x36xf32, #tpu.memory_space<vmem>>, vector<512x4xf32>
    tpu.vector_store %arg4[%c0_27, %c20], %16 {strides = array<i32>} : memref<512x36xf32, #tpu.memory_space<vmem>>, vector<512x4xf32>,
    %c0_28 = arith.constant 0 : index
    %c2_29 = arith.constant 2 : index
    %c0_30 = arith.constant 0 : index
    %c0_31 = arith.constant 0 : index
    %18 = vector.load %arg0[%c0_28, %c2_29, %c0_30, %c0_31] : memref<2x18x18x4xf32, #tpu.memory_space<vmem>>, vector<2x16x16x4xf32>
    %19 = vector.shape_cast %18 : vector<2x16x16x4xf32> to vector<512x4xf32>
    %c0_32 = arith.constant 0 : index
    %c24 = arith.constant 24 : index
    %20 = vector.load %arg4[%c0_32, %c24] : memref<512x36xf32, #tpu.memory_space<vmem>>, vector<512x4xf32>
    tpu.vector_store %arg4[%c0_32, %c24], %19 {strides = array<i32>} : memref<512x36xf32, #tpu.memory_space<vmem>>, vector<512x4xf32>,
    %c0_33 = arith.constant 0 : index
    %c2_34 = arith.constant 2 : index
    %c1_35 = arith.constant 1 : index
    %c0_36 = arith.constant 0 : index
    %21 = vector.load %arg0[%c0_33, %c2_34, %c1_35, %c0_36] : memref<2x18x18x4xf32, #tpu.memory_space<vmem>>, vector<2x16x16x4xf32>
    %22 = vector.shape_cast %21 : vector<2x16x16x4xf32> to vector<512x4xf32>
    %c0_37 = arith.constant 0 : index
    %c28 = arith.constant 28 : index
    %23 = vector.load %arg4[%c0_37, %c28] : memref<512x36xf32, #tpu.memory_space<vmem>>, vector<512x4xf32>
    tpu.vector_store %arg4[%c0_37, %c28], %22 {strides = array<i32>} : memref<512x36xf32, #tpu.memory_space<vmem>>, vector<512x4xf32>,
    %c0_38 = arith.constant 0 : index
    %c2_39 = arith.constant 2 : index
    %c2_40 = arith.constant 2 : index
    %c0_41 = arith.constant 0 : index
    %24 = vector.load %arg0[%c0_38, %c2_39, %c2_40, %c0_41] : memref<2x18x18x4xf32, #tpu.memory_space<vmem>>, vector<2x16x16x4xf32>
    %25 = vector.shape_cast %24 : vector<2x16x16x4xf32> to vector<512x4xf32>
    %c0_42 = arith.constant 0 : index
    %c32 = arith.constant 32 : index
    %26 = vector.load %arg4[%c0_42, %c32] : memref<512x36xf32, #tpu.memory_space<vmem>>, vector<512x4xf32>
    tpu.vector_store %arg4[%c0_42, %c32], %25 {strides = array<i32>} : memref<512x36xf32, #tpu.memory_space<vmem>>, vector<512x4xf32>,
    %c0_43 = arith.constant 0 : index
    %c0_44 = arith.constant 0 : index
    %27 = vector.load %arg1[%c0_43, %c0_44] : memref<8x36xf32, #tpu.memory_space<vmem>>, vector<8x36xf32>
    %c0_45 = arith.constant 0 : index
    %c0_46 = arith.constant 0 : index
    %28 = vector.load %arg4[%c0_45, %c0_46] : memref<512x36xf32, #tpu.memory_space<vmem>>, vector<512x36xf32>
    %cst = arith.constant dense<0.000000e+00> : vector<8x512xf32>
    %29 = tpu.matmul %27, %28, %cst {dimension_numbers = #tpu.dot_dimension_numbers<[1], [1], [0], [0], [0, 0, 1, 0], [], []>} : vector<8x36xf32>, vector<512x36xf32>, vector<8x512xf32> -> vector<8x512xf32>
    %c0_47 = arith.constant 0 : index
    %c0_48 = arith.constant 0 : index
    %30 = vector.load %arg2[%c0_47, %c0_48] : memref<8x1xf32, #tpu.memory_space<vmem>>, vector<8x1xf32>
    %31 = vector.broadcast %30 : vector<8x1xf32> to vector<8x512xf32>
    %32 = arith.addf %29, %31 : vector<8x512xf32>
    %cst_49 = arith.constant 0.000000e+00 : f32
    %33 = vector.broadcast %cst_49 : f32 to vector<8x512xf32>
    %34 = arith.maximumf %32, %33 : vector<8x512xf32>
    %c0_50 = arith.constant 0 : index
    %c0_51 = arith.constant 0 : index
    %35 = vector.load %arg3[%c0_50, %c0_51] : memref<8x512xf32, #tpu.memory_space<vmem>>, vector<8x512xf32>
    tpu.vector_store %arg3[%c0_50, %c0_51], %34 {strides = array<i32>} : memref<8x512xf32, #tpu.memory_space<vmem>>, vector<8x512xf32>,
    return
  }
}

</mosaic_0001>

<bundles_post_ra>
// kernel: quant_wrapper_forward.1
= control target key start
LH: loop header
LB: loop body
LE: loop exit
PB: predicated region body
PF: predicated region fallthrough
CT: control target
= control target key end

     0   :  { %s4270_s16 = smov 4   ;;  %vm78_vm0 = vcmask 31744   ;;  %vm463_vm1 = vcmask 64544   ;;  %s4271_s12 = smov 8   ;;  %vm848_vm2 = vcmask 97344   ;;  %vm1234_vm3 = vcmask 130144   ;;  %s7303_s0 = inlined_call_operand.vmem [shape: f32[2,18,18,4], index: 0, kind: input, shape index: {}]   ;;  %s7304_s1 = inlined_call_operand.vmem [shape: f32[8,36], index: 1, kind: input, shape index: {}]   ;;  %s7305_s2 = inlined_call_operand.vmem [shape: f32[8,1], index: 2, kind: input, shape index: {}]   ;;  %s7306_s3 = inlined_call_operand.vmem [shape: f32[8,512], index: 3, kind: output, shape index: {}]  }
   0x1   :  { %v145_v0 = vld [vmem:[%s7303_s0 + $0x19] sm:$0xff]  ;;  %v143_v1 = vld [vmem:[%s7303_s0 + $0x1] sm:$0xff]  ;;  %v144_v3 = vld [vmem:[%s7303_s0 + $0x9] sm:$0xff]  ;;  %s4272_s6 = smov 12   ;;  %s4273_s19 = smov 16   ;;  %vm1619_vm4 = vcmask 162944  }
   0x2   :  { %275 = vrot.lane.b32.xlu1 %v145_v0, %s4270_s16  ;;  %271 = vrot.lane.b32.xlu0 %v143_v1, %s4270_s16  ;;  %v146_v2 = vld [vmem:[%s7303_s0 + $0x21] sm:$0xff]  ;;  %v148_v4 = vld [vmem:[%s7303_s0 + $0x39] sm:$0xff]  ;;  %s4274_s17 = smov 20   ;;  %vm2004_vm5 = vcmask 195744   ;;  %s4275_s14 = smov 24   ;;  %vm2390_vm6 = vcmask 228544  }
   0x3   :  { %v147_v5 = vld [vmem:[%s7303_s0 + $0x31] sm:$0xff]  ;;  %v149_v7 = vld [vmem:[%s7303_s0 + $0x49] sm:$0xff]  ;;  %v151_v9 = vld [vmem:[%s7303_s0 + $0x61] sm:$0xff]  ;;  %s4277_s13 = smov 32   ;;  %vm2775_vm7 = vcmask 261344   ;;  %vm3160_vm8 = vcmask 294144  }
   0x4   :  { %v150_v6 = vld [vmem:[%s7303_s0 + $0x51] sm:$0xff]  ;;  %v152_v8 = vld [vmem:[%s7303_s0 + $0x69] sm:$0xff]  ;;  %v154_v10 = vld [vmem:[%s7303_s0 + $0x81] sm:$0xff]  ;;  %vm3296_vm9 = vcmask 293888  }
   0x5   :  { %v153_v11 = vld [vmem:[%s7303_s0 + $0x79] sm:$0xff]  ;;  %v155_v15 = vld [vmem:[%s7303_s0 + $0x91] sm:$0xff]  ;;  %v15_v17 = vld [vmem:[%s7303_s0 + $0x8] sm:$0xff] }
   0x6   :  { %277 = vrot.lane.b32.xlu1 %v146_v2, %s4270_s16  ;;  %273 = vrot.lane.b32.xlu0 %v144_v3, %s4270_s16  ;;  %v4350_v12 = vld [vmem:[%s7303_s0 + $0x18] sm:$0xff]  ;;  %v14_v13 = vld [vmem:[%s7303_s0] sm:$0xff]  ;;  %80 = vst.msk [vmem:[#allocation2 + $0x8] sm:$0xff] %vm78_vm0, %v15_v17  ;;  %vm6669_vm10 = vmpackc.low %vm3296_vm9, %vm3296_vm9 }
   0x7   :  { %v156_v14 = vld [vmem:[%s7303_s0 + $0x99] sm:$0xff]  ;;  %81 = vst.msk [vmem:[#allocation2 + $0x10] sm:$0xff] %vm78_vm0, %v4350_v12  ;;  %79 = vst.msk [vmem:[#allocation2] sm:$0xff] %vm78_vm0, %v14_v13  ;;  %v4383_v19 = vld [vmem:[%s7303_s0 + $0x30] sm:$0xff] }
   0x8   :  { %v4367_v16 = vld [vmem:[%s7303_s0 + $0x20] sm:$0xff]  ;;  %v4378_v18 = vld [vmem:[%s7303_s0 + $0x38] sm:$0xff]  ;;  %83 = vst.msk [vmem:[#allocation2 + $0x20] sm:$0xff] %vm78_vm0, %v4383_v19  ;;  %v4394_v20 = vld [vmem:[%s7303_s0 + $0x50] sm:$0xff] }
   0x9   :  { %82 = vst.msk [vmem:[#allocation2 + $0x18] sm:$0xff] %vm78_vm0, %v4367_v16  ;;  %84 = vst.msk [vmem:[#allocation2 + $0x28] sm:$0xff] %vm78_vm0, %v4378_v18  ;;  %v158_v21 = vld [vmem:[%s7303_s0 + $0xb1] sm:$0xff]  ;;  %v157_v22 = vld [vmem:[%s7303_s0 + $0xa9] sm:$0xff] }
   0xa   :  { %281 = vrot.lane.b32.xlu1 %v148_v4, %s4270_s16  ;;  %279 = vrot.lane.b32.xlu0 %v147_v5, %s4270_s16  ;;  %86 = vst.msk [vmem:[#allocation2 + $0x38] sm:$0xff] %vm78_vm0, %v4394_v20  ;;  %v4407_v23 = vld [vmem:[%s7303_s0 + $0x48] sm:$0xff]  ;;  %v4419_v25 = vld [vmem:[%s7303_s0 + $0x60] sm:$0xff] }
   0xb   :  { %85 = vst.msk [vmem:[#allocation2 + $0x30] sm:$0xff] %vm78_vm0, %v4407_v23  ;;  %v4414_v24 = vld [vmem:[%s7303_s0 + $0x68] sm:$0xff]  ;;  %87 = vst.msk [vmem:[#allocation2 + $0x40] sm:$0xff] %vm78_vm0, %v4419_v25  ;;  %v4428_v26 = vld [vmem:[%s7303_s0 + $0x80] sm:$0xff] }
   0xc   :  { %88 = vst.msk [vmem:[#allocation2 + $0x48] sm:$0xff] %vm78_vm0, %v4414_v24  ;;  %v4433_v27 = vld [vmem:[%s7303_s0 + $0x78] sm:$0xff]  ;;  %v160_v28 = vld [vmem:[%s7303_s0 + $0xc9] sm:$0xff]  ;;  %90 = vst.msk [vmem:[#allocation2 + $0x58] sm:$0xff] %vm78_vm0, %v4428_v26 }
   0xd   :  { %89 = vst.msk [vmem:[#allocation2 + $0x50] sm:$0xff] %vm78_vm0, %v4433_v27  ;;  %v159_v29 = vld [vmem:[%s7303_s0 + $0xc1] sm:$0xff]  ;;  %v4450_v30 = vld [vmem:[%s7303_s0 + $0x98] sm:$0xff]  ;;  %v4455_v31 = vld [vmem:[%s7303_s0 + $0x90] sm:$0xff] }
   0xe   :  { %285 = vrot.lane.b32.xlu1 %v150_v6, %s4270_s16  ;;  %283 = vrot.lane.b32.xlu0 %v149_v7, %s4270_s16  ;;  %92 = vst.msk [vmem:[#allocation2 + $0x68] sm:$0xff] %vm78_vm0, %v4450_v30  ;;  %91 = vst.msk [vmem:[#allocation2 + $0x60] sm:$0xff] %vm78_vm0, %v4455_v31  ;;  %v4464_v32 = vld [vmem:[%s7303_s0 + $0xb0] sm:$0xff]  ;;  %v4469_v33 = vld [vmem:[%s7303_s0 + $0xa8] sm:$0xff] }
   0xf   :  { %94 = vst.msk [vmem:[#allocation2 + $0x78] sm:$0xff] %vm78_vm0, %v4464_v32  ;;  %93 = vst.msk [vmem:[#allocation2 + $0x70] sm:$0xff] %vm78_vm0, %v4469_v33  ;;  %v4478_v34 = vld [vmem:[%s7303_s0 + $0xc8] sm:$0xff]  ;;  %v4490_v36 = vld [vmem:[%s7303_s0 + $0xc0] sm:$0xff] }
  0x10   :  { %v162_v35 = vld [vmem:[%s7303_s0 + $0xe1] sm:$0xff]  ;;  %96 = vst.msk [vmem:[#allocation2 + $0x88] sm:$0xff] %vm78_vm0, %v4478_v34  ;;  %v161_v37 = vld [vmem:[%s7303_s0 + $0xd9] sm:$0xff]  ;;  %95 = vst.msk [vmem:[#allocation2 + $0x80] sm:$0xff] %vm78_vm0, %v4490_v36 }
  0x11   :  { %v4500_v38 = vld [vmem:[%s7303_s0 + $0xe0] sm:$0xff]  ;;  %v4505_v39 = vld [vmem:[%s7303_s0 + $0xd8] sm:$0xff]  ;;  %v4521_v41 = vld [vmem:[%s7303_s0 + $0xf0] sm:$0xff] }
  0x12   :  { %289 = vrot.lane.b32.xlu1 %v152_v8, %s4270_s16  ;;  %287 = vrot.lane.b32.xlu0 %v151_v9, %s4270_s16  ;;  %98 = vst.msk [vmem:[#allocation2 + $0x98] sm:$0xff] %vm78_vm0, %v4500_v38  ;;  %97 = vst.msk [vmem:[#allocation2 + $0x90] sm:$0xff] %vm78_vm0, %v4505_v39  ;;  %v4514_v40 = vld [vmem:[%s7303_s0 + $0xf8] sm:$0xff]  ;;  %v4530_v42 = vld [vmem:[%s7303_s0 + $0x110] sm:$0xff] }
  0x13   :  { %100 = vst.msk [vmem:[#allocation2 + $0xa8] sm:$0xff] %vm78_vm0, %v4514_v40  ;;  %99 = vst.msk [vmem:[#allocation2 + $0xa0] sm:$0xff] %vm78_vm0, %v4521_v41  ;;  %v4535_v43 = vld [vmem:[%s7303_s0 + $0x108] sm:$0xff]  ;;  %v164_v44 = vld [vmem:[%s7303_s0 + $0xf9] sm:$0xff] }
  0x14   :  { %v163_v45 = vld [vmem:[%s7303_s0 + $0xf1] sm:$0xff]  ;;  %102 = vst.msk [vmem:[#allocation2 + $0xb8] sm:$0xff] %vm78_vm0, %v4530_v42  ;;  %101 = vst.msk [vmem:[#allocation2 + $0xb0] sm:$0xff] %vm78_vm0, %v4535_v43  ;;  %v4550_v46 = vld [vmem:[%s7303_s0 + $0x128] sm:$0xff] }
  0x15   :  { %104 = vst.msk [vmem:[#allocation2 + $0xc8] sm:$0xff] %vm78_vm0, %v4550_v46  ;;  %v4557_v47 = vld [vmem:[%s7303_s0 + $0x120] sm:$0xff]  ;;  %v4569_v49 = vld [vmem:[%s7303_s0 + $0x138] sm:$0xff]  ;;  %v165_v51 = vld [vmem:[%s7303_s0 + $0x109] sm:$0xff] }
  0x16   :  { %293 = vrot.lane.b32.xlu1 %v154_v10, %s4270_s16  ;;  %291 = vrot.lane.b32.xlu0 %v153_v11, %s4270_s16  ;;  %103 = vst.msk [vmem:[#allocation2 + $0xc0] sm:$0xff] %vm78_vm0, %v4557_v47  ;;  %v4564_v48 = vld [vmem:[%s7303_s0 + $0x140] sm:$0xff]  ;;  %v166_v50 = vld [vmem:[%s7303_s0 + $0x111] sm:$0xff]  ;;  %105 = vst.msk [vmem:[#allocation2 + $0xd0] sm:$0xff] %vm78_vm0, %v4569_v49 }
  0x17   :  { %106 = vst.msk [vmem:[#allocation2 + $0xd8] sm:$0xff] %vm78_vm0, %v4564_v48  ;;  %v4586_v52 = vld [vmem:[%s7303_s0 + $0x158] sm:$0xff]  ;;  %v4591_v53 = vld [vmem:[%s7303_s0 + $0x150] sm:$0xff]  ;;  %v167_v55 = vld [vmem:[%s7303_s0 + $0x121] sm:$0xff] }
  0x18   :  { %108 = vst.msk [vmem:[#allocation2 + $0xe8] sm:$0xff] %vm78_vm0, %v4586_v52  ;;  %107 = vst.msk [vmem:[#allocation2 + $0xe0] sm:$0xff] %vm78_vm0, %v4591_v53  ;;  %v168_v54 = vld [vmem:[%s7303_s0 + $0x129] sm:$0xff]  ;;  %v170_v58 = vld [vmem:[%s7303_s0 + $0x141] sm:$0xff] }
  0x19   :  { %v4608_v56 = vld [vmem:[%s7303_s0 + $0x170] sm:$0xff]  ;;  %v4613_v57 = vld [vmem:[%s7303_s0 + $0x168] sm:$0xff]  ;;  %v169_v59 = vld [vmem:[%s7303_s0 + $0x139] sm:$0xff] }
  0x1a   :  { %297 = vrot.lane.b32.xlu1 %v156_v14, %s4270_s16  ;;  %295 = vrot.lane.b32.xlu0 %v155_v15, %s4270_s16  ;;  %110 = vst.msk [vmem:[#allocation2 + $0xf8] sm:$0xff] %vm78_vm0, %v4608_v56  ;;  %109 = vst.msk [vmem:[#allocation2 + $0xf0] sm:$0xff] %vm78_vm0, %v4613_v57  ;;  %v47_v60 = vld [vmem:[%s7303_s0 + $0x1b8] sm:$0xff]  ;;  %v46_v61 = vld [vmem:[%s7303_s0 + $0x1b0] sm:$0xff] }
  0x1b   :  { %112 = vst.msk [vmem:[#allocation2 + $0x108] sm:$0xff] %vm78_vm0, %v47_v60  ;;  %111 = vst.msk [vmem:[#allocation2 + $0x100] sm:$0xff] %vm78_vm0, %v46_v61  ;;  %v172_v62 = vld [vmem:[%s7303_s0 + $0x159] sm:$0xff]  ;;  %v171_v63 = vld [vmem:[%s7303_s0 + $0x151] sm:$0xff] }
  0x1c   :  { %v4646_v0 = vld [vmem:[%s7303_s0 + $0x1d0] sm:$0xff]  ;;  %v4651_v1 = vld [vmem:[%s7303_s0 + $0x1c8] sm:$0xff]  ;;  %v4673_v5 = vld [vmem:[%s7303_s0 + $0x1e0] sm:$0xff] }
  0x1d   :  { %114 = vst.msk [vmem:[#allocation2 + $0x118] sm:$0xff] %vm78_vm0, %v4646_v0  ;;  %113 = vst.msk [vmem:[#allocation2 + $0x110] sm:$0xff] %vm78_vm0, %v4651_v1  ;;  %v174_v2 = vld [vmem:[%s7303_s0 + $0x171] sm:$0xff]  ;;  %v173_v3 = vld [vmem:[%s7303_s0 + $0x169] sm:$0xff] }
  0x1e   :  { %301 = vrot.lane.b32.xlu1 %v158_v21, %s4270_s16  ;;  %299 = vrot.lane.b32.xlu0 %v157_v22, %s4270_s16  ;;  %v4668_v4 = vld [vmem:[%s7303_s0 + $0x1e8] sm:$0xff]  ;;  %115 = vst.msk [vmem:[#allocation2 + $0x120] sm:$0xff] %vm78_vm0, %v4673_v5  ;;  %v176_v6 = vld [vmem:[%s7303_s0 + $0x1b9] sm:$0xff] }
  0x1f   :  { %116 = vst.msk [vmem:[#allocation2 + $0x128] sm:$0xff] %vm78_vm0, %v4668_v4  ;;  %v175_v7 = vld [vmem:[%s7303_s0 + $0x1b1] sm:$0xff]  ;;  %v4690_v8 = vld [vmem:[%s7303_s0 + $0x200] sm:$0xff]  ;;  %v177_v11 = vld [vmem:[%s7303_s0 + $0x1c9] sm:$0xff] }
  0x20   :  { %v4695_v9 = vld [vmem:[%s7303_s0 + $0x1f8] sm:$0xff]  ;;  %118 = vst.msk [vmem:[#allocation2 + $0x138] sm:$0xff] %vm78_vm0, %v4690_v8  ;;  %v4717_v14 = vld [vmem:[%s7303_s0 + $0x210] sm:$0xff]  ;;  %v179_v17 = vld [vmem:[%s7303_s0 + $0x1e1] sm:$0xff] }
  0x21   :  { %117 = vst.msk [vmem:[#allocation2 + $0x130] sm:$0xff] %vm78_vm0, %v4695_v9  ;;  %v178_v10 = vld [vmem:[%s7303_s0 + $0x1d1] sm:$0xff]  ;;  %119 = vst.msk [vmem:[#allocation2 + $0x140] sm:$0xff] %vm78_vm0, %v4717_v14  ;;  %v180_v15 = vld [vmem:[%s7303_s0 + $0x1e9] sm:$0xff] }
  0x22   :  { %305 = vrot.lane.b32.xlu1 %v160_v28, %s4270_s16  ;;  %303 = vrot.lane.b32.xlu0 %v159_v29, %s4270_s16  ;;  %v4712_v13 = vld [vmem:[%s7303_s0 + $0x218] sm:$0xff]  ;;  %v4734_v21 = vld [vmem:[%s7303_s0 + $0x230] sm:$0xff] }
  0x23   :  { %120 = vst.msk [vmem:[#allocation2 + $0x148] sm:$0xff] %vm78_vm0, %v4712_v13  ;;  %v4739_v22 = vld [vmem:[%s7303_s0 + $0x228] sm:$0xff]  ;;  %122 = vst.msk [vmem:[#allocation2 + $0x158] sm:$0xff] %vm78_vm0, %v4734_v21  ;;  %v181_v29 = vld [vmem:[%s7303_s0 + $0x1f9] sm:$0xff] }
  0x24   :  { %121 = vst.msk [vmem:[#allocation2 + $0x150] sm:$0xff] %vm78_vm0, %v4739_v22  ;;  %v182_v28 = vld [vmem:[%s7303_s0 + $0x201] sm:$0xff]  ;;  %v188_v60 = vld [vmem:[%s7303_s0 + $0x249] sm:$0xff] }
  0x25   :  { %v187_v61 = vld [vmem:[%s7303_s0 + $0x241] sm:$0xff] }
  0x26   :  { %309 = vrot.lane.b32.xlu1 %v162_v35, %s4270_s16  ;;  %307 = vrot.lane.b32.xlu0 %v161_v37, %s4270_s16  ;;  %v4756_v35 = vld [vmem:[%s7303_s0 + $0x248] sm:$0xff]  ;;  %v4761_v37 = vld [vmem:[%s7303_s0 + $0x240] sm:$0xff] }
  0x27   :  { %124 = vst.msk [vmem:[#allocation2 + $0x168] sm:$0xff] %vm78_vm0, %v4756_v35  ;;  %123 = vst.msk [vmem:[#allocation2 + $0x160] sm:$0xff] %vm78_vm0, %v4761_v37 }
  0x2a   :  { %313 = vrot.lane.b32.xlu1 %v164_v44, %s4270_s16  ;;  %311 = vrot.lane.b32.xlu0 %v163_v45, %s4270_s16  ;;  %v184_v44 = vld [vmem:[%s7303_s0 + $0x219] sm:$0xff]  ;;  %v183_v45 = vld [vmem:[%s7303_s0 + $0x211] sm:$0xff] }
  0x2e   :  { %317 = vrot.lane.b32.xlu1 %v166_v50, %s4270_s16  ;;  %315 = vrot.lane.b32.xlu0 %v165_v51, %s4270_s16  ;;  %v4778_v50 = vld [vmem:[%s7303_s0 + $0x260] sm:$0xff]  ;;  %v4783_v51 = vld [vmem:[%s7303_s0 + $0x258] sm:$0xff] }
  0x2f   :  { %126 = vst.msk [vmem:[#allocation2 + $0x178] sm:$0xff] %vm78_vm0, %v4778_v50  ;;  %125 = vst.msk [vmem:[#allocation2 + $0x170] sm:$0xff] %vm78_vm0, %v4783_v51 }
  0x32   :  { %321 = vrot.lane.b32.xlu1 %v168_v54, %s4270_s16  ;;  %319 = vrot.lane.b32.xlu0 %v167_v55, %s4270_s16  ;;  %v186_v54 = vld [vmem:[%s7303_s0 + $0x231] sm:$0xff]  ;;  %v185_v55 = vld [vmem:[%s7303_s0 + $0x229] sm:$0xff] }
  0x36   :  { %325 = vrot.lane.b32.xlu1 %v170_v58, %s4270_s16  ;;  %323 = vrot.lane.b32.xlu0 %v169_v59, %s4270_s16  ;;  %v4800_v58 = vld [vmem:[%s7303_s0 + $0x278] sm:$0xff]  ;;  %v4805_v59 = vld [vmem:[%s7303_s0 + $0x270] sm:$0xff] }
  0x37   :  { %128 = vst.msk [vmem:[#allocation2 + $0x188] sm:$0xff] %vm78_vm0, %v4800_v58  ;;  %127 = vst.msk [vmem:[#allocation2 + $0x180] sm:$0xff] %vm78_vm0, %v4805_v59 }
  0x3a   :  { %329 = vrot.lane.b32.xlu1 %v172_v62, %s4270_s16  ;;  %327 = vrot.lane.b32.xlu0 %v171_v63, %s4270_s16  ;;  %v4822_v62 = vld [vmem:[%s7303_s0 + $0x290] sm:$0xff]  ;;  %v4827_v63 = vld [vmem:[%s7303_s0 + $0x288] sm:$0xff] }
  0x3b   :  { %130 = vst.msk [vmem:[#allocation2 + $0x198] sm:$0xff] %vm78_vm0, %v4822_v62  ;;  %129 = vst.msk [vmem:[#allocation2 + $0x190] sm:$0xff] %vm78_vm0, %v4827_v63 }
  0x3e   :  { %333 = vrot.lane.b32.xlu1 %v174_v2, %s4270_s16  ;;  %331 = vrot.lane.b32.xlu0 %v173_v3, %s4270_s16  ;;  %v190_v2 = vld [vmem:[%s7303_s0 + $0x261] sm:$0xff]  ;;  %v189_v3 = vld [vmem:[%s7303_s0 + $0x259] sm:$0xff] }
  0x42   :  { %337 = vrot.lane.b32.xlu1 %v176_v6, %s4270_s16  ;;  %335 = vrot.lane.b32.xlu0 %v175_v7, %s4270_s16  ;;  %v4844_v6 = vld [vmem:[%s7303_s0 + $0x2a8] sm:$0xff]  ;;  %v4849_v7 = vld [vmem:[%s7303_s0 + $0x2a0] sm:$0xff] }
  0x43   :  { %132 = vst.msk [vmem:[#allocation2 + $0x1a8] sm:$0xff] %vm78_vm0, %v4844_v6  ;;  %131 = vst.msk [vmem:[#allocation2 + $0x1a0] sm:$0xff] %vm78_vm0, %v4849_v7 }
  0x46   :  { %341 = vrot.lane.b32.xlu1 %v178_v10, %s4270_s16  ;;  %339 = vrot.lane.b32.xlu0 %v177_v11, %s4270_s16  ;;  %v192_v10 = vld [vmem:[%s7303_s0 + $0x279] sm:$0xff]  ;;  %v191_v11 = vld [vmem:[%s7303_s0 + $0x271] sm:$0xff] }
  0x4a   :  { %345 = vrot.lane.b32.xlu1 %v180_v15, %s4270_s16  ;;  %343 = vrot.lane.b32.xlu0 %v179_v17, %s4270_s16  ;;  %v4866_v15 = vld [vmem:[%s7303_s0 + $0x2c0] sm:$0xff]  ;;  %v4871_v17 = vld [vmem:[%s7303_s0 + $0x2b8] sm:$0xff] }
  0x4b   :  { %134 = vst.msk [vmem:[#allocation2 + $0x1b8] sm:$0xff] %vm78_vm0, %v4866_v15  ;;  %133 = vst.msk [vmem:[#allocation2 + $0x1b0] sm:$0xff] %vm78_vm0, %v4871_v17 }
  0x4e   :  { %349 = vrot.lane.b32.xlu1 %v182_v28, %s4270_s16  ;;  %347 = vrot.lane.b32.xlu0 %v181_v29, %s4270_s16  ;;  %v194_v28 = vld [vmem:[%s7303_s0 + $0x291] sm:$0xff]  ;;  %v193_v29 = vld [vmem:[%s7303_s0 + $0x289] sm:$0xff] }
  0x52   :  { %353 = vrot.lane.b32.xlu1 %v184_v44, %s4270_s16  ;;  %351 = vrot.lane.b32.xlu0 %v183_v45, %s4270_s16  ;;  %v4888_v44 = vld [vmem:[%s7303_s0 + $0x2d8] sm:$0xff]  ;;  %v4893_v45 = vld [vmem:[%s7303_s0 + $0x2d0] sm:$0xff] }
  0x53   :  { %136 = vst.msk [vmem:[#allocation2 + $0x1c8] sm:$0xff] %vm78_vm0, %v4888_v44  ;;  %135 = vst.msk [vmem:[#allocation2 + $0x1c0] sm:$0xff] %vm78_vm0, %v4893_v45 }
  0x56   :  { %357 = vrot.lane.b32.xlu1 %v186_v54, %s4270_s16  ;;  %355 = vrot.lane.b32.xlu0 %v185_v55, %s4270_s16  ;;  %v196_v54 = vld [vmem:[%s7303_s0 + $0x2a9] sm:$0xff]  ;;  %v195_v55 = vld [vmem:[%s7303_s0 + $0x2a1] sm:$0xff] }
  0x5a   :  { %361 = vrot.lane.b32.xlu1 %v188_v60, %s4270_s16  ;;  %359 = vrot.lane.b32.xlu0 %v187_v61, %s4270_s16  ;;  %v4910_v60 = vld [vmem:[%s7303_s0 + $0x2f0] sm:$0xff]  ;;  %v4915_v61 = vld [vmem:[%s7303_s0 + $0x2e8] sm:$0xff] }
  0x5b   :  { %138 = vst.msk [vmem:[#allocation2 + $0x1d8] sm:$0xff] %vm78_vm0, %v4910_v60  ;;  %137 = vst.msk [vmem:[#allocation2 + $0x1d0] sm:$0xff] %vm78_vm0, %v4915_v61 }
  0x5e   :  { %365 = vrot.lane.b32.xlu1 %v190_v2, %s4270_s16  ;;  %363 = vrot.lane.b32.xlu0 %v189_v3, %s4270_s16  ;;  %v198_v2 = vld [vmem:[%s7303_s0 + $0x2c1] sm:$0xff]  ;;  %v197_v3 = vld [vmem:[%s7303_s0 + $0x2b9] sm:$0xff] }
  0x62   :  { %369 = vrot.lane.b32.xlu1 %v192_v10, %s4270_s16  ;;  %367 = vrot.lane.b32.xlu0 %v191_v11, %s4270_s16  ;;  %v4932_v10 = vld [vmem:[%s7303_s0 + $0x308] sm:$0xff]  ;;  %v4937_v11 = vld [vmem:[%s7303_s0 + $0x300] sm:$0xff] }
  0x63   :  { %7311 = vst [vmem:[#allocation3_spill] sm:$0xff] %v4932_v10  ;;  %7312 = vst [vmem:[#allocation4_spill] sm:$0xff] %v4937_v11 }
  0x64   :  { %140 = vst.msk [vmem:[#allocation2 + $0x1e8] sm:$0xff] %vm78_vm0, %v4932_v10  ;;  %139 = vst.msk [vmem:[#allocation2 + $0x1e0] sm:$0xff] %vm78_vm0, %v4937_v11 }
  0x66   :  { %373 = vrot.lane.b32.xlu1 %v194_v28, %s4270_s16  ;;  %371 = vrot.lane.b32.xlu0 %v193_v29, %s4270_s16  ;;  %v200_v28 = vld [vmem:[%s7303_s0 + $0x2d9] sm:$0xff]  ;;  %v199_v29 = vld [vmem:[%s7303_s0 + $0x2d1] sm:$0xff] }
  0x6a   :  { %377 = vrot.lane.b32.xlu1 %v196_v54, %s4270_s16  ;;  %375 = vrot.lane.b32.xlu0 %v195_v55, %s4270_s16  ;;  %v4954_v54 = vld [vmem:[%s7303_s0 + $0x320] sm:$0xff]  ;;  %v4959_v55 = vld [vmem:[%s7303_s0 + $0x318] sm:$0xff] }
  0x6b   :  { %7313 = vst [vmem:[#allocation5_spill] sm:$0xff] %v4954_v54  ;;  %7314 = vst [vmem:[#allocation6_spill] sm:$0xff] %v4959_v55 }
  0x6c   :  { %142 = vst.msk [vmem:[#allocation2 + $0x1f8] sm:$0xff] %vm78_vm0, %v4954_v54  ;;  %141 = vst.msk [vmem:[#allocation2 + $0x1f0] sm:$0xff] %vm78_vm0, %v4959_v55 }
  0x6e   :  { %381 = vrot.lane.b32.xlu1 %v198_v2, %s4270_s16  ;;  %379 = vrot.lane.b32.xlu0 %v197_v3, %s4270_s16  ;;  %v202_v2 = vld [vmem:[%s7303_s0 + $0x2f1] sm:$0xff]  ;;  %v201_v3 = vld [vmem:[%s7303_s0 + $0x2e9] sm:$0xff] }
  0x72   :  { %385 = vrot.lane.b32.xlu1 %v200_v28, %s4270_s16  ;;  %383 = vrot.lane.b32.xlu0 %v199_v29, %s4270_s16  ;;  %v204_v28 = vld [vmem:[%s7303_s0 + $0x309] sm:$0xff]  ;;  %v203_v29 = vld [vmem:[%s7303_s0 + $0x301] sm:$0xff] }
  0x74   :  { %v276_v11 = vpop.permute.xlu1 %275  ;;  %v272_v10 = vpop.permute.xlu0 %271 }
  0x75   :  { %466 = vst.msk [vmem:[#allocation2 + $0x10] sm:$0xff] %vm463_vm1, %v276_v11  ;;  %464 = vst.msk [vmem:[#allocation2] sm:$0xff] %vm463_vm1, %v272_v10  ;;  %v206_v10 = vld [vmem:[%s7303_s0 + $0x321] sm:$0xff]  ;;  %v205_v11 = vld [vmem:[%s7303_s0 + $0x319] sm:$0xff] }
  0x76   :  { %389 = vrot.lane.b32.xlu1 %v202_v2, %s4270_s16  ;;  %387 = vrot.lane.b32.xlu0 %v201_v3, %s4270_s16 }
  0x78   :  { %v278_v55 = vpop.permute.xlu1 %277  ;;  %v274_v54 = vpop.permute.xlu0 %273 }
  0x79   :  { %467 = vst.msk [vmem:[#allocation2 + $0x18] sm:$0xff] %vm463_vm1, %v278_v55  ;;  %465 = vst.msk [vmem:[#allocation2 + $0x8] sm:$0xff] %vm463_vm1, %v274_v54  ;;  %v529_v54 = vld [vmem:[%s7303_s0 + $0xa] sm:$0xff]  ;;  %v528_v55 = vld [vmem:[%s7303_s0 + $0x2] sm:$0xff] }
  0x7a   :  { %393 = vrot.lane.b32.xlu1 %v204_v28, %s4270_s16  ;;  %391 = vrot.lane.b32.xlu0 %v203_v29, %s4270_s16 }
  0x7c   :  { %v282_v2 = vpop.permute.xlu1 %281  ;;  %v280_v3 = vpop.permute.xlu0 %279 }
  0x7d   :  { %469 = vst.msk [vmem:[#allocation2 + $0x28] sm:$0xff] %vm463_vm1, %v282_v2  ;;  %468 = vst.msk [vmem:[#allocation2 + $0x20] sm:$0xff] %vm463_vm1, %v280_v3 }
  0x7e   :  { %397 = vrot.lane.b32.xlu1 %v206_v10, %s4270_s16  ;;  %395 = vrot.lane.b32.xlu0 %v205_v11, %s4270_s16  ;;  %v531_v10 = vld [vmem:[%s7303_s0 + $0x22] sm:$0xff]  ;;  %v530_v11 = vld [vmem:[%s7303_s0 + $0x1a] sm:$0xff] }
  0x80   :  { %v286_v28 = vpop.permute.xlu1 %285  ;;  %v284_v29 = vpop.permute.xlu0 %283 }
  0x81   :  { %471 = vst.msk [vmem:[#allocation2 + $0x38] sm:$0xff] %vm463_vm1, %v286_v28  ;;  %470 = vst.msk [vmem:[#allocation2 + $0x30] sm:$0xff] %vm463_vm1, %v284_v29 }
  0x82   :  { %658 = vrot.lane.b32.xlu1 %v529_v54, %s4271_s12  ;;  %656 = vrot.lane.b32.xlu0 %v528_v55, %s4271_s12  ;;  %v533_v54 = vld [vmem:[%s7303_s0 + $0x3a] sm:$0xff]  ;;  %v532_v55 = vld [vmem:[%s7303_s0 + $0x32] sm:$0xff] }
  0x84   :  { %v290_v2 = vpop.permute.xlu1 %289  ;;  %v288_v3 = vpop.permute.xlu0 %287 }
  0x85   :  { %473 = vst.msk [vmem:[#allocation2 + $0x48] sm:$0xff] %vm463_vm1, %v290_v2  ;;  %472 = vst.msk [vmem:[#allocation2 + $0x40] sm:$0xff] %vm463_vm1, %v288_v3 }
  0x86   :  { %662 = vrot.lane.b32.xlu1 %v531_v10, %s4271_s12  ;;  %660 = vrot.lane.b32.xlu0 %v530_v11, %s4271_s12  ;;  %v535_v10 = vld [vmem:[%s7303_s0 + $0x52] sm:$0xff]  ;;  %v534_v11 = vld [vmem:[%s7303_s0 + $0x4a] sm:$0xff] }
  0x88   :  { %v294_v28 = vpop.permute.xlu1 %293  ;;  %v292_v29 = vpop.permute.xlu0 %291 }
  0x89   :  { %475 = vst.msk [vmem:[#allocation2 + $0x58] sm:$0xff] %vm463_vm1, %v294_v28  ;;  %474 = vst.msk [vmem:[#allocation2 + $0x50] sm:$0xff] %vm463_vm1, %v292_v29 }
  0x8a   :  { %666 = vrot.lane.b32.xlu1 %v533_v54, %s4271_s12  ;;  %664 = vrot.lane.b32.xlu0 %v532_v55, %s4271_s12  ;;  %v537_v54 = vld [vmem:[%s7303_s0 + $0x6a] sm:$0xff]  ;;  %v536_v55 = vld [vmem:[%s7303_s0 + $0x62] sm:$0xff] }
  0x8c   :  { %v298_v2 = vpop.permute.xlu1 %297  ;;  %v296_v3 = vpop.permute.xlu0 %295 }
  0x8d   :  { %477 = vst.msk [vmem:[#allocation2 + $0x68] sm:$0xff] %vm463_vm1, %v298_v2  ;;  %476 = vst.msk [vmem:[#allocation2 + $0x60] sm:$0xff] %vm463_vm1, %v296_v3 }
  0x8e   :  { %670 = vrot.lane.b32.xlu1 %v535_v10, %s4271_s12  ;;  %668 = vrot.lane.b32.xlu0 %v534_v11, %s4271_s12  ;;  %v539_v10 = vld [vmem:[%s7303_s0 + $0x82] sm:$0xff]  ;;  %v538_v11 = vld [vmem:[%s7303_s0 + $0x7a] sm:$0xff] }
  0x90   :  { %v302_v28 = vpop.permute.xlu1 %301  ;;  %v300_v29 = vpop.permute.xlu0 %299 }
  0x91   :  { %479 = vst.msk [vmem:[#allocation2 + $0x78] sm:$0xff] %vm463_vm1, %v302_v28  ;;  %478 = vst.msk [vmem:[#allocation2 + $0x70] sm:$0xff] %vm463_vm1, %v300_v29 }
  0x92   :  { %674 = vrot.lane.b32.xlu1 %v537_v54, %s4271_s12  ;;  %672 = vrot.lane.b32.xlu0 %v536_v55, %s4271_s12  ;;  %v541_v54 = vld [vmem:[%s7303_s0 + $0x9a] sm:$0xff]  ;;  %v540_v55 = vld [vmem:[%s7303_s0 + $0x92] sm:$0xff] }
  0x94   :  { %v306_v2 = vpop.permute.xlu1 %305  ;;  %v304_v3 = vpop.permute.xlu0 %303 }
  0x95   :  { %481 = vst.msk [vmem:[#allocation2 + $0x88] sm:$0xff] %vm463_vm1, %v306_v2  ;;  %480 = vst.msk [vmem:[#allocation2 + $0x80] sm:$0xff] %vm463_vm1, %v304_v3 }
  0x96   :  { %678 = vrot.lane.b32.xlu1 %v539_v10, %s4271_s12  ;;  %676 = vrot.lane.b32.xlu0 %v538_v11, %s4271_s12  ;;  %v543_v10 = vld [vmem:[%s7303_s0 + $0xb2] sm:$0xff]  ;;  %v542_v11 = vld [vmem:[%s7303_s0 + $0xaa] sm:$0xff] }
  0x98   :  { %v310_v28 = vpop.permute.xlu1 %309  ;;  %v308_v29 = vpop.permute.xlu0 %307 }
  0x99   :  { %483 = vst.msk [vmem:[#allocation2 + $0x98] sm:$0xff] %vm463_vm1, %v310_v28  ;;  %482 = vst.msk [vmem:[#allocation2 + $0x90] sm:$0xff] %vm463_vm1, %v308_v29 }
  0x9a   :  { %682 = vrot.lane.b32.xlu1 %v541_v54, %s4271_s12  ;;  %680 = vrot.lane.b32.xlu0 %v540_v55, %s4271_s12  ;;  %v545_v54 = vld [vmem:[%s7303_s0 + $0xca] sm:$0xff]  ;;  %v544_v55 = vld [vmem:[%s7303_s0 + $0xc2] sm:$0xff] }
  0x9c   :  { %v314_v2 = vpop.permute.xlu1 %313  ;;  %v312_v3 = vpop.permute.xlu0 %311 }
  0x9d   :  { %485 = vst.msk [vmem:[#allocation2 + $0xa8] sm:$0xff] %vm463_vm1, %v314_v2  ;;  %484 = vst.msk [vmem:[#allocation2 + $0xa0] sm:$0xff] %vm463_vm1, %v312_v3 }
  0x9e   :  { %686 = vrot.lane.b32.xlu1 %v543_v10, %s4271_s12  ;;  %684 = vrot.lane.b32.xlu0 %v542_v11, %s4271_s12  ;;  %v547_v10 = vld [vmem:[%s7303_s0 + $0xe2] sm:$0xff]  ;;  %v546_v11 = vld [vmem:[%s7303_s0 + $0xda] sm:$0xff] }
  0xa0   :  { %v318_v28 = vpop.permute.xlu1 %317  ;;  %v316_v29 = vpop.permute.xlu0 %315 }
  0xa1   :  { %487 = vst.msk [vmem:[#allocation2 + $0xb8] sm:$0xff] %vm463_vm1, %v318_v28  ;;  %486 = vst.msk [vmem:[#allocation2 + $0xb0] sm:$0xff] %vm463_vm1, %v316_v29 }
  0xa2   :  { %690 = vrot.lane.b32.xlu1 %v545_v54, %s4271_s12  ;;  %688 = vrot.lane.b32.xlu0 %v544_v55, %s4271_s12  ;;  %v549_v54 = vld [vmem:[%s7303_s0 + $0xfa] sm:$0xff]  ;;  %v548_v55 = vld [vmem:[%s7303_s0 + $0xf2] sm:$0xff] }
  0xa4   :  { %v322_v2 = vpop.permute.xlu1 %321  ;;  %v320_v3 = vpop.permute.xlu0 %319 }
  0xa5   :  { %489 = vst.msk [vmem:[#allocation2 + $0xc8] sm:$0xff] %vm463_vm1, %v322_v2  ;;  %488 = vst.msk [vmem:[#allocation2 + $0xc0] sm:$0xff] %vm463_vm1, %v320_v3 }
  0xa6   :  { %694 = vrot.lane.b32.xlu1 %v547_v10, %s4271_s12  ;;  %692 = vrot.lane.b32.xlu0 %v546_v11, %s4271_s12  ;;  %v551_v10 = vld [vmem:[%s7303_s0 + $0x112] sm:$0xff]  ;;  %v550_v11 = vld [vmem:[%s7303_s0 + $0x10a] sm:$0xff] }
  0xa8   :  { %v326_v28 = vpop.permute.xlu1 %325  ;;  %v324_v29 = vpop.permute.xlu0 %323 }
  0xa9   :  { %491 = vst.msk [vmem:[#allocation2 + $0xd8] sm:$0xff] %vm463_vm1, %v326_v28  ;;  %490 = vst.msk [vmem:[#allocation2 + $0xd0] sm:$0xff] %vm463_vm1, %v324_v29 }
  0xaa   :  { %698 = vrot.lane.b32.xlu1 %v549_v54, %s4271_s12  ;;  %696 = vrot.lane.b32.xlu0 %v548_v55, %s4271_s12  ;;  %v553_v54 = vld [vmem:[%s7303_s0 + $0x12a] sm:$0xff]  ;;  %v552_v55 = vld [vmem:[%s7303_s0 + $0x122] sm:$0xff] }
  0xac   :  { %v330_v2 = vpop.permute.xlu1 %329  ;;  %v328_v3 = vpop.permute.xlu0 %327 }
  0xad   :  { %493 = vst.msk [vmem:[#allocation2 + $0xe8] sm:$0xff] %vm463_vm1, %v330_v2  ;;  %492 = vst.msk [vmem:[#allocation2 + $0xe0] sm:$0xff] %vm463_vm1, %v328_v3 }
  0xae   :  { %702 = vrot.lane.b32.xlu1 %v551_v10, %s4271_s12  ;;  %700 = vrot.lane.b32.xlu0 %v550_v11, %s4271_s12  ;;  %v555_v10 = vld [vmem:[%s7303_s0 + $0x142] sm:$0xff]  ;;  %v554_v11 = vld [vmem:[%s7303_s0 + $0x13a] sm:$0xff] }
  0xb0   :  { %v334_v28 = vpop.permute.xlu1 %333  ;;  %v332_v29 = vpop.permute.xlu0 %331 }
  0xb1   :  { %495 = vst.msk [vmem:[#allocation2 + $0xf8] sm:$0xff] %vm463_vm1, %v334_v28  ;;  %494 = vst.msk [vmem:[#allocation2 + $0xf0] sm:$0xff] %vm463_vm1, %v332_v29 }
  0xb2   :  { %706 = vrot.lane.b32.xlu1 %v553_v54, %s4271_s12  ;;  %704 = vrot.lane.b32.xlu0 %v552_v55, %s4271_s12  ;;  %v557_v54 = vld [vmem:[%s7303_s0 + $0x15a] sm:$0xff]  ;;  %v556_v55 = vld [vmem:[%s7303_s0 + $0x152] sm:$0xff] }
  0xb4   :  { %v338_v2 = vpop.permute.xlu1 %337  ;;  %v336_v3 = vpop.permute.xlu0 %335 }
  0xb5   :  { %497 = vst.msk [vmem:[#allocation2 + $0x108] sm:$0xff] %vm463_vm1, %v338_v2  ;;  %496 = vst.msk [vmem:[#allocation2 + $0x100] sm:$0xff] %vm463_vm1, %v336_v3 }
  0xb6   :  { %710 = vrot.lane.b32.xlu1 %v555_v10, %s4271_s12  ;;  %708 = vrot.lane.b32.xlu0 %v554_v11, %s4271_s12  ;;  %v559_v10 = vld [vmem:[%s7303_s0 + $0x172] sm:$0xff]  ;;  %v558_v11 = vld [vmem:[%s7303_s0 + $0x16a] sm:$0xff] }
  0xb8   :  { %v342_v28 = vpop.permute.xlu1 %341  ;;  %v340_v29 = vpop.permute.xlu0 %339 }
  0xb9   :  { %499 = vst.msk [vmem:[#allocation2 + $0x118] sm:$0xff] %vm463_vm1, %v342_v28  ;;  %498 = vst.msk [vmem:[#allocation2 + $0x110] sm:$0xff] %vm463_vm1, %v340_v29 }
  0xba   :  { %714 = vrot.lane.b32.xlu1 %v557_v54, %s4271_s12  ;;  %712 = vrot.lane.b32.xlu0 %v556_v55, %s4271_s12  ;;  %v561_v54 = vld [vmem:[%s7303_s0 + $0x1ba] sm:$0xff]  ;;  %v560_v55 = vld [vmem:[%s7303_s0 + $0x1b2] sm:$0xff] }
  0xbc   :  { %v346_v2 = vpop.permute.xlu1 %345  ;;  %v344_v3 = vpop.permute.xlu0 %343 }
  0xbd   :  { %501 = vst.msk [vmem:[#allocation2 + $0x128] sm:$0xff] %vm463_vm1, %v346_v2  ;;  %500 = vst.msk [vmem:[#allocation2 + $0x120] sm:$0xff] %vm463_vm1, %v344_v3 }
  0xbe   :  { %718 = vrot.lane.b32.xlu1 %v559_v10, %s4271_s12  ;;  %716 = vrot.lane.b32.xlu0 %v558_v11, %s4271_s12  ;;  %v563_v10 = vld [vmem:[%s7303_s0 + $0x1d2] sm:$0xff]  ;;  %v562_v11 = vld [vmem:[%s7303_s0 + $0x1ca] sm:$0xff] }
  0xc0   :  { %v350_v28 = vpop.permute.xlu1 %349  ;;  %v348_v29 = vpop.permute.xlu0 %347 }
  0xc1   :  { %503 = vst.msk [vmem:[#allocation2 + $0x138] sm:$0xff] %vm463_vm1, %v350_v28  ;;  %502 = vst.msk [vmem:[#allocation2 + $0x130] sm:$0xff] %vm463_vm1, %v348_v29 }
  0xc2   :  { %722 = vrot.lane.b32.xlu1 %v561_v54, %s4271_s12  ;;  %720 = vrot.lane.b32.xlu0 %v560_v55, %s4271_s12  ;;  %v565_v54 = vld [vmem:[%s7303_s0 + $0x1ea] sm:$0xff]  ;;  %v564_v55 = vld [vmem:[%s7303_s0 + $0x1e2] sm:$0xff] }
  0xc4   :  { %v354_v2 = vpop.permute.xlu1 %353  ;;  %v352_v3 = vpop.permute.xlu0 %351 }
  0xc5   :  { %505 = vst.msk [vmem:[#allocation2 + $0x148] sm:$0xff] %vm463_vm1, %v354_v2  ;;  %504 = vst.msk [vmem:[#allocation2 + $0x140] sm:$0xff] %vm463_vm1, %v352_v3 }
  0xc6   :  { %726 = vrot.lane.b32.xlu1 %v563_v10, %s4271_s12  ;;  %724 = vrot.lane.b32.xlu0 %v562_v11, %s4271_s12  ;;  %v567_v10 = vld [vmem:[%s7303_s0 + $0x202] sm:$0xff]  ;;  %v566_v11 = vld [vmem:[%s7303_s0 + $0x1fa] sm:$0xff] }
  0xc8   :  { %v358_v28 = vpop.permute.xlu1 %357  ;;  %v356_v29 = vpop.permute.xlu0 %355 }
  0xc9   :  { %507 = vst.msk [vmem:[#allocation2 + $0x158] sm:$0xff] %vm463_vm1, %v358_v28  ;;  %506 = vst.msk [vmem:[#allocation2 + $0x150] sm:$0xff] %vm463_vm1, %v356_v29 }
  0xca   :  { %730 = vrot.lane.b32.xlu1 %v565_v54, %s4271_s12  ;;  %728 = vrot.lane.b32.xlu0 %v564_v55, %s4271_s12  ;;  %v569_v54 = vld [vmem:[%s7303_s0 + $0x21a] sm:$0xff]  ;;  %v568_v55 = vld [vmem:[%s7303_s0 + $0x212] sm:$0xff] }
  0xcc   :  { %v362_v2 = vpop.permute.xlu1 %361  ;;  %v360_v3 = vpop.permute.xlu0 %359 }
  0xcd   :  { %509 = vst.msk [vmem:[#allocation2 + $0x168] sm:$0xff] %vm463_vm1, %v362_v2  ;;  %508 = vst.msk [vmem:[#allocation2 + $0x160] sm:$0xff] %vm463_vm1, %v360_v3 }
  0xce   :  { %734 = vrot.lane.b32.xlu1 %v567_v10, %s4271_s12  ;;  %732 = vrot.lane.b32.xlu0 %v566_v11, %s4271_s12  ;;  %v571_v10 = vld [vmem:[%s7303_s0 + $0x232] sm:$0xff]  ;;  %v570_v11 = vld [vmem:[%s7303_s0 + $0x22a] sm:$0xff] }
  0xd0   :  { %v366_v28 = vpop.permute.xlu1 %365  ;;  %v364_v29 = vpop.permute.xlu0 %363 }
  0xd1   :  { %511 = vst.msk [vmem:[#allocation2 + $0x178] sm:$0xff] %vm463_vm1, %v366_v28  ;;  %510 = vst.msk [vmem:[#allocation2 + $0x170] sm:$0xff] %vm463_vm1, %v364_v29 }
  0xd2   :  { %738 = vrot.lane.b32.xlu1 %v569_v54, %s4271_s12  ;;  %736 = vrot.lane.b32.xlu0 %v568_v55, %s4271_s12  ;;  %v573_v54 = vld [vmem:[%s7303_s0 + $0x24a] sm:$0xff]  ;;  %v572_v55 = vld [vmem:[%s7303_s0 + $0x242] sm:$0xff] }
  0xd4   :  { %v370_v2 = vpop.permute.xlu1 %369  ;;  %v368_v3 = vpop.permute.xlu0 %367 }
  0xd5   :  { %513 = vst.msk [vmem:[#allocation2 + $0x188] sm:$0xff] %vm463_vm1, %v370_v2  ;;  %512 = vst.msk [vmem:[#allocation2 + $0x180] sm:$0xff] %vm463_vm1, %v368_v3 }
  0xd6   :  { %742 = vrot.lane.b32.xlu1 %v571_v10, %s4271_s12  ;;  %740 = vrot.lane.b32.xlu0 %v570_v11, %s4271_s12  ;;  %v575_v10 = vld [vmem:[%s7303_s0 + $0x262] sm:$0xff]  ;;  %v574_v11 = vld [vmem:[%s7303_s0 + $0x25a] sm:$0xff] }
  0xd8   :  { %v374_v28 = vpop.permute.xlu1 %373  ;;  %v372_v29 = vpop.permute.xlu0 %371 }
  0xd9   :  { %515 = vst.msk [vmem:[#allocation2 + $0x198] sm:$0xff] %vm463_vm1, %v374_v28  ;;  %514 = vst.msk [vmem:[#allocation2 + $0x190] sm:$0xff] %vm463_vm1, %v372_v29 }
  0xda   :  { %746 = vrot.lane.b32.xlu1 %v573_v54, %s4271_s12  ;;  %744 = vrot.lane.b32.xlu0 %v572_v55, %s4271_s12  ;;  %v577_v54 = vld [vmem:[%s7303_s0 + $0x27a] sm:$0xff]  ;;  %v576_v55 = vld [vmem:[%s7303_s0 + $0x272] sm:$0xff] }
  0xdc   :  { %v378_v2 = vpop.permute.xlu1 %377  ;;  %v376_v3 = vpop.permute.xlu0 %375 }
  0xdd   :  { %517 = vst.msk [vmem:[#allocation2 + $0x1a8] sm:$0xff] %vm463_vm1, %v378_v2  ;;  %516 = vst.msk [vmem:[#allocation2 + $0x1a0] sm:$0xff] %vm463_vm1, %v376_v3 }
  0xde   :  { %750 = vrot.lane.b32.xlu1 %v575_v10, %s4271_s12  ;;  %748 = vrot.lane.b32.xlu0 %v574_v11, %s4271_s12  ;;  %v579_v10 = vld [vmem:[%s7303_s0 + $0x292] sm:$0xff]  ;;  %v578_v11 = vld [vmem:[%s7303_s0 + $0x28a] sm:$0xff] }
  0xe0   :  { %v382_v28 = vpop.permute.xlu1 %381  ;;  %v380_v29 = vpop.permute.xlu0 %379 }
  0xe1   :  { %519 = vst.msk [vmem:[#allocation2 + $0x1b8] sm:$0xff] %vm463_vm1, %v382_v28  ;;  %518 = vst.msk [vmem:[#allocation2 + $0x1b0] sm:$0xff] %vm463_vm1, %v380_v29 }
  0xe2   :  { %754 = vrot.lane.b32.xlu1 %v577_v54, %s4271_s12  ;;  %752 = vrot.lane.b32.xlu0 %v576_v55, %s4271_s12  ;;  %v581_v54 = vld [vmem:[%s7303_s0 + $0x2aa] sm:$0xff]  ;;  %v580_v55 = vld [vmem:[%s7303_s0 + $0x2a2] sm:$0xff] }
  0xe4   :  { %v386_v2 = vpop.permute.xlu1 %385  ;;  %v384_v3 = vpop.permute.xlu0 %383 }
  0xe5   :  { %521 = vst.msk [vmem:[#allocation2 + $0x1c8] sm:$0xff] %vm463_vm1, %v386_v2  ;;  %520 = vst.msk [vmem:[#allocation2 + $0x1c0] sm:$0xff] %vm463_vm1, %v384_v3 }
  0xe6   :  { %758 = vrot.lane.b32.xlu1 %v579_v10, %s4271_s12  ;;  %756 = vrot.lane.b32.xlu0 %v578_v11, %s4271_s12  ;;  %v583_v10 = vld [vmem:[%s7303_s0 + $0x2c2] sm:$0xff]  ;;  %v582_v11 = vld [vmem:[%s7303_s0 + $0x2ba] sm:$0xff] }
  0xe8   :  { %v390_v28 = vpop.permute.xlu1 %389  ;;  %v388_v29 = vpop.permute.xlu0 %387 }
  0xe9   :  { %523 = vst.msk [vmem:[#allocation2 + $0x1d8] sm:$0xff] %vm463_vm1, %v390_v28  ;;  %522 = vst.msk [vmem:[#allocation2 + $0x1d0] sm:$0xff] %vm463_vm1, %v388_v29 }
  0xea   :  { %762 = vrot.lane.b32.xlu1 %v581_v54, %s4271_s12  ;;  %760 = vrot.lane.b32.xlu0 %v580_v55, %s4271_s12  ;;  %v585_v54 = vld [vmem:[%s7303_s0 + $0x2da] sm:$0xff]  ;;  %v584_v55 = vld [vmem:[%s7303_s0 + $0x2d2] sm:$0xff] }
  0xec   :  { %v394_v2 = vpop.permute.xlu1 %393  ;;  %v392_v3 = vpop.permute.xlu0 %391 }
  0xed   :  { %525 = vst.msk [vmem:[#allocation2 + $0x1e8] sm:$0xff] %vm463_vm1, %v394_v2  ;;  %524 = vst.msk [vmem:[#allocation2 + $0x1e0] sm:$0xff] %vm463_vm1, %v392_v3 }
  0xee   :  { %766 = vrot.lane.b32.xlu1 %v583_v10, %s4271_s12  ;;  %764 = vrot.lane.b32.xlu0 %v582_v11, %s4271_s12  ;;  %v587_v10 = vld [vmem:[%s7303_s0 + $0x2f2] sm:$0xff]  ;;  %v586_v11 = vld [vmem:[%s7303_s0 + $0x2ea] sm:$0xff] }
  0xf0   :  { %v398_v28 = vpop.permute.xlu1 %397  ;;  %v396_v29 = vpop.permute.xlu0 %395 }
  0xf1   :  { %527 = vst.msk [vmem:[#allocation2 + $0x1f8] sm:$0xff] %vm463_vm1, %v398_v28  ;;  %526 = vst.msk [vmem:[#allocation2 + $0x1f0] sm:$0xff] %vm463_vm1, %v396_v29 }
  0xf2   :  { %770 = vrot.lane.b32.xlu1 %v585_v54, %s4271_s12  ;;  %768 = vrot.lane.b32.xlu0 %v584_v55, %s4271_s12  ;;  %v589_v54 = vld [vmem:[%s7303_s0 + $0x30a] sm:$0xff]  ;;  %v588_v55 = vld [vmem:[%s7303_s0 + $0x302] sm:$0xff] }
  0xf4   :  { %v659_v2 = vpop.permute.xlu1 %658  ;;  %v657_v3 = vpop.permute.xlu0 %656 }
  0xf5   :  { %850 = vst.msk [vmem:[#allocation2 + $0x8] sm:$0xff] %vm848_vm2, %v659_v2  ;;  %849 = vst.msk [vmem:[#allocation2] sm:$0xff] %vm848_vm2, %v657_v3 }
  0xf6   :  { %774 = vrot.lane.b32.xlu1 %v587_v10, %s4271_s12  ;;  %772 = vrot.lane.b32.xlu0 %v586_v11, %s4271_s12  ;;  %v591_v10 = vld [vmem:[%s7303_s0 + $0x322] sm:$0xff]  ;;  %v590_v11 = vld [vmem:[%s7303_s0 + $0x31a] sm:$0xff] }
  0xf8   :  { %v663_v28 = vpop.permute.xlu1 %662  ;;  %v661_v29 = vpop.permute.xlu0 %660 }
  0xf9   :  { %852 = vst.msk [vmem:[#allocation2 + $0x18] sm:$0xff] %vm848_vm2, %v663_v28  ;;  %851 = vst.msk [vmem:[#allocation2 + $0x10] sm:$0xff] %vm848_vm2, %v661_v29 }
  0xfa   :  { %778 = vrot.lane.b32.xlu1 %v589_v54, %s4271_s12  ;;  %776 = vrot.lane.b32.xlu0 %v588_v55, %s4271_s12 }
  0xfc   :  { %v667_v2 = vpop.permute.xlu1 %666  ;;  %v665_v3 = vpop.permute.xlu0 %664 }
  0xfd   :  { %854 = vst.msk [vmem:[#allocation2 + $0x28] sm:$0xff] %vm848_vm2, %v667_v2  ;;  %853 = vst.msk [vmem:[#allocation2 + $0x20] sm:$0xff] %vm848_vm2, %v665_v3 }
  0xfe   :  { %782 = vrot.lane.b32.xlu1 %v591_v10, %s4271_s12  ;;  %780 = vrot.lane.b32.xlu0 %v590_v11, %s4271_s12  ;;  %s4276_s12 = smov 28  }
 0x100   :  { %v671_v54 = vpop.permute.xlu1 %670  ;;  %v669_v55 = vpop.permute.xlu0 %668 }
 0x101   :  { %856 = vst.msk [vmem:[#allocation2 + $0x38] sm:$0xff] %vm848_vm2, %v671_v54  ;;  %855 = vst.msk [vmem:[#allocation2 + $0x30] sm:$0xff] %vm848_vm2, %v669_v55 }
 0x102   :  { %1044 = vrot.lane.b32.xlu1 %v4367_v16, %s4272_s6  ;;  %1042 = vrot.lane.b32.xlu0 %v4350_v12, %s4272_s6 }
 0x104   :  { %v675_v28 = vpop.permute.xlu1 %674  ;;  %v673_v29 = vpop.permute.xlu0 %672 }
 0x105   :  { %858 = vst.msk [vmem:[#allocation2 + $0x48] sm:$0xff] %vm848_vm2, %v675_v28  ;;  %857 = vst.msk [vmem:[#allocation2 + $0x40] sm:$0xff] %vm848_vm2, %v673_v29 }
 0x106   :  { %1048 = vrot.lane.b32.xlu1 %v4378_v18, %s4272_s6  ;;  %1046 = vrot.lane.b32.xlu0 %v4383_v19, %s4272_s6 }
 0x108   :  { %v679_v10 = vpop.permute.xlu1 %678  ;;  %v677_v11 = vpop.permute.xlu0 %676 }
 0x109   :  { %860 = vst.msk [vmem:[#allocation2 + $0x58] sm:$0xff] %vm848_vm2, %v679_v10  ;;  %859 = vst.msk [vmem:[#allocation2 + $0x50] sm:$0xff] %vm848_vm2, %v677_v11  ;;  %v3709_v10 = vld [vmem:[%s7303_s0 + $0x338] sm:$0xff]  ;;  %v3708_v11 = vld [vmem:[%s7303_s0 + $0x330] sm:$0xff] }
 0x10a   :  { %1052 = vrot.lane.b32.xlu1 %v4394_v20, %s4272_s6  ;;  %1050 = vrot.lane.b32.xlu0 %v4407_v23, %s4272_s6 }
 0x10c   :  { %v683_v12 = vpop.permute.xlu1 %682  ;;  %v681_v16 = vpop.permute.xlu0 %680 }
 0x10d   :  { %862 = vst.msk [vmem:[#allocation2 + $0x68] sm:$0xff] %vm848_vm2, %v683_v12  ;;  %861 = vst.msk [vmem:[#allocation2 + $0x60] sm:$0xff] %vm848_vm2, %v681_v16 }
 0x10e   :  { %1056 = vrot.lane.b32.xlu1 %v4414_v24, %s4272_s6  ;;  %1054 = vrot.lane.b32.xlu0 %v4419_v25, %s4272_s6 }
 0x110   :  { %v687_v18 = vpop.permute.xlu1 %686  ;;  %v685_v19 = vpop.permute.xlu0 %684 }
 0x111   :  { %864 = vst.msk [vmem:[#allocation2 + $0x78] sm:$0xff] %vm848_vm2, %v687_v18  ;;  %863 = vst.msk [vmem:[#allocation2 + $0x70] sm:$0xff] %vm848_vm2, %v685_v19  ;;  %v3711_v18 = vld [vmem:[%s7303_s0 + $0x21] sm:$0xff]  ;;  %v3710_v19 = vld [vmem:[%s7303_s0 + $0x19] sm:$0xff] }
 0x112   :  { %1060 = vrot.lane.b32.xlu1 %v4428_v26, %s4272_s6  ;;  %1058 = vrot.lane.b32.xlu0 %v4433_v27, %s4272_s6 }
 0x114   :  { %v691_v20 = vpop.permute.xlu1 %690  ;;  %v689_v23 = vpop.permute.xlu0 %688 }
 0x115   :  { %866 = vst.msk [vmem:[#allocation2 + $0x88] sm:$0xff] %vm848_vm2, %v691_v20  ;;  %865 = vst.msk [vmem:[#allocation2 + $0x80] sm:$0xff] %vm848_vm2, %v689_v23 }
 0x116   :  { %1064 = vrot.lane.b32.xlu1 %v4450_v30, %s4272_s6  ;;  %1062 = vrot.lane.b32.xlu0 %v4455_v31, %s4272_s6 }
 0x118   :  { %v695_v24 = vpop.permute.xlu1 %694  ;;  %v693_v25 = vpop.permute.xlu0 %692 }
 0x119   :  { %868 = vst.msk [vmem:[#allocation2 + $0x98] sm:$0xff] %vm848_vm2, %v695_v24  ;;  %867 = vst.msk [vmem:[#allocation2 + $0x90] sm:$0xff] %vm848_vm2, %v693_v25  ;;  %v3713_v24 = vld [vmem:[%s7303_s0 + $0x39] sm:$0xff]  ;;  %v3712_v25 = vld [vmem:[%s7303_s0 + $0x31] sm:$0xff] }
 0x11a   :  { %1068 = vrot.lane.b32.xlu1 %v4464_v32, %s4272_s6  ;;  %1066 = vrot.lane.b32.xlu0 %v4469_v33, %s4272_s6 }
 0x11c   :  { %v699_v26 = vpop.permute.xlu1 %698  ;;  %v697_v27 = vpop.permute.xlu0 %696 }
 0x11d   :  { %870 = vst.msk [vmem:[#allocation2 + $0xa8] sm:$0xff] %vm848_vm2, %v699_v26  ;;  %869 = vst.msk [vmem:[#allocation2 + $0xa0] sm:$0xff] %vm848_vm2, %v697_v27 }
 0x11e   :  { %1072 = vrot.lane.b32.xlu1 %v4478_v34, %s4272_s6  ;;  %1070 = vrot.lane.b32.xlu0 %v4490_v36, %s4272_s6 }
 0x120   :  { %v703_v30 = vpop.permute.xlu1 %702  ;;  %v701_v31 = vpop.permute.xlu0 %700 }
 0x121   :  { %872 = vst.msk [vmem:[#allocation2 + $0xb8] sm:$0xff] %vm848_vm2, %v703_v30  ;;  %871 = vst.msk [vmem:[#allocation2 + $0xb0] sm:$0xff] %vm848_vm2, %v701_v31  ;;  %v3715_v30 = vld [vmem:[%s7303_s0 + $0x51] sm:$0xff]  ;;  %v3714_v31 = vld [vmem:[%s7303_s0 + $0x49] sm:$0xff] }
 0x122   :  { %1076 = vrot.lane.b32.xlu1 %v4500_v38, %s4272_s6  ;;  %1074 = vrot.lane.b32.xlu0 %v4505_v39, %s4272_s6 }
 0x124   :  { %v707_v32 = vpop.permute.xlu1 %706  ;;  %v705_v33 = vpop.permute.xlu0 %704 }
 0x125   :  { %874 = vst.msk [vmem:[#allocation2 + $0xc8] sm:$0xff] %vm848_vm2, %v707_v32  ;;  %873 = vst.msk [vmem:[#allocation2 + $0xc0] sm:$0xff] %vm848_vm2, %v705_v33 }
 0x126   :  { %1080 = vrot.lane.b32.xlu1 %v4514_v40, %s4272_s6  ;;  %1078 = vrot.lane.b32.xlu0 %v4521_v41, %s4272_s6 }
 0x128   :  { %v711_v34 = vpop.permute.xlu1 %710  ;;  %v709_v36 = vpop.permute.xlu0 %708 }
 0x129   :  { %876 = vst.msk [vmem:[#allocation2 + $0xd8] sm:$0xff] %vm848_vm2, %v711_v34  ;;  %875 = vst.msk [vmem:[#allocation2 + $0xd0] sm:$0xff] %vm848_vm2, %v709_v36  ;;  %v3717_v34 = vld [vmem:[%s7303_s0 + $0x69] sm:$0xff]  ;;  %v3716_v36 = vld [vmem:[%s7303_s0 + $0x61] sm:$0xff] }
 0x12a   :  { %1084 = vrot.lane.b32.xlu1 %v4530_v42, %s4272_s6  ;;  %1082 = vrot.lane.b32.xlu0 %v4535_v43, %s4272_s6 }
 0x12c   :  { %v715_v38 = vpop.permute.xlu1 %714  ;;  %v713_v39 = vpop.permute.xlu0 %712 }
 0x12d   :  { %878 = vst.msk [vmem:[#allocation2 + $0xe8] sm:$0xff] %vm848_vm2, %v715_v38  ;;  %877 = vst.msk [vmem:[#allocation2 + $0xe0] sm:$0xff] %vm848_vm2, %v713_v39 }
 0x12e   :  { %1088 = vrot.lane.b32.xlu1 %v4550_v46, %s4272_s6  ;;  %1086 = vrot.lane.b32.xlu0 %v4557_v47, %s4272_s6 }
 0x130   :  { %v719_v40 = vpop.permute.xlu1 %718  ;;  %v717_v41 = vpop.permute.xlu0 %716 }
 0x131   :  { %880 = vst.msk [vmem:[#allocation2 + $0xf8] sm:$0xff] %vm848_vm2, %v719_v40  ;;  %879 = vst.msk [vmem:[#allocation2 + $0xf0] sm:$0xff] %vm848_vm2, %v717_v41  ;;  %v3719_v40 = vld [vmem:[%s7303_s0 + $0x81] sm:$0xff]  ;;  %v3718_v41 = vld [vmem:[%s7303_s0 + $0x79] sm:$0xff] }
 0x132   :  { %1092 = vrot.lane.b32.xlu1 %v4564_v48, %s4272_s6  ;;  %1090 = vrot.lane.b32.xlu0 %v4569_v49, %s4272_s6  ;;  %v3677_v48 = vld [vmem:[%s7303_s0 + $0x188] sm:$0xff]  ;;  %v3676_v49 = vld [vmem:[%s7303_s0 + $0x180] sm:$0xff] }
 0x134   :  { %v723_v42 = vpop.permute.xlu1 %722  ;;  %v721_v43 = vpop.permute.xlu0 %720 }
 0x135   :  { %882 = vst.msk [vmem:[#allocation2 + $0x108] sm:$0xff] %vm848_vm2, %v723_v42  ;;  %881 = vst.msk [vmem:[#allocation2 + $0x100] sm:$0xff] %vm848_vm2, %v721_v43 }
 0x136   :  { %1096 = vrot.lane.b32.xlu1 %v4586_v52, %s4272_s6  ;;  %1094 = vrot.lane.b32.xlu0 %v4591_v53, %s4272_s6 }
 0x138   :  { %v727_v46 = vpop.permute.xlu1 %726  ;;  %v725_v47 = vpop.permute.xlu0 %724 }
 0x139   :  { %884 = vst.msk [vmem:[#allocation2 + $0x118] sm:$0xff] %vm848_vm2, %v727_v46  ;;  %883 = vst.msk [vmem:[#allocation2 + $0x110] sm:$0xff] %vm848_vm2, %v725_v47  ;;  %v3721_v46 = vld [vmem:[%s7303_s0 + $0x99] sm:$0xff]  ;;  %v3720_v47 = vld [vmem:[%s7303_s0 + $0x91] sm:$0xff] }
 0x13a   :  { %1100 = vrot.lane.b32.xlu1 %v4608_v56, %s4272_s6  ;;  %1098 = vrot.lane.b32.xlu0 %v4613_v57, %s4272_s6 }
 0x13c   :  { %v731_v52 = vpop.permute.xlu1 %730  ;;  %v729_v53 = vpop.permute.xlu0 %728 }
 0x13d   :  { %886 = vst.msk [vmem:[#allocation2 + $0x128] sm:$0xff] %vm848_vm2, %v731_v52  ;;  %885 = vst.msk [vmem:[#allocation2 + $0x120] sm:$0xff] %vm848_vm2, %v729_v53  ;;  %v3723_v52 = vld [vmem:[%s7303_s0 + $0xb1] sm:$0xff]  ;;  %v3722_v53 = vld [vmem:[%s7303_s0 + $0xa9] sm:$0xff] }
 0x13e   :  { %1104 = vrot.lane.b32.xlu1 %v3677_v48, %s4272_s6  ;;  %1102 = vrot.lane.b32.xlu0 %v3676_v49, %s4272_s6 }
 0x140   :  { %v735_v56 = vpop.permute.xlu1 %734  ;;  %v733_v57 = vpop.permute.xlu0 %732 }
 0x141   :  { %888 = vst.msk [vmem:[#allocation2 + $0x138] sm:$0xff] %vm848_vm2, %v735_v56  ;;  %887 = vst.msk [vmem:[#allocation2 + $0x130] sm:$0xff] %vm848_vm2, %v733_v57 }
 0x142   :  { %1108 = vrot.lane.b32.xlu1 %v4646_v0, %s4272_s6  ;;  %1106 = vrot.lane.b32.xlu0 %v4651_v1, %s4272_s6 }
 0x144   :  { %v739_v2 = vpop.permute.xlu1 %738  ;;  %v737_v3 = vpop.permute.xlu0 %736 }
 0x145   :  { %890 = vst.msk [vmem:[#allocation2 + $0x148] sm:$0xff] %vm848_vm2, %v739_v2  ;;  %889 = vst.msk [vmem:[#allocation2 + $0x140] sm:$0xff] %vm848_vm2, %v737_v3  ;;  %v3725_v2 = vld [vmem:[%s7303_s0 + $0xc9] sm:$0xff]  ;;  %v3724_v3 = vld [vmem:[%s7303_s0 + $0xc1] sm:$0xff] }
 0x146   :  { %1112 = vrot.lane.b32.xlu1 %v4668_v4, %s4272_s6  ;;  %1110 = vrot.lane.b32.xlu0 %v4673_v5, %s4272_s6 }
 0x148   :  { %v743_v54 = vpop.permute.xlu1 %742  ;;  %v741_v55 = vpop.permute.xlu0 %740 }
 0x149   :  { %892 = vst.msk [vmem:[#allocation2 + $0x158] sm:$0xff] %vm848_vm2, %v743_v54  ;;  %891 = vst.msk [vmem:[#allocation2 + $0x150] sm:$0xff] %vm848_vm2, %v741_v55 }
 0x14a   :  { %1116 = vrot.lane.b32.xlu1 %v4690_v8, %s4272_s6  ;;  %1114 = vrot.lane.b32.xlu0 %v4695_v9, %s4272_s6 }
 0x14c   :  { %v747_v0 = vpop.permute.xlu1 %746  ;;  %v745_v1 = vpop.permute.xlu0 %744 }
 0x14d   :  { %894 = vst.msk [vmem:[#allocation2 + $0x168] sm:$0xff] %vm848_vm2, %v747_v0  ;;  %893 = vst.msk [vmem:[#allocation2 + $0x160] sm:$0xff] %vm848_vm2, %v745_v1  ;;  %v3727_v0 = vld [vmem:[%s7303_s0 + $0xe1] sm:$0xff]  ;;  %v3726_v1 = vld [vmem:[%s7303_s0 + $0xd9] sm:$0xff] }
 0x14e   :  { %1120 = vrot.lane.b32.xlu1 %v4712_v13, %s4272_s6  ;;  %1118 = vrot.lane.b32.xlu0 %v4717_v14, %s4272_s6 }
 0x150   :  { %v751_v4 = vpop.permute.xlu1 %750  ;;  %v749_v5 = vpop.permute.xlu0 %748 }
 0x151   :  { %896 = vst.msk [vmem:[#allocation2 + $0x178] sm:$0xff] %vm848_vm2, %v751_v4  ;;  %895 = vst.msk [vmem:[#allocation2 + $0x170] sm:$0xff] %vm848_vm2, %v749_v5 }
 0x152   :  { %1124 = vrot.lane.b32.xlu1 %v4734_v21, %s4272_s6  ;;  %1122 = vrot.lane.b32.xlu0 %v4739_v22, %s4272_s6 }
 0x154   :  { %v755_v8 = vpop.permute.xlu1 %754  ;;  %v753_v9 = vpop.permute.xlu0 %752 }
 0x155   :  { %898 = vst.msk [vmem:[#allocation2 + $0x188] sm:$0xff] %vm848_vm2, %v755_v8  ;;  %897 = vst.msk [vmem:[#allocation2 + $0x180] sm:$0xff] %vm848_vm2, %v753_v9  ;;  %v3729_v8 = vld [vmem:[%s7303_s0 + $0xf9] sm:$0xff]  ;;  %v3728_v9 = vld [vmem:[%s7303_s0 + $0xf1] sm:$0xff] }
 0x156   :  { %1128 = vrot.lane.b32.xlu1 %v4756_v35, %s4272_s6  ;;  %1126 = vrot.lane.b32.xlu0 %v4761_v37, %s4272_s6 }
 0x158   :  { %v759_v13 = vpop.permute.xlu1 %758  ;;  %v757_v14 = vpop.permute.xlu0 %756 }
 0x159   :  { %900 = vst.msk [vmem:[#allocation2 + $0x198] sm:$0xff] %vm848_vm2, %v759_v13  ;;  %899 = vst.msk [vmem:[#allocation2 + $0x190] sm:$0xff] %vm848_vm2, %v757_v14 }
 0x15a   :  { %1132 = vrot.lane.b32.xlu1 %v4778_v50, %s4272_s6  ;;  %1130 = vrot.lane.b32.xlu0 %v4783_v51, %s4272_s6 }
 0x15c   :  { %v763_v21 = vpop.permute.xlu1 %762  ;;  %v761_v22 = vpop.permute.xlu0 %760 }
 0x15d   :  { %902 = vst.msk [vmem:[#allocation2 + $0x1a8] sm:$0xff] %vm848_vm2, %v763_v21  ;;  %901 = vst.msk [vmem:[#allocation2 + $0x1a0] sm:$0xff] %vm848_vm2, %v761_v22  ;;  %v3731_v21 = vld [vmem:[%s7303_s0 + $0x111] sm:$0xff]  ;;  %v3730_v22 = vld [vmem:[%s7303_s0 + $0x109] sm:$0xff] }
 0x15e   :  { %1136 = vrot.lane.b32.xlu1 %v4800_v58, %s4272_s6  ;;  %1134 = vrot.lane.b32.xlu0 %v4805_v59, %s4272_s6 }
 0x160   :  { %v767_v35 = vpop.permute.xlu1 %766  ;;  %v765_v37 = vpop.permute.xlu0 %764 }
 0x161   :  { %904 = vst.msk [vmem:[#allocation2 + $0x1b8] sm:$0xff] %vm848_vm2, %v767_v35  ;;  %903 = vst.msk [vmem:[#allocation2 + $0x1b0] sm:$0xff] %vm848_vm2, %v765_v37 }
 0x162   :  { %1140 = vrot.lane.b32.xlu1 %v4822_v62, %s4272_s6  ;;  %1138 = vrot.lane.b32.xlu0 %v4827_v63, %s4272_s6 }
 0x164   :  { %v771_v50 = vpop.permute.xlu1 %770  ;;  %v769_v51 = vpop.permute.xlu0 %768 }
 0x165   :  { %906 = vst.msk [vmem:[#allocation2 + $0x1c8] sm:$0xff] %vm848_vm2, %v771_v50  ;;  %905 = vst.msk [vmem:[#allocation2 + $0x1c0] sm:$0xff] %vm848_vm2, %v769_v51  ;;  %v3733_v50 = vld [vmem:[%s7303_s0 + $0x129] sm:$0xff]  ;;  %v3732_v51 = vld [vmem:[%s7303_s0 + $0x121] sm:$0xff] }
 0x166   :  { %1144 = vrot.lane.b32.xlu1 %v4844_v6, %s4272_s6  ;;  %1142 = vrot.lane.b32.xlu0 %v4849_v7, %s4272_s6 }
 0x168   :  { %v775_v58 = vpop.permute.xlu1 %774  ;;  %v773_v59 = vpop.permute.xlu0 %772 }
 0x169   :  { %908 = vst.msk [vmem:[#allocation2 + $0x1d8] sm:$0xff] %vm848_vm2, %v775_v58  ;;  %907 = vst.msk [vmem:[#allocation2 + $0x1d0] sm:$0xff] %vm848_vm2, %v773_v59 }
 0x16a   :  { %1148 = vrot.lane.b32.xlu1 %v4866_v15, %s4272_s6  ;;  %1146 = vrot.lane.b32.xlu0 %v4871_v17, %s4272_s6 }
 0x16c   :  { %v779_v62 = vpop.permute.xlu1 %778  ;;  %v777_v63 = vpop.permute.xlu0 %776 }
 0x16d   :  { %910 = vst.msk [vmem:[#allocation2 + $0x1e8] sm:$0xff] %vm848_vm2, %v779_v62  ;;  %909 = vst.msk [vmem:[#allocation2 + $0x1e0] sm:$0xff] %vm848_vm2, %v777_v63  ;;  %v3735_v62 = vld [vmem:[%s7303_s0 + $0x141] sm:$0xff]  ;;  %v3734_v63 = vld [vmem:[%s7303_s0 + $0x139] sm:$0xff] }
 0x16e   :  { %1152 = vrot.lane.b32.xlu1 %v4888_v44, %s4272_s6  ;;  %1150 = vrot.lane.b32.xlu0 %v4893_v45, %s4272_s6  ;;  %v7315_v44 = vld [vmem:[#allocation3_spill] sm:$0xff]  ;;  %v7316_v45 = vld [vmem:[#allocation4_spill] sm:$0xff] }
 0x170   :  { %v783_v6 = vpop.permute.xlu1 %782  ;;  %v781_v7 = vpop.permute.xlu0 %780 }
 0x171   :  { %912 = vst.msk [vmem:[#allocation2 + $0x1f8] sm:$0xff] %vm848_vm2, %v783_v6  ;;  %911 = vst.msk [vmem:[#allocation2 + $0x1f0] sm:$0xff] %vm848_vm2, %v781_v7 }
 0x172   :  { %1156 = vrot.lane.b32.xlu1 %v4910_v60, %s4272_s6  ;;  %1154 = vrot.lane.b32.xlu0 %v4915_v61, %s4272_s6  ;;  %v7317_v60 = vld [vmem:[#allocation5_spill] sm:$0xff]  ;;  %v7318_v61 = vld [vmem:[#allocation6_spill] sm:$0xff] }
 0x174   :  { %v1045_v15 = vpop.permute.xlu1 %1044  ;;  %v1043_v17 = vpop.permute.xlu0 %1042 }
 0x175   :  { %1236 = vst.msk [vmem:[#allocation2 + $0x8] sm:$0xff] %vm1234_vm3, %v1045_v15  ;;  %1235 = vst.msk [vmem:[#allocation2] sm:$0xff] %vm1234_vm3, %v1043_v17  ;;  %v3737_v15 = vld [vmem:[%s7303_s0 + $0x159] sm:$0xff]  ;;  %v3736_v17 = vld [vmem:[%s7303_s0 + $0x151] sm:$0xff] }
 0x176   :  { %1160 = vrot.lane.b32.xlu1 %v7315_v44, %s4272_s6  ;;  %1158 = vrot.lane.b32.xlu0 %v7316_v45, %s4272_s6 }
 0x178   :  { %v1049_v28 = vpop.permute.xlu1 %1048  ;;  %v1047_v29 = vpop.permute.xlu0 %1046 }
 0x179   :  { %1238 = vst.msk [vmem:[#allocation2 + $0x18] sm:$0xff] %vm1234_vm3, %v1049_v28  ;;  %1237 = vst.msk [vmem:[#allocation2 + $0x10] sm:$0xff] %vm1234_vm3, %v1047_v29  ;;  %v3739_v28 = vld [vmem:[%s7303_s0 + $0x171] sm:$0xff]  ;;  %v3738_v29 = vld [vmem:[%s7303_s0 + $0x169] sm:$0xff] }
 0x17a   :  { %1164 = vrot.lane.b32.xlu1 %v7317_v60, %s4272_s6  ;;  %1162 = vrot.lane.b32.xlu0 %v7318_v61, %s4272_s6 }
 0x17c   :  { %v1053_v12 = vpop.permute.xlu1 %1052  ;;  %v1051_v16 = vpop.permute.xlu0 %1050 }
 0x17d   :  { %1240 = vst.msk [vmem:[#allocation2 + $0x28] sm:$0xff] %vm1234_vm3, %v1053_v12  ;;  %1239 = vst.msk [vmem:[#allocation2 + $0x20] sm:$0xff] %vm1234_vm3, %v1051_v16 }
 0x17e   :  { %1168 = vrot.lane.b32.xlu1 %v3709_v10, %s4272_s6  ;;  %1166 = vrot.lane.b32.xlu0 %v3708_v11, %s4272_s6  ;;  %v3741_v10 = vld [vmem:[%s7303_s0 + $0x189] sm:$0xff]  ;;  %v3740_v11 = vld [vmem:[%s7303_s0 + $0x181] sm:$0xff] }
 0x180   :  { %v1057_v20 = vpop.permute.xlu1 %1056  ;;  %v1055_v23 = vpop.permute.xlu0 %1054 }
 0x181   :  { %1242 = vst.msk [vmem:[#allocation2 + $0x38] sm:$0xff] %vm1234_vm3, %v1057_v20  ;;  %1241 = vst.msk [vmem:[#allocation2 + $0x30] sm:$0xff] %vm1234_vm3, %v1055_v23 }
 0x182   :  { %1429 = vrot.lane.b32.xlu1 %v3711_v18, %s4273_s19  ;;  %1427 = vrot.lane.b32.xlu0 %v3710_v19, %s4273_s19  ;;  %v3743_v18 = vld [vmem:[%s7303_s0 + $0x1d1] sm:$0xff]  ;;  %v3742_v19 = vld [vmem:[%s7303_s0 + $0x1c9] sm:$0xff] }
 0x184   :  { %v1061_v26 = vpop.permute.xlu1 %1060  ;;  %v1059_v27 = vpop.permute.xlu0 %1058 }
 0x185   :  { %1244 = vst.msk [vmem:[#allocation2 + $0x48] sm:$0xff] %vm1234_vm3, %v1061_v26  ;;  %1243 = vst.msk [vmem:[#allocation2 + $0x40] sm:$0xff] %vm1234_vm3, %v1059_v27 }
 0x186   :  { %1433 = vrot.lane.b32.xlu1 %v3713_v24, %s4273_s19  ;;  %1431 = vrot.lane.b32.xlu0 %v3712_v25, %s4273_s19  ;;  %v5690_v24 = vld [vmem:[%s7303_s0 + $0x1e9] sm:$0xff]  ;;  %v5695_v25 = vld [vmem:[%s7303_s0 + $0x1e1] sm:$0xff] }
 0x188   :  { %v1065_v32 = vpop.permute.xlu1 %1064  ;;  %v1063_v33 = vpop.permute.xlu0 %1062 }
 0x189   :  { %1246 = vst.msk [vmem:[#allocation2 + $0x58] sm:$0xff] %vm1234_vm3, %v1065_v32  ;;  %1245 = vst.msk [vmem:[#allocation2 + $0x50] sm:$0xff] %vm1234_vm3, %v1063_v33 }
 0x18a   :  { %1437 = vrot.lane.b32.xlu1 %v3715_v30, %s4273_s19  ;;  %1435 = vrot.lane.b32.xlu0 %v3714_v31, %s4273_s19  ;;  %v3747_v30 = vld [vmem:[%s7303_s0 + $0x201] sm:$0xff]  ;;  %v3746_v31 = vld [vmem:[%s7303_s0 + $0x1f9] sm:$0xff] }
 0x18c   :  { %v1069_v38 = vpop.permute.xlu1 %1068  ;;  %v1067_v39 = vpop.permute.xlu0 %1066 }
 0x18d   :  { %1248 = vst.msk [vmem:[#allocation2 + $0x68] sm:$0xff] %vm1234_vm3, %v1069_v38  ;;  %1247 = vst.msk [vmem:[#allocation2 + $0x60] sm:$0xff] %vm1234_vm3, %v1067_v39 }
 0x18e   :  { %1441 = vrot.lane.b32.xlu1 %v3717_v34, %s4273_s19  ;;  %1439 = vrot.lane.b32.xlu0 %v3716_v36, %s4273_s19  ;;  %v3749_v34 = vld [vmem:[%s7303_s0 + $0x219] sm:$0xff]  ;;  %v3748_v36 = vld [vmem:[%s7303_s0 + $0x211] sm:$0xff] }
 0x190   :  { %v1073_v42 = vpop.permute.xlu1 %1072  ;;  %v1071_v43 = vpop.permute.xlu0 %1070 }
 0x191   :  { %1250 = vst.msk [vmem:[#allocation2 + $0x78] sm:$0xff] %vm1234_vm3, %v1073_v42  ;;  %1249 = vst.msk [vmem:[#allocation2 + $0x70] sm:$0xff] %vm1234_vm3, %v1071_v43 }
 0x192   :  { %1445 = vrot.lane.b32.xlu1 %v3719_v40, %s4273_s19  ;;  %1443 = vrot.lane.b32.xlu0 %v3718_v41, %s4273_s19  ;;  %v3751_v40 = vld [vmem:[%s7303_s0 + $0x231] sm:$0xff]  ;;  %v3750_v41 = vld [vmem:[%s7303_s0 + $0x229] sm:$0xff] }
 0x194   :  { %v1077_v48 = vpop.permute.xlu1 %1076  ;;  %v1075_v49 = vpop.permute.xlu0 %1074 }
 0x195   :  { %1252 = vst.msk [vmem:[#allocation2 + $0x88] sm:$0xff] %vm1234_vm3, %v1077_v48  ;;  %1251 = vst.msk [vmem:[#allocation2 + $0x80] sm:$0xff] %vm1234_vm3, %v1075_v49 }
 0x196   :  { %1449 = vrot.lane.b32.xlu1 %v3721_v46, %s4273_s19  ;;  %1447 = vrot.lane.b32.xlu0 %v3720_v47, %s4273_s19  ;;  %v3753_v46 = vld [vmem:[%s7303_s0 + $0x249] sm:$0xff]  ;;  %v3752_v47 = vld [vmem:[%s7303_s0 + $0x241] sm:$0xff] }
 0x198   :  { %v1081_v56 = vpop.permute.xlu1 %1080  ;;  %v1079_v57 = vpop.permute.xlu0 %1078 }
 0x199   :  { %1254 = vst.msk [vmem:[#allocation2 + $0x98] sm:$0xff] %vm1234_vm3, %v1081_v56  ;;  %1253 = vst.msk [vmem:[#allocation2 + $0x90] sm:$0xff] %vm1234_vm3, %v1079_v57 }
 0x19a   :  { %1453 = vrot.lane.b32.xlu1 %v3723_v52, %s4273_s19  ;;  %1451 = vrot.lane.b32.xlu0 %v3722_v53, %s4273_s19  ;;  %v3755_v52 = vld [vmem:[%s7303_s0 + $0x261] sm:$0xff]  ;;  %v3754_v53 = vld [vmem:[%s7303_s0 + $0x259] sm:$0xff] }
 0x19c   :  { %v1085_v54 = vpop.permute.xlu1 %1084  ;;  %v1083_v55 = vpop.permute.xlu0 %1082 }
 0x19d   :  { %1256 = vst.msk [vmem:[#allocation2 + $0xa8] sm:$0xff] %vm1234_vm3, %v1085_v54  ;;  %1255 = vst.msk [vmem:[#allocation2 + $0xa0] sm:$0xff] %vm1234_vm3, %v1083_v55 }
 0x19e   :  { %1457 = vrot.lane.b32.xlu1 %v3725_v2, %s4273_s19  ;;  %1455 = vrot.lane.b32.xlu0 %v3724_v3, %s4273_s19  ;;  %v3757_v2 = vld [vmem:[%s7303_s0 + $0x279] sm:$0xff]  ;;  %v3756_v3 = vld [vmem:[%s7303_s0 + $0x271] sm:$0xff] }
 0x1a0   :  { %v1089_v4 = vpop.permute.xlu1 %1088  ;;  %v1087_v5 = vpop.permute.xlu0 %1086 }
 0x1a1   :  { %1258 = vst.msk [vmem:[#allocation2 + $0xb8] sm:$0xff] %vm1234_vm3, %v1089_v4  ;;  %1257 = vst.msk [vmem:[#allocation2 + $0xb0] sm:$0xff] %vm1234_vm3, %v1087_v5 }
 0x1a2   :  { %1461 = vrot.lane.b32.xlu1 %v3727_v0, %s4273_s19  ;;  %1459 = vrot.lane.b32.xlu0 %v3726_v1, %s4273_s19  ;;  %v3759_v0 = vld [vmem:[%s7303_s0 + $0x291] sm:$0xff]  ;;  %v3758_v1 = vld [vmem:[%s7303_s0 + $0x289] sm:$0xff] }
 0x1a4   :  { %v1093_v13 = vpop.permute.xlu1 %1092  ;;  %v1091_v14 = vpop.permute.xlu0 %1090 }
 0x1a5   :  { %1260 = vst.msk [vmem:[#allocation2 + $0xc8] sm:$0xff] %vm1234_vm3, %v1093_v13  ;;  %1259 = vst.msk [vmem:[#allocation2 + $0xc0] sm:$0xff] %vm1234_vm3, %v1091_v14 }
 0x1a6   :  { %1465 = vrot.lane.b32.xlu1 %v3729_v8, %s4273_s19  ;;  %1463 = vrot.lane.b32.xlu0 %v3728_v9, %s4273_s19  ;;  %v5776_v8 = vld [vmem:[%s7303_s0 + $0x2a9] sm:$0xff]  ;;  %v5781_v9 = vld [vmem:[%s7303_s0 + $0x2a1] sm:$0xff] }
 0x1a8   :  { %v1097_v35 = vpop.permute.xlu1 %1096  ;;  %v1095_v37 = vpop.permute.xlu0 %1094 }
 0x1a9   :  { %1262 = vst.msk [vmem:[#allocation2 + $0xd8] sm:$0xff] %vm1234_vm3, %v1097_v35  ;;  %1261 = vst.msk [vmem:[#allocation2 + $0xd0] sm:$0xff] %vm1234_vm3, %v1095_v37 }
 0x1aa   :  { %1469 = vrot.lane.b32.xlu1 %v3731_v21, %s4273_s19  ;;  %1467 = vrot.lane.b32.xlu0 %v3730_v22, %s4273_s19  ;;  %v5792_v21 = vld [vmem:[%s7303_s0 + $0x2c1] sm:$0xff]  ;;  %v5797_v22 = vld [vmem:[%s7303_s0 + $0x2b9] sm:$0xff] }
 0x1ac   :  { %v1101_v58 = vpop.permute.xlu1 %1100  ;;  %v1099_v59 = vpop.permute.xlu0 %1098 }
 0x1ad   :  { %1264 = vst.msk [vmem:[#allocation2 + $0xe8] sm:$0xff] %vm1234_vm3, %v1101_v58  ;;  %1263 = vst.msk [vmem:[#allocation2 + $0xe0] sm:$0xff] %vm1234_vm3, %v1099_v59 }
 0x1ae   :  { %1473 = vrot.lane.b32.xlu1 %v3733_v50, %s4273_s19  ;;  %1471 = vrot.lane.b32.xlu0 %v3732_v51, %s4273_s19  ;;  %v3765_v50 = vld [vmem:[%s7303_s0 + $0x2d9] sm:$0xff]  ;;  %v3764_v51 = vld [vmem:[%s7303_s0 + $0x2d1] sm:$0xff] }
 0x1b0   :  { %v1105_v6 = vpop.permute.xlu1 %1104  ;;  %v1103_v7 = vpop.permute.xlu0 %1102 }
 0x1b1   :  { %1266 = vst.msk [vmem:[#allocation2 + $0xf8] sm:$0xff] %vm1234_vm3, %v1105_v6  ;;  %1265 = vst.msk [vmem:[#allocation2 + $0xf0] sm:$0xff] %vm1234_vm3, %v1103_v7 }
 0x1b2   :  { %1477 = vrot.lane.b32.xlu1 %v3735_v62, %s4273_s19  ;;  %1475 = vrot.lane.b32.xlu0 %v3734_v63, %s4273_s19  ;;  %v3767_v62 = vld [vmem:[%s7303_s0 + $0x2f1] sm:$0xff]  ;;  %v3766_v63 = vld [vmem:[%s7303_s0 + $0x2e9] sm:$0xff] }
 0x1b4   :  { %v1109_v44 = vpop.permute.xlu1 %1108  ;;  %v1107_v45 = vpop.permute.xlu0 %1106 }
 0x1b5   :  { %1268 = vst.msk [vmem:[#allocation2 + $0x108] sm:$0xff] %vm1234_vm3, %v1109_v44  ;;  %1267 = vst.msk [vmem:[#allocation2 + $0x100] sm:$0xff] %vm1234_vm3, %v1107_v45 }
 0x1b6   :  { %1481 = vrot.lane.b32.xlu1 %v3737_v15, %s4273_s19  ;;  %1479 = vrot.lane.b32.xlu0 %v3736_v17, %s4273_s19  ;;  %v3769_v15 = vld [vmem:[%s7303_s0 + $0x309] sm:$0xff]  ;;  %v3768_v17 = vld [vmem:[%s7303_s0 + $0x301] sm:$0xff] }
 0x1b8   :  { %v1113_v60 = vpop.permute.xlu1 %1112  ;;  %v1111_v61 = vpop.permute.xlu0 %1110 }
 0x1b9   :  { %1270 = vst.msk [vmem:[#allocation2 + $0x118] sm:$0xff] %vm1234_vm3, %v1113_v60  ;;  %1269 = vst.msk [vmem:[#allocation2 + $0x110] sm:$0xff] %vm1234_vm3, %v1111_v61 }
 0x1ba   :  { %1485 = vrot.lane.b32.xlu1 %v3739_v28, %s4273_s19  ;;  %1483 = vrot.lane.b32.xlu0 %v3738_v29, %s4273_s19  ;;  %v3771_v28 = vld [vmem:[%s7303_s0 + $0x321] sm:$0xff]  ;;  %v3770_v29 = vld [vmem:[%s7303_s0 + $0x319] sm:$0xff] }
 0x1bc   :  { %v1117_v12 = vpop.permute.xlu1 %1116  ;;  %v1115_v16 = vpop.permute.xlu0 %1114 }
 0x1bd   :  { %1272 = vst.msk [vmem:[#allocation2 + $0x128] sm:$0xff] %vm1234_vm3, %v1117_v12  ;;  %1271 = vst.msk [vmem:[#allocation2 + $0x120] sm:$0xff] %vm1234_vm3, %v1115_v16 }
 0x1be   :  { %1489 = vrot.lane.b32.xlu1 %v3741_v10, %s4273_s19  ;;  %1487 = vrot.lane.b32.xlu0 %v3740_v11, %s4273_s19  ;;  %v3773_v10 = vld [vmem:[%s7303_s0 + $0x339] sm:$0xff]  ;;  %v3772_v11 = vld [vmem:[%s7303_s0 + $0x331] sm:$0xff] }
 0x1c0   :  { %v1121_v20 = vpop.permute.xlu1 %1120  ;;  %v1119_v23 = vpop.permute.xlu0 %1118 }
 0x1c1   :  { %1274 = vst.msk [vmem:[#allocation2 + $0x138] sm:$0xff] %vm1234_vm3, %v1121_v20  ;;  %1273 = vst.msk [vmem:[#allocation2 + $0x130] sm:$0xff] %vm1234_vm3, %v1119_v23 }
 0x1c2   :  { %1493 = vrot.lane.b32.xlu1 %v3743_v18, %s4273_s19  ;;  %1491 = vrot.lane.b32.xlu0 %v3742_v19, %s4273_s19  ;;  %v3775_v18 = vld [vmem:[%s7303_s0 + $0x22] sm:$0xff]  ;;  %v3774_v19 = vld [vmem:[%s7303_s0 + $0x1a] sm:$0xff] }
 0x1c4   :  { %v1125_v26 = vpop.permute.xlu1 %1124  ;;  %v1123_v27 = vpop.permute.xlu0 %1122 }
 0x1c5   :  { %1276 = vst.msk [vmem:[#allocation2 + $0x148] sm:$0xff] %vm1234_vm3, %v1125_v26  ;;  %1275 = vst.msk [vmem:[#allocation2 + $0x140] sm:$0xff] %vm1234_vm3, %v1123_v27  ;;  %v5868_v26 = vld [vmem:[%s7303_s0 + $0x3a] sm:$0xff]  ;;  %v5873_v27 = vld [vmem:[%s7303_s0 + $0x32] sm:$0xff] }
 0x1c6   :  { %1497 = vrot.lane.b32.xlu1 %v5690_v24, %s4273_s19  ;;  %1495 = vrot.lane.b32.xlu0 %v5695_v25, %s4273_s19 }
 0x1c8   :  { %v1129_v32 = vpop.permute.xlu1 %1128  ;;  %v1127_v33 = vpop.permute.xlu0 %1126 }
 0x1c9   :  { %1278 = vst.msk [vmem:[#allocation2 + $0x158] sm:$0xff] %vm1234_vm3, %v1129_v32  ;;  %1277 = vst.msk [vmem:[#allocation2 + $0x150] sm:$0xff] %vm1234_vm3, %v1127_v33  ;;  %v5884_v32 = vld [vmem:[%s7303_s0 + $0x52] sm:$0xff]  ;;  %v5889_v33 = vld [vmem:[%s7303_s0 + $0x4a] sm:$0xff] }
 0x1ca   :  { %1501 = vrot.lane.b32.xlu1 %v3747_v30, %s4273_s19  ;;  %1499 = vrot.lane.b32.xlu0 %v3746_v31, %s4273_s19 }
 0x1cc   :  { %v1133_v38 = vpop.permute.xlu1 %1132  ;;  %v1131_v39 = vpop.permute.xlu0 %1130 }
 0x1cd   :  { %1280 = vst.msk [vmem:[#allocation2 + $0x168] sm:$0xff] %vm1234_vm3, %v1133_v38  ;;  %1279 = vst.msk [vmem:[#allocation2 + $0x160] sm:$0xff] %vm1234_vm3, %v1131_v39  ;;  %v3781_v38 = vld [vmem:[%s7303_s0 + $0x6a] sm:$0xff]  ;;  %v3780_v39 = vld [vmem:[%s7303_s0 + $0x62] sm:$0xff] }
 0x1ce   :  { %1505 = vrot.lane.b32.xlu1 %v3749_v34, %s4273_s19  ;;  %1503 = vrot.lane.b32.xlu0 %v3748_v36, %s4273_s19 }
 0x1d0   :  { %v1137_v42 = vpop.permute.xlu1 %1136  ;;  %v1135_v43 = vpop.permute.xlu0 %1134 }
 0x1d1   :  { %1282 = vst.msk [vmem:[#allocation2 + $0x178] sm:$0xff] %vm1234_vm3, %v1137_v42  ;;  %1281 = vst.msk [vmem:[#allocation2 + $0x170] sm:$0xff] %vm1234_vm3, %v1135_v43  ;;  %v3783_v42 = vld [vmem:[%s7303_s0 + $0x82] sm:$0xff]  ;;  %v3782_v43 = vld [vmem:[%s7303_s0 + $0x7a] sm:$0xff] }
 0x1d2   :  { %1509 = vrot.lane.b32.xlu1 %v3751_v40, %s4273_s19  ;;  %1507 = vrot.lane.b32.xlu0 %v3750_v41, %s4273_s19 }
 0x1d4   :  { %v1141_v48 = vpop.permute.xlu1 %1140  ;;  %v1139_v49 = vpop.permute.xlu0 %1138 }
 0x1d5   :  { %1284 = vst.msk [vmem:[#allocation2 + $0x188] sm:$0xff] %vm1234_vm3, %v1141_v48  ;;  %1283 = vst.msk [vmem:[#allocation2 + $0x180] sm:$0xff] %vm1234_vm3, %v1139_v49  ;;  %v3785_v48 = vld [vmem:[%s7303_s0 + $0x9a] sm:$0xff]  ;;  %v3784_v49 = vld [vmem:[%s7303_s0 + $0x92] sm:$0xff] }
 0x1d6   :  { %1513 = vrot.lane.b32.xlu1 %v3753_v46, %s4273_s19  ;;  %1511 = vrot.lane.b32.xlu0 %v3752_v47, %s4273_s19 }
 0x1d8   :  { %v1145_v56 = vpop.permute.xlu1 %1144  ;;  %v1143_v57 = vpop.permute.xlu0 %1142 }
 0x1d9   :  { %1286 = vst.msk [vmem:[#allocation2 + $0x198] sm:$0xff] %vm1234_vm3, %v1145_v56  ;;  %1285 = vst.msk [vmem:[#allocation2 + $0x190] sm:$0xff] %vm1234_vm3, %v1143_v57  ;;  %v3787_v56 = vld [vmem:[%s7303_s0 + $0xb2] sm:$0xff]  ;;  %v3786_v57 = vld [vmem:[%s7303_s0 + $0xaa] sm:$0xff] }
 0x1da   :  { %1517 = vrot.lane.b32.xlu1 %v3755_v52, %s4273_s19  ;;  %1515 = vrot.lane.b32.xlu0 %v3754_v53, %s4273_s19 }
 0x1dc   :  { %v1149_v54 = vpop.permute.xlu1 %1148  ;;  %v1147_v55 = vpop.permute.xlu0 %1146 }
 0x1dd   :  { %1288 = vst.msk [vmem:[#allocation2 + $0x1a8] sm:$0xff] %vm1234_vm3, %v1149_v54  ;;  %1287 = vst.msk [vmem:[#allocation2 + $0x1a0] sm:$0xff] %vm1234_vm3, %v1147_v55  ;;  %v3789_v54 = vld [vmem:[%s7303_s0 + $0xca] sm:$0xff]  ;;  %v3788_v55 = vld [vmem:[%s7303_s0 + $0xc2] sm:$0xff] }
 0x1de   :  { %1521 = vrot.lane.b32.xlu1 %v3757_v2, %s4273_s19  ;;  %1519 = vrot.lane.b32.xlu0 %v3756_v3, %s4273_s19 }
 0x1e0   :  { %v1153_v4 = vpop.permute.xlu1 %1152  ;;  %v1151_v5 = vpop.permute.xlu0 %1150 }
 0x1e1   :  { %1290 = vst.msk [vmem:[#allocation2 + $0x1b8] sm:$0xff] %vm1234_vm3, %v1153_v4  ;;  %1289 = vst.msk [vmem:[#allocation2 + $0x1b0] sm:$0xff] %vm1234_vm3, %v1151_v5  ;;  %v3791_v4 = vld [vmem:[%s7303_s0 + $0xe2] sm:$0xff]  ;;  %v3790_v5 = vld [vmem:[%s7303_s0 + $0xda] sm:$0xff] }
 0x1e2   :  { %1525 = vrot.lane.b32.xlu1 %v3759_v0, %s4273_s19  ;;  %1523 = vrot.lane.b32.xlu0 %v3758_v1, %s4273_s19 }
 0x1e4   :  { %v1157_v13 = vpop.permute.xlu1 %1156  ;;  %v1155_v14 = vpop.permute.xlu0 %1154 }
 0x1e5   :  { %1292 = vst.msk [vmem:[#allocation2 + $0x1c8] sm:$0xff] %vm1234_vm3, %v1157_v13  ;;  %1291 = vst.msk [vmem:[#allocation2 + $0x1c0] sm:$0xff] %vm1234_vm3, %v1155_v14 }
 0x1e6   :  { %1529 = vrot.lane.b32.xlu1 %v5776_v8, %s4273_s19  ;;  %1527 = vrot.lane.b32.xlu0 %v5781_v9, %s4273_s19 }
 0x1e8   :  { %v1161_v35 = vpop.permute.xlu1 %1160  ;;  %v1159_v37 = vpop.permute.xlu0 %1158 }
 0x1e9   :  { %1294 = vst.msk [vmem:[#allocation2 + $0x1d8] sm:$0xff] %vm1234_vm3, %v1161_v35  ;;  %1293 = vst.msk [vmem:[#allocation2 + $0x1d0] sm:$0xff] %vm1234_vm3, %v1159_v37  ;;  %v5960_v35 = vld [vmem:[%s7303_s0 + $0xfa] sm:$0xff]  ;;  %v5965_v37 = vld [vmem:[%s7303_s0 + $0xf2] sm:$0xff] }
 0x1ea   :  { %1533 = vrot.lane.b32.xlu1 %v5792_v21, %s4273_s19  ;;  %1531 = vrot.lane.b32.xlu0 %v5797_v22, %s4273_s19 }
 0x1ec   :  { %v1165_v58 = vpop.permute.xlu1 %1164  ;;  %v1163_v59 = vpop.permute.xlu0 %1162 }
 0x1ed   :  { %1296 = vst.msk [vmem:[#allocation2 + $0x1e8] sm:$0xff] %vm1234_vm3, %v1165_v58  ;;  %1295 = vst.msk [vmem:[#allocation2 + $0x1e0] sm:$0xff] %vm1234_vm3, %v1163_v59  ;;  %v5976_v58 = vld [vmem:[%s7303_s0 + $0x112] sm:$0xff]  ;;  %v5981_v59 = vld [vmem:[%s7303_s0 + $0x10a] sm:$0xff] }
 0x1ee   :  { %1537 = vrot.lane.b32.xlu1 %v3765_v50, %s4273_s19  ;;  %1535 = vrot.lane.b32.xlu0 %v3764_v51, %s4273_s19 }
 0x1f0   :  { %v1169_v6 = vpop.permute.xlu1 %1168  ;;  %v1167_v7 = vpop.permute.xlu0 %1166 }
 0x1f1   :  { %1298 = vst.msk [vmem:[#allocation2 + $0x1f8] sm:$0xff] %vm1234_vm3, %v1169_v6  ;;  %1297 = vst.msk [vmem:[#allocation2 + $0x1f0] sm:$0xff] %vm1234_vm3, %v1167_v7  ;;  %v5992_v6 = vld [vmem:[%s7303_s0 + $0x12a] sm:$0xff]  ;;  %v5997_v7 = vld [vmem:[%s7303_s0 + $0x122] sm:$0xff] }
 0x1f2   :  { %1541 = vrot.lane.b32.xlu1 %v3767_v62, %s4273_s19  ;;  %1539 = vrot.lane.b32.xlu0 %v3766_v63, %s4273_s19 }
 0x1f4   :  { %v1430_v44 = vpop.permute.xlu1 %1429  ;;  %v1428_v45 = vpop.permute.xlu0 %1427 }
 0x1f5   :  { %1621 = vst.msk [vmem:[#allocation2 + $0x8] sm:$0xff] %vm1619_vm4, %v1430_v44  ;;  %1620 = vst.msk [vmem:[#allocation2] sm:$0xff] %vm1619_vm4, %v1428_v45  ;;  %v3799_v44 = vld [vmem:[%s7303_s0 + $0x142] sm:$0xff]  ;;  %v3798_v45 = vld [vmem:[%s7303_s0 + $0x13a] sm:$0xff] }
 0x1f6   :  { %1545 = vrot.lane.b32.xlu1 %v3769_v15, %s4273_s19  ;;  %1543 = vrot.lane.b32.xlu0 %v3768_v17, %s4273_s19 }
 0x1f8   :  { %v1434_v60 = vpop.permute.xlu1 %1433  ;;  %v1432_v61 = vpop.permute.xlu0 %1431 }
 0x1f9   :  { %1623 = vst.msk [vmem:[#allocation2 + $0x18] sm:$0xff] %vm1619_vm4, %v1434_v60  ;;  %1622 = vst.msk [vmem:[#allocation2 + $0x10] sm:$0xff] %vm1619_vm4, %v1432_v61  ;;  %v3801_v60 = vld [vmem:[%s7303_s0 + $0x15a] sm:$0xff]  ;;  %v3800_v61 = vld [vmem:[%s7303_s0 + $0x152] sm:$0xff] }
 0x1fa   :  { %1549 = vrot.lane.b32.xlu1 %v3771_v28, %s4273_s19  ;;  %1547 = vrot.lane.b32.xlu0 %v3770_v29, %s4273_s19 }
 0x1fc   :  { %v1438_v12 = vpop.permute.xlu1 %1437  ;;  %v1436_v16 = vpop.permute.xlu0 %1435 }
 0x1fd   :  { %1625 = vst.msk [vmem:[#allocation2 + $0x28] sm:$0xff] %vm1619_vm4, %v1438_v12  ;;  %1624 = vst.msk [vmem:[#allocation2 + $0x20] sm:$0xff] %vm1619_vm4, %v1436_v16  ;;  %v3803_v12 = vld [vmem:[%s7303_s0 + $0x172] sm:$0xff]  ;;  %v3802_v16 = vld [vmem:[%s7303_s0 + $0x16a] sm:$0xff] }
 0x1fe   :  { %1553 = vrot.lane.b32.xlu1 %v3773_v10, %s4273_s19  ;;  %1551 = vrot.lane.b32.xlu0 %v3772_v11, %s4273_s19 }
 0x200   :  { %v1442_v20 = vpop.permute.xlu1 %1441  ;;  %v1440_v23 = vpop.permute.xlu0 %1439 }
 0x201   :  { %1627 = vst.msk [vmem:[#allocation2 + $0x38] sm:$0xff] %vm1619_vm4, %v1442_v20  ;;  %1626 = vst.msk [vmem:[#allocation2 + $0x30] sm:$0xff] %vm1619_vm4, %v1440_v23  ;;  %v3805_v20 = vld [vmem:[%s7303_s0 + $0x18a] sm:$0xff]  ;;  %v3804_v23 = vld [vmem:[%s7303_s0 + $0x182] sm:$0xff] }
 0x202   :  { %1814 = vrot.lane.b32.xlu1 %v3775_v18, %s4274_s17  ;;  %1812 = vrot.lane.b32.xlu0 %v3774_v19, %s4274_s17 }
 0x204   :  { %v1446_v30 = vpop.permute.xlu1 %1445  ;;  %v1444_v31 = vpop.permute.xlu0 %1443 }
 0x205   :  { %1629 = vst.msk [vmem:[#allocation2 + $0x48] sm:$0xff] %vm1619_vm4, %v1446_v30  ;;  %1628 = vst.msk [vmem:[#allocation2 + $0x40] sm:$0xff] %vm1619_vm4, %v1444_v31 }
 0x206   :  { %1818 = vrot.lane.b32.xlu1 %v5868_v26, %s4274_s17  ;;  %1816 = vrot.lane.b32.xlu0 %v5873_v27, %s4274_s17 }
 0x208   :  { %v1450_v34 = vpop.permute.xlu1 %1449  ;;  %v1448_v36 = vpop.permute.xlu0 %1447 }
 0x209   :  { %1631 = vst.msk [vmem:[#allocation2 + $0x58] sm:$0xff] %vm1619_vm4, %v1450_v34  ;;  %1630 = vst.msk [vmem:[#allocation2 + $0x50] sm:$0xff] %vm1619_vm4, %v1448_v36  ;;  %v3807_v34 = vld [vmem:[%s7303_s0 + $0x1d2] sm:$0xff]  ;;  %v3806_v36 = vld [vmem:[%s7303_s0 + $0x1ca] sm:$0xff] }
 0x20a   :  { %1822 = vrot.lane.b32.xlu1 %v5884_v32, %s4274_s17  ;;  %1820 = vrot.lane.b32.xlu0 %v5889_v33, %s4274_s17 }
 0x20c   :  { %v1454_v40 = vpop.permute.xlu1 %1453  ;;  %v1452_v41 = vpop.permute.xlu0 %1451 }
 0x20d   :  { %1633 = vst.msk [vmem:[#allocation2 + $0x68] sm:$0xff] %vm1619_vm4, %v1454_v40  ;;  %1632 = vst.msk [vmem:[#allocation2 + $0x60] sm:$0xff] %vm1619_vm4, %v1452_v41  ;;  %v6058_v40 = vld [vmem:[%s7303_s0 + $0x1ea] sm:$0xff]  ;;  %v6063_v41 = vld [vmem:[%s7303_s0 + $0x1e2] sm:$0xff] }
 0x20e   :  { %1826 = vrot.lane.b32.xlu1 %v3781_v38, %s4274_s17  ;;  %1824 = vrot.lane.b32.xlu0 %v3780_v39, %s4274_s17 }
 0x210   :  { %v1458_v46 = vpop.permute.xlu1 %1457  ;;  %v1456_v47 = vpop.permute.xlu0 %1455 }
 0x211   :  { %1635 = vst.msk [vmem:[#allocation2 + $0x78] sm:$0xff] %vm1619_vm4, %v1458_v46  ;;  %1634 = vst.msk [vmem:[#allocation2 + $0x70] sm:$0xff] %vm1619_vm4, %v1456_v47  ;;  %v6074_v46 = vld [vmem:[%s7303_s0 + $0x202] sm:$0xff]  ;;  %v6079_v47 = vld [vmem:[%s7303_s0 + $0x1fa] sm:$0xff] }
 0x212   :  { %1830 = vrot.lane.b32.xlu1 %v3783_v42, %s4274_s17  ;;  %1828 = vrot.lane.b32.xlu0 %v3782_v43, %s4274_s17 }
 0x214   :  { %v1462_v52 = vpop.permute.xlu1 %1461  ;;  %v1460_v53 = vpop.permute.xlu0 %1459 }
 0x215   :  { %1637 = vst.msk [vmem:[#allocation2 + $0x88] sm:$0xff] %vm1619_vm4, %v1462_v52  ;;  %1636 = vst.msk [vmem:[#allocation2 + $0x80] sm:$0xff] %vm1619_vm4, %v1460_v53  ;;  %v6090_v52 = vld [vmem:[%s7303_s0 + $0x21a] sm:$0xff]  ;;  %v6095_v53 = vld [vmem:[%s7303_s0 + $0x212] sm:$0xff] }
 0x216   :  { %1834 = vrot.lane.b32.xlu1 %v3785_v48, %s4274_s17  ;;  %1832 = vrot.lane.b32.xlu0 %v3784_v49, %s4274_s17 }
 0x218   :  { %v1466_v2 = vpop.permute.xlu1 %1465  ;;  %v1464_v3 = vpop.permute.xlu0 %1463 }
 0x219   :  { %1639 = vst.msk [vmem:[#allocation2 + $0x98] sm:$0xff] %vm1619_vm4, %v1466_v2  ;;  %1638 = vst.msk [vmem:[#allocation2 + $0x90] sm:$0xff] %vm1619_vm4, %v1464_v3  ;;  %v3815_v2 = vld [vmem:[%s7303_s0 + $0x232] sm:$0xff]  ;;  %v3814_v3 = vld [vmem:[%s7303_s0 + $0x22a] sm:$0xff] }
 0x21a   :  { %1838 = vrot.lane.b32.xlu1 %v3787_v56, %s4274_s17  ;;  %1836 = vrot.lane.b32.xlu0 %v3786_v57, %s4274_s17 }
 0x21c   :  { %v1470_v0 = vpop.permute.xlu1 %1469  ;;  %v1468_v1 = vpop.permute.xlu0 %1467 }
 0x21d   :  { %1641 = vst.msk [vmem:[#allocation2 + $0xa8] sm:$0xff] %vm1619_vm4, %v1470_v0  ;;  %1640 = vst.msk [vmem:[#allocation2 + $0xa0] sm:$0xff] %vm1619_vm4, %v1468_v1  ;;  %v3817_v0 = vld [vmem:[%s7303_s0 + $0x24a] sm:$0xff]  ;;  %v3816_v1 = vld [vmem:[%s7303_s0 + $0x242] sm:$0xff] }
 0x21e   :  { %1842 = vrot.lane.b32.xlu1 %v3789_v54, %s4274_s17  ;;  %1840 = vrot.lane.b32.xlu0 %v3788_v55, %s4274_s17 }
 0x220   :  { %v1474_v13 = vpop.permute.xlu1 %1473  ;;  %v1472_v14 = vpop.permute.xlu0 %1471 }
 0x221   :  { %1643 = vst.msk [vmem:[#allocation2 + $0xb8] sm:$0xff] %vm1619_vm4, %v1474_v13  ;;  %1642 = vst.msk [vmem:[#allocation2 + $0xb0] sm:$0xff] %vm1619_vm4, %v1472_v14  ;;  %v3819_v13 = vld [vmem:[%s7303_s0 + $0x262] sm:$0xff]  ;;  %v3818_v14 = vld [vmem:[%s7303_s0 + $0x25a] sm:$0xff] }
 0x222   :  { %1846 = vrot.lane.b32.xlu1 %v3791_v4, %s4274_s17  ;;  %1844 = vrot.lane.b32.xlu0 %v3790_v5, %s4274_s17 }
 0x224   :  { %v1478_v50 = vpop.permute.xlu1 %1477  ;;  %v1476_v51 = vpop.permute.xlu0 %1475 }
 0x225   :  { %1645 = vst.msk [vmem:[#allocation2 + $0xc8] sm:$0xff] %vm1619_vm4, %v1478_v50  ;;  %1644 = vst.msk [vmem:[#allocation2 + $0xc0] sm:$0xff] %vm1619_vm4, %v1476_v51 }
 0x226   :  { %1850 = vrot.lane.b32.xlu1 %v5960_v35, %s4274_s17  ;;  %1848 = vrot.lane.b32.xlu0 %v5965_v37, %s4274_s17 }
 0x228   :  { %v1482_v62 = vpop.permute.xlu1 %1481  ;;  %v1480_v63 = vpop.permute.xlu0 %1479 }
 0x229   :  { %1647 = vst.msk [vmem:[#allocation2 + $0xd8] sm:$0xff] %vm1619_vm4, %v1482_v62  ;;  %1646 = vst.msk [vmem:[#allocation2 + $0xd0] sm:$0xff] %vm1619_vm4, %v1480_v63  ;;  %v3821_v62 = vld [vmem:[%s7303_s0 + $0x27a] sm:$0xff]  ;;  %v3820_v63 = vld [vmem:[%s7303_s0 + $0x272] sm:$0xff] }
 0x22a   :  { %1854 = vrot.lane.b32.xlu1 %v5976_v58, %s4274_s17  ;;  %1852 = vrot.lane.b32.xlu0 %v5981_v59, %s4274_s17 }
 0x22c   :  { %v1486_v15 = vpop.permute.xlu1 %1485  ;;  %v1484_v17 = vpop.permute.xlu0 %1483 }
 0x22d   :  { %1649 = vst.msk [vmem:[#allocation2 + $0xe8] sm:$0xff] %vm1619_vm4, %v1486_v15  ;;  %1648 = vst.msk [vmem:[#allocation2 + $0xe0] sm:$0xff] %vm1619_vm4, %v1484_v17 }
 0x22e   :  { %1858 = vrot.lane.b32.xlu1 %v5992_v6, %s4274_s17  ;;  %1856 = vrot.lane.b32.xlu0 %v5997_v7, %s4274_s17 }
 0x230   :  { %v1490_v28 = vpop.permute.xlu1 %1489  ;;  %v1488_v29 = vpop.permute.xlu0 %1487 }
 0x231   :  { %1651 = vst.msk [vmem:[#allocation2 + $0xf8] sm:$0xff] %vm1619_vm4, %v1490_v28  ;;  %1650 = vst.msk [vmem:[#allocation2 + $0xf0] sm:$0xff] %vm1619_vm4, %v1488_v29 }
 0x232   :  { %1862 = vrot.lane.b32.xlu1 %v3799_v44, %s4274_s17  ;;  %1860 = vrot.lane.b32.xlu0 %v3798_v45, %s4274_s17  ;;  %v3823_v44 = vld [vmem:[%s7303_s0 + $0x292] sm:$0xff]  ;;  %v3822_v45 = vld [vmem:[%s7303_s0 + $0x28a] sm:$0xff] }
 0x234   :  { %v1494_v10 = vpop.permute.xlu1 %1493  ;;  %v1492_v11 = vpop.permute.xlu0 %1491 }
 0x235   :  { %1653 = vst.msk [vmem:[#allocation2 + $0x108] sm:$0xff] %vm1619_vm4, %v1494_v10  ;;  %1652 = vst.msk [vmem:[#allocation2 + $0x100] sm:$0xff] %vm1619_vm4, %v1492_v11 }
 0x236   :  { %1866 = vrot.lane.b32.xlu1 %v3801_v60, %s4274_s17  ;;  %1864 = vrot.lane.b32.xlu0 %v3800_v61, %s4274_s17  ;;  %v6156_v60 = vld [vmem:[%s7303_s0 + $0x2aa] sm:$0xff]  ;;  %v6161_v61 = vld [vmem:[%s7303_s0 + $0x2a2] sm:$0xff] }
 0x238   :  { %v1498_v18 = vpop.permute.xlu1 %1497  ;;  %v1496_v19 = vpop.permute.xlu0 %1495 }
 0x239   :  { %1655 = vst.msk [vmem:[#allocation2 + $0x118] sm:$0xff] %vm1619_vm4, %v1498_v18  ;;  %1654 = vst.msk [vmem:[#allocation2 + $0x110] sm:$0xff] %vm1619_vm4, %v1496_v19 }
 0x23a   :  { %1870 = vrot.lane.b32.xlu1 %v3803_v12, %s4274_s17  ;;  %1868 = vrot.lane.b32.xlu0 %v3802_v16, %s4274_s17  ;;  %v6172_v12 = vld [vmem:[%s7303_s0 + $0x2c2] sm:$0xff]  ;;  %v6177_v16 = vld [vmem:[%s7303_s0 + $0x2ba] sm:$0xff] }
 0x23c   :  { %v1502_v30 = vpop.permute.xlu1 %1501  ;;  %v1500_v31 = vpop.permute.xlu0 %1499 }
 0x23d   :  { %1657 = vst.msk [vmem:[#allocation2 + $0x128] sm:$0xff] %vm1619_vm4, %v1502_v30  ;;  %1656 = vst.msk [vmem:[#allocation2 + $0x120] sm:$0xff] %vm1619_vm4, %v1500_v31 }
 0x23e   :  { %1874 = vrot.lane.b32.xlu1 %v3805_v20, %s4274_s17  ;;  %1872 = vrot.lane.b32.xlu0 %v3804_v23, %s4274_s17  ;;  %v6188_v20 = vld [vmem:[%s7303_s0 + $0x2da] sm:$0xff]  ;;  %v6193_v23 = vld [vmem:[%s7303_s0 + $0x2d2] sm:$0xff] }
 0x240   :  { %v1506_v38 = vpop.permute.xlu1 %1505  ;;  %v1504_v39 = vpop.permute.xlu0 %1503 }
 0x241   :  { %1659 = vst.msk [vmem:[#allocation2 + $0x138] sm:$0xff] %vm1619_vm4, %v1506_v38  ;;  %1658 = vst.msk [vmem:[#allocation2 + $0x130] sm:$0xff] %vm1619_vm4, %v1504_v39 }
 0x242   :  { %1878 = vrot.lane.b32.xlu1 %v3807_v34, %s4274_s17  ;;  %1876 = vrot.lane.b32.xlu0 %v3806_v36, %s4274_s17  ;;  %v6204_v34 = vld [vmem:[%s7303_s0 + $0x2f2] sm:$0xff]  ;;  %v6209_v36 = vld [vmem:[%s7303_s0 + $0x2ea] sm:$0xff] }
 0x244   :  { %v1510_v42 = vpop.permute.xlu1 %1509  ;;  %v1508_v43 = vpop.permute.xlu0 %1507 }
 0x245   :  { %1661 = vst.msk [vmem:[#allocation2 + $0x148] sm:$0xff] %vm1619_vm4, %v1510_v42  ;;  %1660 = vst.msk [vmem:[#allocation2 + $0x140] sm:$0xff] %vm1619_vm4, %v1508_v43  ;;  %v3833_v42 = vld [vmem:[%s7303_s0 + $0x30a] sm:$0xff]  ;;  %v3832_v43 = vld [vmem:[%s7303_s0 + $0x302] sm:$0xff] }
 0x246   :  { %1882 = vrot.lane.b32.xlu1 %v6058_v40, %s4274_s17  ;;  %1880 = vrot.lane.b32.xlu0 %v6063_v41, %s4274_s17 }
 0x248   :  { %v1514_v48 = vpop.permute.xlu1 %1513  ;;  %v1512_v49 = vpop.permute.xlu0 %1511 }
 0x249   :  { %1663 = vst.msk [vmem:[#allocation2 + $0x158] sm:$0xff] %vm1619_vm4, %v1514_v48  ;;  %1662 = vst.msk [vmem:[#allocation2 + $0x150] sm:$0xff] %vm1619_vm4, %v1512_v49 }
 0x24a   :  { %1886 = vrot.lane.b32.xlu1 %v6074_v46, %s4274_s17  ;;  %1884 = vrot.lane.b32.xlu0 %v6079_v47, %s4274_s17 }
 0x24c   :  { %v1518_v56 = vpop.permute.xlu1 %1517  ;;  %v1516_v57 = vpop.permute.xlu0 %1515 }
 0x24d   :  { %1665 = vst.msk [vmem:[#allocation2 + $0x168] sm:$0xff] %vm1619_vm4, %v1518_v56  ;;  %1664 = vst.msk [vmem:[#allocation2 + $0x160] sm:$0xff] %vm1619_vm4, %v1516_v57  ;;  %v3835_v56 = vld [vmem:[%s7303_s0 + $0x322] sm:$0xff]  ;;  %v3834_v57 = vld [vmem:[%s7303_s0 + $0x31a] sm:$0xff] }
 0x24e   :  { %1890 = vrot.lane.b32.xlu1 %v6090_v52, %s4274_s17  ;;  %1888 = vrot.lane.b32.xlu0 %v6095_v53, %s4274_s17 }
 0x250   :  { %v1522_v54 = vpop.permute.xlu1 %1521  ;;  %v1520_v55 = vpop.permute.xlu0 %1519 }
 0x251   :  { %1667 = vst.msk [vmem:[#allocation2 + $0x178] sm:$0xff] %vm1619_vm4, %v1522_v54  ;;  %1666 = vst.msk [vmem:[#allocation2 + $0x170] sm:$0xff] %vm1619_vm4, %v1520_v55  ;;  %v3837_v54 = vld [vmem:[%s7303_s0 + $0x33a] sm:$0xff]  ;;  %v3836_v55 = vld [vmem:[%s7303_s0 + $0x332] sm:$0xff] }
 0x252   :  { %1894 = vrot.lane.b32.xlu1 %v3815_v2, %s4274_s17  ;;  %1892 = vrot.lane.b32.xlu0 %v3814_v3, %s4274_s17 }
 0x254   :  { %v1526_v4 = vpop.permute.xlu1 %1525  ;;  %v1524_v5 = vpop.permute.xlu0 %1523 }
 0x255   :  { %1669 = vst.msk [vmem:[#allocation2 + $0x188] sm:$0xff] %vm1619_vm4, %v1526_v4  ;;  %1668 = vst.msk [vmem:[#allocation2 + $0x180] sm:$0xff] %vm1619_vm4, %v1524_v5  ;;  %v3839_v4 = vld [vmem:[%s7303_s0 + $0x38] sm:$0xff]  ;;  %v3838_v5 = vld [vmem:[%s7303_s0 + $0x30] sm:$0xff] }
 0x256   :  { %1898 = vrot.lane.b32.xlu1 %v3817_v0, %s4274_s17  ;;  %1896 = vrot.lane.b32.xlu0 %v3816_v1, %s4274_s17 }
 0x258   :  { %v1530_v50 = vpop.permute.xlu1 %1529  ;;  %v1528_v51 = vpop.permute.xlu0 %1527 }
 0x259   :  { %1671 = vst.msk [vmem:[#allocation2 + $0x198] sm:$0xff] %vm1619_vm4, %v1530_v50  ;;  %1670 = vst.msk [vmem:[#allocation2 + $0x190] sm:$0xff] %vm1619_vm4, %v1528_v51  ;;  %v3841_v50 = vld [vmem:[%s7303_s0 + $0x50] sm:$0xff]  ;;  %v3840_v51 = vld [vmem:[%s7303_s0 + $0x48] sm:$0xff] }
 0x25a   :  { %1902 = vrot.lane.b32.xlu1 %v3819_v13, %s4274_s17  ;;  %1900 = vrot.lane.b32.xlu0 %v3818_v14, %s4274_s17 }
 0x25c   :  { %v1534_v15 = vpop.permute.xlu1 %1533  ;;  %v1532_v17 = vpop.permute.xlu0 %1531 }
 0x25d   :  { %1673 = vst.msk [vmem:[#allocation2 + $0x1a8] sm:$0xff] %vm1619_vm4, %v1534_v15  ;;  %1672 = vst.msk [vmem:[#allocation2 + $0x1a0] sm:$0xff] %vm1619_vm4, %v1532_v17  ;;  %v3843_v15 = vld [vmem:[%s7303_s0 + $0x68] sm:$0xff]  ;;  %v3842_v17 = vld [vmem:[%s7303_s0 + $0x60] sm:$0xff] }
 0x25e   :  { %1906 = vrot.lane.b32.xlu1 %v3821_v62, %s4274_s17  ;;  %1904 = vrot.lane.b32.xlu0 %v3820_v63, %s4274_s17 }
 0x260   :  { %v1538_v28 = vpop.permute.xlu1 %1537  ;;  %v1536_v29 = vpop.permute.xlu0 %1535 }
 0x261   :  { %1675 = vst.msk [vmem:[#allocation2 + $0x1b8] sm:$0xff] %vm1619_vm4, %v1538_v28  ;;  %1674 = vst.msk [vmem:[#allocation2 + $0x1b0] sm:$0xff] %vm1619_vm4, %v1536_v29  ;;  %v3845_v28 = vld [vmem:[%s7303_s0 + $0x80] sm:$0xff]  ;;  %v3844_v29 = vld [vmem:[%s7303_s0 + $0x78] sm:$0xff] }
 0x262   :  { %1910 = vrot.lane.b32.xlu1 %v3823_v44, %s4274_s17  ;;  %1908 = vrot.lane.b32.xlu0 %v3822_v45, %s4274_s17 }
 0x264   :  { %v1542_v10 = vpop.permute.xlu1 %1541  ;;  %v1540_v11 = vpop.permute.xlu0 %1539 }
 0x265   :  { %1677 = vst.msk [vmem:[#allocation2 + $0x1c8] sm:$0xff] %vm1619_vm4, %v1542_v10  ;;  %1676 = vst.msk [vmem:[#allocation2 + $0x1c0] sm:$0xff] %vm1619_vm4, %v1540_v11 }
 0x266   :  { %1914 = vrot.lane.b32.xlu1 %v6156_v60, %s4274_s17  ;;  %1912 = vrot.lane.b32.xlu0 %v6161_v61, %s4274_s17 }
 0x268   :  { %v1546_v18 = vpop.permute.xlu1 %1545  ;;  %v1544_v19 = vpop.permute.xlu0 %1543 }
 0x269   :  { %1679 = vst.msk [vmem:[#allocation2 + $0x1d8] sm:$0xff] %vm1619_vm4, %v1546_v18  ;;  %1678 = vst.msk [vmem:[#allocation2 + $0x1d0] sm:$0xff] %vm1619_vm4, %v1544_v19  ;;  %v3847_v18 = vld [vmem:[%s7303_s0 + $0x98] sm:$0xff]  ;;  %v3846_v19 = vld [vmem:[%s7303_s0 + $0x90] sm:$0xff] }
 0x26a   :  { %1918 = vrot.lane.b32.xlu1 %v6172_v12, %s4274_s17  ;;  %1916 = vrot.lane.b32.xlu0 %v6177_v16, %s4274_s17 }
 0x26c   :  { %v1550_v30 = vpop.permute.xlu1 %1549  ;;  %v1548_v31 = vpop.permute.xlu0 %1547 }
 0x26d   :  { %1681 = vst.msk [vmem:[#allocation2 + $0x1e8] sm:$0xff] %vm1619_vm4, %v1550_v30  ;;  %1680 = vst.msk [vmem:[#allocation2 + $0x1e0] sm:$0xff] %vm1619_vm4, %v1548_v31 }
 0x26e   :  { %1922 = vrot.lane.b32.xlu1 %v6188_v20, %s4274_s17  ;;  %1920 = vrot.lane.b32.xlu0 %v6193_v23, %s4274_s17 }
 0x270   :  { %v1554_v38 = vpop.permute.xlu1 %1553  ;;  %v1552_v39 = vpop.permute.xlu0 %1551 }
 0x271   :  { %1683 = vst.msk [vmem:[#allocation2 + $0x1f8] sm:$0xff] %vm1619_vm4, %v1554_v38  ;;  %1682 = vst.msk [vmem:[#allocation2 + $0x1f0] sm:$0xff] %vm1619_vm4, %v1552_v39  ;;  %v3849_v38 = vld [vmem:[%s7303_s0 + $0xb0] sm:$0xff]  ;;  %v3848_v39 = vld [vmem:[%s7303_s0 + $0xa8] sm:$0xff] }
 0x272   :  { %1926 = vrot.lane.b32.xlu1 %v6204_v34, %s4274_s17  ;;  %1924 = vrot.lane.b32.xlu0 %v6209_v36, %s4274_s17 }
 0x274   :  { %v1815_v48 = vpop.permute.xlu1 %1814  ;;  %v1813_v49 = vpop.permute.xlu0 %1812 }
 0x275   :  { %2006 = vst.msk [vmem:[#allocation2 + $0x8] sm:$0xff] %vm2004_vm5, %v1815_v48  ;;  %2005 = vst.msk [vmem:[#allocation2] sm:$0xff] %vm2004_vm5, %v1813_v49  ;;  %v3851_v48 = vld [vmem:[%s7303_s0 + $0xc8] sm:$0xff]  ;;  %v3850_v49 = vld [vmem:[%s7303_s0 + $0xc0] sm:$0xff] }
 0x276   :  { %1930 = vrot.lane.b32.xlu1 %v3833_v42, %s4274_s17  ;;  %1928 = vrot.lane.b32.xlu0 %v3832_v43, %s4274_s17 }
 0x278   :  { %v1819_v2 = vpop.permute.xlu1 %1818  ;;  %v1817_v3 = vpop.permute.xlu0 %1816 }
 0x279   :  { %2008 = vst.msk [vmem:[#allocation2 + $0x18] sm:$0xff] %vm2004_vm5, %v1819_v2  ;;  %2007 = vst.msk [vmem:[#allocation2 + $0x10] sm:$0xff] %vm2004_vm5, %v1817_v3  ;;  %v3853_v2 = vld [vmem:[%s7303_s0 + $0xe0] sm:$0xff]  ;;  %v3852_v3 = vld [vmem:[%s7303_s0 + $0xd8] sm:$0xff] }
 0x27a   :  { %1934 = vrot.lane.b32.xlu1 %v3835_v56, %s4274_s17  ;;  %1932 = vrot.lane.b32.xlu0 %v3834_v57, %s4274_s17 }
 0x27c   :  { %v1823_v0 = vpop.permute.xlu1 %1822  ;;  %v1821_v1 = vpop.permute.xlu0 %1820 }
 0x27d   :  { %2010 = vst.msk [vmem:[#allocation2 + $0x28] sm:$0xff] %vm2004_vm5, %v1823_v0  ;;  %2009 = vst.msk [vmem:[#allocation2 + $0x20] sm:$0xff] %vm2004_vm5, %v1821_v1  ;;  %v3855_v0 = vld [vmem:[%s7303_s0 + $0xf8] sm:$0xff]  ;;  %v3854_v1 = vld [vmem:[%s7303_s0 + $0xf0] sm:$0xff] }
 0x27e   :  { %1938 = vrot.lane.b32.xlu1 %v3837_v54, %s4274_s17  ;;  %1936 = vrot.lane.b32.xlu0 %v3836_v55, %s4274_s17 }
 0x280   :  { %v1827_v13 = vpop.permute.xlu1 %1826  ;;  %v1825_v14 = vpop.permute.xlu0 %1824 }
 0x281   :  { %2012 = vst.msk [vmem:[#allocation2 + $0x38] sm:$0xff] %vm2004_vm5, %v1827_v13  ;;  %2011 = vst.msk [vmem:[#allocation2 + $0x30] sm:$0xff] %vm2004_vm5, %v1825_v14  ;;  %v3886_v13 = vld [vmem:[%s7303_s0 + $0x2a0] sm:$0xff]  ;;  %v3856_v14 = vld [vmem:[%s7303_s0 + $0x108] sm:$0xff] }
 0x282   :  { %2200 = vrot.lane.b32.xlu1 %v3839_v4, %s4275_s14  ;;  %2198 = vrot.lane.b32.xlu0 %v3838_v5, %s4275_s14 }
 0x284   :  { %v1831_v62 = vpop.permute.xlu1 %1830  ;;  %v1829_v63 = vpop.permute.xlu0 %1828 }
 0x285   :  { %2014 = vst.msk [vmem:[#allocation2 + $0x48] sm:$0xff] %vm2004_vm5, %v1831_v62  ;;  %2013 = vst.msk [vmem:[#allocation2 + $0x40] sm:$0xff] %vm2004_vm5, %v1829_v63  ;;  %v3870_v62 = vld [vmem:[%s7303_s0 + $0x1e0] sm:$0xff]  ;;  %v3887_v63 = vld [vmem:[%s7303_s0 + $0x2a8] sm:$0xff] }
 0x286   :  { %2204 = vrot.lane.b32.xlu1 %v3841_v50, %s4275_s14  ;;  %2202 = vrot.lane.b32.xlu0 %v3840_v51, %s4275_s14 }
 0x288   :  { %v1835_v44 = vpop.permute.xlu1 %1834  ;;  %v1833_v45 = vpop.permute.xlu0 %1832 }
 0x289   :  { %2016 = vst.msk [vmem:[#allocation2 + $0x58] sm:$0xff] %vm2004_vm5, %v1835_v44  ;;  %2015 = vst.msk [vmem:[#allocation2 + $0x50] sm:$0xff] %vm2004_vm5, %v1833_v45  ;;  %v3918_v44 = vld [vmem:[%s7303_s0 + $0xf1] sm:$0xff]  ;;  %v3871_v45 = vld [vmem:[%s7303_s0 + $0x1e8] sm:$0xff] }
 0x28a   :  { %2208 = vrot.lane.b32.xlu1 %v3843_v15, %s4275_s14  ;;  %2206 = vrot.lane.b32.xlu0 %v3842_v17, %s4275_s14 }
 0x28c   :  { %v1839_v10 = vpop.permute.xlu1 %1838  ;;  %v1837_v11 = vpop.permute.xlu0 %1836 }
 0x28d   :  { %2018 = vst.msk [vmem:[#allocation2 + $0x68] sm:$0xff] %vm2004_vm5, %v1839_v10  ;;  %2017 = vst.msk [vmem:[#allocation2 + $0x60] sm:$0xff] %vm2004_vm5, %v1837_v11  ;;  %v3919_v10 = vld [vmem:[%s7303_s0 + $0xf9] sm:$0xff] }
 0x28e   :  { %2212 = vrot.lane.b32.xlu1 %v3845_v28, %s4275_s14  ;;  %2210 = vrot.lane.b32.xlu0 %v3844_v29, %s4275_s14 }
 0x290   :  { %v1843_v30 = vpop.permute.xlu1 %1842  ;;  %v1841_v31 = vpop.permute.xlu0 %1840 }
 0x291   :  { %2020 = vst.msk [vmem:[#allocation2 + $0x78] sm:$0xff] %vm2004_vm5, %v1843_v30  ;;  %2019 = vst.msk [vmem:[#allocation2 + $0x70] sm:$0xff] %vm2004_vm5, %v1841_v31 }
 0x292   :  { %2216 = vrot.lane.b32.xlu1 %v3847_v18, %s4275_s14  ;;  %2214 = vrot.lane.b32.xlu0 %v3846_v19, %s4275_s14  ;;  %v3902_v19 = vld [vmem:[%s7303_s0 + $0x31] sm:$0xff] }
 0x294   :  { %v1847_v42 = vpop.permute.xlu1 %1846  ;;  %v1845_v43 = vpop.permute.xlu0 %1844 }
 0x295   :  { %2022 = vst.msk [vmem:[#allocation2 + $0x88] sm:$0xff] %vm2004_vm5, %v1847_v42  ;;  %2021 = vst.msk [vmem:[#allocation2 + $0x80] sm:$0xff] %vm2004_vm5, %v1845_v43 }
 0x296   :  { %2220 = vrot.lane.b32.xlu1 %v3849_v38, %s4275_s14  ;;  %2218 = vrot.lane.b32.xlu0 %v3848_v39, %s4275_s14 }
 0x298   :  { %v1851_v56 = vpop.permute.xlu1 %1850  ;;  %v1849_v57 = vpop.permute.xlu0 %1848 }
 0x299   :  { %2024 = vst.msk [vmem:[#allocation2 + $0x98] sm:$0xff] %vm2004_vm5, %v1851_v56  ;;  %2023 = vst.msk [vmem:[#allocation2 + $0x90] sm:$0xff] %vm2004_vm5, %v1849_v57  ;;  %v3872_v57 = vld [vmem:[%s7303_s0 + $0x1f8] sm:$0xff] }
 0x29a   :  { %2224 = vrot.lane.b32.xlu1 %v3851_v48, %s4275_s14  ;;  %2222 = vrot.lane.b32.xlu0 %v3850_v49, %s4275_s14 }
 0x29c   :  { %v1855_v54 = vpop.permute.xlu1 %1854  ;;  %v1853_v55 = vpop.permute.xlu0 %1852 }
 0x29d   :  { %2026 = vst.msk [vmem:[#allocation2 + $0xa8] sm:$0xff] %vm2004_vm5, %v1855_v54  ;;  %2025 = vst.msk [vmem:[#allocation2 + $0xa0] sm:$0xff] %vm2004_vm5, %v1853_v55  ;;  %v3921_v54 = vld [vmem:[%s7303_s0 + $0x111] sm:$0xff]  ;;  %v3920_v55 = vld [vmem:[%s7303_s0 + $0x109] sm:$0xff] }
 0x29e   :  { %2228 = vrot.lane.b32.xlu1 %v3853_v2, %s4275_s14  ;;  %2226 = vrot.lane.b32.xlu0 %v3852_v3, %s4275_s14 }
 0x2a0   :  { %v1859_v4 = vpop.permute.xlu1 %1858  ;;  %v1857_v5 = vpop.permute.xlu0 %1856 }
 0x2a1   :  { %2028 = vst.msk [vmem:[#allocation2 + $0xb8] sm:$0xff] %vm2004_vm5, %v1859_v4  ;;  %2027 = vst.msk [vmem:[#allocation2 + $0xb0] sm:$0xff] %vm2004_vm5, %v1857_v5 }
 0x2a2   :  { %2232 = vrot.lane.b32.xlu1 %v3855_v0, %s4275_s14  ;;  %2230 = vrot.lane.b32.xlu0 %v3854_v1, %s4275_s14 }
 0x2a4   :  { %v1863_v50 = vpop.permute.xlu1 %1862  ;;  %v1861_v51 = vpop.permute.xlu0 %1860 }
 0x2a5   :  { %2030 = vst.msk [vmem:[#allocation2 + $0xc8] sm:$0xff] %vm2004_vm5, %v1863_v50  ;;  %2029 = vst.msk [vmem:[#allocation2 + $0xc0] sm:$0xff] %vm2004_vm5, %v1861_v51 }
 0x2a6   :  { %2294 = vrot.lane.b32.xlu1 %v3886_v13, %s4275_s14  ;;  %2234 = vrot.lane.b32.xlu0 %v3856_v14, %s4275_s14  ;;  %v3905_v13 = vld [vmem:[%s7303_s0 + $0x51] sm:$0xff]  ;;  %v3904_v14 = vld [vmem:[%s7303_s0 + $0x49] sm:$0xff] }
 0x2a8   :  { %v1867_v15 = vpop.permute.xlu1 %1866  ;;  %v1865_v17 = vpop.permute.xlu0 %1864 }
 0x2a9   :  { %2032 = vst.msk [vmem:[#allocation2 + $0xd8] sm:$0xff] %vm2004_vm5, %v1867_v15  ;;  %2031 = vst.msk [vmem:[#allocation2 + $0xd0] sm:$0xff] %vm2004_vm5, %v1865_v17 }
 0x2aa   :  { %2262 = vrot.lane.b32.xlu1 %v3870_v62, %s4275_s14  ;;  %2296 = vrot.lane.b32.xlu0 %v3887_v63, %s4275_s14 }
 0x2ac   :  { %v1871_v28 = vpop.permute.xlu1 %1870  ;;  %v1869_v29 = vpop.permute.xlu0 %1868 }
 0x2ad   :  { %2034 = vst.msk [vmem:[#allocation2 + $0xe8] sm:$0xff] %vm2004_vm5, %v1871_v28  ;;  %2033 = vst.msk [vmem:[#allocation2 + $0xe0] sm:$0xff] %vm2004_vm5, %v1869_v29 }
 0x2ae   :  { %2615 = vrot.lane.b32.xlu1 %v3918_v44, %s4276_s12  ;;  %2264 = vrot.lane.b32.xlu0 %v3871_v45, %s4275_s14 }
 0x2b0   :  { %v1875_v11 = vpop.permute.xlu1 %1874  ;;  %v1873_v18 = vpop.permute.xlu0 %1872 }
 0x2b1   :  { %2036 = vst.msk [vmem:[#allocation2 + $0xf8] sm:$0xff] %vm2004_vm5, %v1875_v11  ;;  %2035 = vst.msk [vmem:[#allocation2 + $0xf0] sm:$0xff] %vm2004_vm5, %v1873_v18  ;;  %v3875_v18 = vld [vmem:[%s7303_s0 + $0x218] sm:$0xff] }
 0x2b2   :  { %2679 = vrot.lane.b32.xlu1 %v5781_v9, %s4276_s12  ;;  %2617 = vrot.lane.b32.xlu0 %v3919_v10, %s4276_s12  ;;  %v3903_v9 = vld [vmem:[%s7303_s0 + $0x39] sm:$0xff] }
 0x2b4   :  { %v1879_v30 = vpop.permute.xlu1 %1878  ;;  %v1877_v31 = vpop.permute.xlu0 %1876 }
 0x2b5   :  { %2038 = vst.msk [vmem:[#allocation2 + $0x108] sm:$0xff] %vm2004_vm5, %v1879_v30  ;;  %2037 = vst.msk [vmem:[#allocation2 + $0x100] sm:$0xff] %vm2004_vm5, %v1877_v31 }
 0x2b6   :  { %2583 = vrot.lane.b32.xlu1 %v3902_v19, %s4276_s12  ;;  %2681 = vrot.lane.b32.xlu0 %v5776_v8, %s4276_s12  ;;  %v3874_v19 = vld [vmem:[%s7303_s0 + $0x210] sm:$0xff] }
 0x2b8   :  { %v1883_v38 = vpop.permute.xlu1 %1882  ;;  %v1881_v39 = vpop.permute.xlu0 %1880 }
 0x2b9   :  { %2040 = vst.msk [vmem:[#allocation2 + $0x118] sm:$0xff] %vm2004_vm5, %v1883_v38  ;;  %2039 = vst.msk [vmem:[#allocation2 + $0x110] sm:$0xff] %vm2004_vm5, %v1881_v39  ;;  %v3922_v38 = vld [vmem:[%s7303_s0 + $0x121] sm:$0xff] }
 0x2ba   :  { %2647 = vrot.lane.b32.xlu1 %v5695_v25, %s4276_s12  ;;  %2585 = vrot.lane.b32.xlu0 %v3903_v9, %s4276_s12  ;;  %v3923_v9 = vld [vmem:[%s7303_s0 + $0x129] sm:$0xff] }
 0x2bc   :  { %v1887_v42 = vpop.permute.xlu1 %1886  ;;  %v1885_v43 = vpop.permute.xlu0 %1884 }
 0x2bd   :  { %2042 = vst.msk [vmem:[#allocation2 + $0x128] sm:$0xff] %vm2004_vm5, %v1887_v42  ;;  %2041 = vst.msk [vmem:[#allocation2 + $0x120] sm:$0xff] %vm2004_vm5, %v1885_v43  ;;  %v3955_v43 = vld [vmem:[%s7303_s0 + $0x2d9] sm:$0xff] }
 0x2be   :  { %3000 = vrot.lane.b32.xlu1 %v5965_v37, %s4277_s13  ;;  %2649 = vrot.lane.b32.xlu0 %v5690_v24, %s4276_s12 }
 0x2c0   :  { %v1891_v8 = vpop.permute.xlu1 %1890  ;;  %v1889_v48 = vpop.permute.xlu0 %1888 }
 0x2c1   :  { %2044 = vst.msk [vmem:[#allocation2 + $0x138] sm:$0xff] %vm2004_vm5, %v1891_v8  ;;  %2043 = vst.msk [vmem:[#allocation2 + $0x130] sm:$0xff] %vm2004_vm5, %v1889_v48  ;;  %v3954_v8 = vld [vmem:[%s7303_s0 + $0x2d1] sm:$0xff] }
 0x2c2   :  { %3064 = vrot.lane.b32.xlu1 %v6161_v61, %s4277_s13  ;;  %3002 = vrot.lane.b32.xlu0 %v5960_v35, %s4277_s13  ;;  %v3857_v35 = vld [vmem:[%s7303_s0 + $0x110] sm:$0xff] }
 0x2c4   :  { %v1895_v25 = vpop.permute.xlu1 %1894  ;;  %v1893_v49 = vpop.permute.xlu0 %1892 }
 0x2c5   :  { %2046 = vst.msk [vmem:[#allocation2 + $0x148] sm:$0xff] %vm2004_vm5, %v1895_v25  ;;  %2045 = vst.msk [vmem:[#allocation2 + $0x140] sm:$0xff] %vm2004_vm5, %v1893_v49  ;;  %v3907_v49 = vld [vmem:[%s7303_s0 + $0x69] sm:$0xff] }
 0x2c6   :  { %2968 = vrot.lane.b32.xlu1 %v5873_v27, %s4277_s13  ;;  %3066 = vrot.lane.b32.xlu0 %v6156_v60, %s4277_s13 }
 0x2c8   :  { %v1899_v24 = vpop.permute.xlu1 %1898  ;;  %v1897_v37 = vpop.permute.xlu0 %1896 }
 0x2c9   :  { %2048 = vst.msk [vmem:[#allocation2 + $0x158] sm:$0xff] %vm2004_vm5, %v1899_v24  ;;  %2047 = vst.msk [vmem:[#allocation2 + $0x150] sm:$0xff] %vm2004_vm5, %v1897_v37  ;;  %v3906_v24 = vld [vmem:[%s7303_s0 + $0x61] sm:$0xff] }
 0x2ca   :  { %3032 = vrot.lane.b32.xlu1 %v6063_v41, %s4277_s13  ;;  %2970 = vrot.lane.b32.xlu0 %v5868_v26, %s4277_s13  ;;  %v3889_v41 = vld [vmem:[%s7303_s0 + $0x2c0] sm:$0xff]  ;;  %v3888_v26 = vld [vmem:[%s7303_s0 + $0x2b8] sm:$0xff] }
 0x2cc   :  { %v1903_v27 = vpop.permute.xlu1 %1902  ;;  %v1901_v61 = vpop.permute.xlu0 %1900 }
 0x2cd   :  { %2050 = vst.msk [vmem:[#allocation2 + $0x168] sm:$0xff] %vm2004_vm5, %v1903_v27  ;;  %2049 = vst.msk [vmem:[#allocation2 + $0x160] sm:$0xff] %vm2004_vm5, %v1901_v61  ;;  %v3939_v27 = vld [vmem:[%s7303_s0 + $0x219] sm:$0xff]  ;;  %v3938_v61 = vld [vmem:[%s7303_s0 + $0x211] sm:$0xff] }
 0x2ce   :  { %2236 = vrot.lane.b32.xlu1 %v3857_v35, %s4275_s14  ;;  %3034 = vrot.lane.b32.xlu0 %v6058_v40, %s4277_s13  ;;  %v3873_v40 = vld [vmem:[%s7303_s0 + $0x200] sm:$0xff] }
 0x2d0   :  { %v1907_v60 = vpop.permute.xlu1 %1906  ;;  %v1905_v56 = vpop.permute.xlu0 %1904 }
 0x2d1   :  { %2052 = vst.msk [vmem:[#allocation2 + $0x178] sm:$0xff] %vm2004_vm5, %v1907_v60  ;;  %2051 = vst.msk [vmem:[#allocation2 + $0x170] sm:$0xff] %vm2004_vm5, %v1905_v56 }
 0x2d2   :  { %2300 = vrot.lane.b32.xlu1 %v3889_v41, %s4275_s14  ;;  %2298 = vrot.lane.b32.xlu0 %v3888_v26, %s4275_s14 }
 0x2d4   :  { %v1911_v2 = vpop.permute.xlu1 %1910  ;;  %v1909_v3 = vpop.permute.xlu0 %1908 }
 0x2d5   :  { %2054 = vst.msk [vmem:[#allocation2 + $0x188] sm:$0xff] %vm2004_vm5, %v1911_v2  ;;  %2053 = vst.msk [vmem:[#allocation2 + $0x180] sm:$0xff] %vm2004_vm5, %v1909_v3  ;;  %v3971_v2 = vld [vmem:[%s7303_s0 + $0x6a] sm:$0xff] }
 0x2d6   :  { %2268 = vrot.lane.b32.xlu1 %v3873_v40, %s4275_s14  ;;  %2266 = vrot.lane.b32.xlu0 %v3872_v57, %s4275_s14 }
 0x2d8   :  { %v1915_v0 = vpop.permute.xlu1 %1914  ;;  %v1913_v1 = vpop.permute.xlu0 %1912 }
 0x2d9   :  { %2056 = vst.msk [vmem:[#allocation2 + $0x198] sm:$0xff] %vm2004_vm5, %v1915_v0  ;;  %2055 = vst.msk [vmem:[#allocation2 + $0x190] sm:$0xff] %vm2004_vm5, %v1913_v1 }
 0x2da   :  { %2621 = vrot.lane.b32.xlu1 %v3921_v54, %s4276_s12  ;;  %2619 = vrot.lane.b32.xlu0 %v3920_v55, %s4276_s12  ;;  %v3861_v54 = vld [vmem:[%s7303_s0 + $0x140] sm:$0xff]  ;;  %v3860_v55 = vld [vmem:[%s7303_s0 + $0x138] sm:$0xff] }
 0x2dc   :  { %v1919_v4 = vpop.permute.xlu1 %1918  ;;  %v1917_v5 = vpop.permute.xlu0 %1916 }
 0x2dd   :  { %2058 = vst.msk [vmem:[#allocation2 + $0x1a8] sm:$0xff] %vm2004_vm5, %v1919_v4  ;;  %2057 = vst.msk [vmem:[#allocation2 + $0x1a0] sm:$0xff] %vm2004_vm5, %v1917_v5 }
 0x2de   :  { %2685 = vrot.lane.b32.xlu1 %v5792_v21, %s4276_s12  ;;  %2683 = vrot.lane.b32.xlu0 %v5797_v22, %s4276_s12  ;;  %v3937_v21 = vld [vmem:[%s7303_s0 + $0x201] sm:$0xff]  ;;  %v3936_v22 = vld [vmem:[%s7303_s0 + $0x1f9] sm:$0xff] }
 0x2e0   :  { %v1923_v50 = vpop.permute.xlu1 %1922  ;;  %v1921_v51 = vpop.permute.xlu0 %1920 }
 0x2e1   :  { %2060 = vst.msk [vmem:[#allocation2 + $0x1b8] sm:$0xff] %vm2004_vm5, %v1923_v50  ;;  %2059 = vst.msk [vmem:[#allocation2 + $0x1b0] sm:$0xff] %vm2004_vm5, %v1921_v51 }
 0x2e2   :  { %2589 = vrot.lane.b32.xlu1 %v3905_v13, %s4276_s12  ;;  %2587 = vrot.lane.b32.xlu0 %v3904_v14, %s4276_s12  ;;  %v3877_v13 = vld [vmem:[%s7303_s0 + $0x230] sm:$0xff]  ;;  %v3876_v14 = vld [vmem:[%s7303_s0 + $0x228] sm:$0xff] }
 0x2e4   :  { %v1927_v62 = vpop.permute.xlu1 %1926  ;;  %v1925_v63 = vpop.permute.xlu0 %1924 }
 0x2e5   :  { %2062 = vst.msk [vmem:[#allocation2 + $0x1c8] sm:$0xff] %vm2004_vm5, %v1927_v62  ;;  %2061 = vst.msk [vmem:[#allocation2 + $0x1c0] sm:$0xff] %vm2004_vm5, %v1925_v63 }
 0x2e6   :  { %2653 = vrot.lane.b32.xlu1 %v3937_v21, %s4276_s12  ;;  %2651 = vrot.lane.b32.xlu0 %v3936_v22, %s4276_s12  ;;  %v3925_v21 = vld [vmem:[%s7303_s0 + $0x141] sm:$0xff]  ;;  %v3924_v22 = vld [vmem:[%s7303_s0 + $0x139] sm:$0xff] }
 0x2e8   :  { %v1931_v15 = vpop.permute.xlu1 %1930  ;;  %v1929_v17 = vpop.permute.xlu0 %1928 }
 0x2e9   :  { %2064 = vst.msk [vmem:[#allocation2 + $0x1d8] sm:$0xff] %vm2004_vm5, %v1931_v15  ;;  %2063 = vst.msk [vmem:[#allocation2 + $0x1d0] sm:$0xff] %vm2004_vm5, %v1929_v17  ;;  %v3957_v15 = vld [vmem:[%s7303_s0 + $0x2f1] sm:$0xff]  ;;  %v3956_v17 = vld [vmem:[%s7303_s0 + $0x2e9] sm:$0xff] }
 0x2ea   :  { %3006 = vrot.lane.b32.xlu1 %v5976_v58, %s4277_s13  ;;  %3004 = vrot.lane.b32.xlu0 %v5981_v59, %s4277_s13 }
 0x2ec   :  { %v1935_v44 = vpop.permute.xlu1 %1934  ;;  %v1933_v45 = vpop.permute.xlu0 %1932 }
 0x2ed   :  { %2066 = vst.msk [vmem:[#allocation2 + $0x1e8] sm:$0xff] %vm2004_vm5, %v1935_v44  ;;  %2065 = vst.msk [vmem:[#allocation2 + $0x1e0] sm:$0xff] %vm2004_vm5, %v1933_v45 }
 0x2ee   :  { %3070 = vrot.lane.b32.xlu1 %v6172_v12, %s4277_s13  ;;  %3068 = vrot.lane.b32.xlu0 %v6177_v16, %s4277_s13 }
 0x2f0   :  { %v1939_v28 = vpop.permute.xlu1 %1938  ;;  %v1937_v29 = vpop.permute.xlu0 %1936 }
 0x2f1   :  { %2068 = vst.msk [vmem:[#allocation2 + $0x1f8] sm:$0xff] %vm2004_vm5, %v1939_v28  ;;  %2067 = vst.msk [vmem:[#allocation2 + $0x1f0] sm:$0xff] %vm2004_vm5, %v1937_v29  ;;  %v3909_v28 = vld [vmem:[%s7303_s0 + $0x81] sm:$0xff]  ;;  %v3908_v29 = vld [vmem:[%s7303_s0 + $0x79] sm:$0xff] }
 0x2f2   :  { %2974 = vrot.lane.b32.xlu1 %v5884_v32, %s4277_s13  ;;  %2972 = vrot.lane.b32.xlu0 %v5889_v33, %s4277_s13  ;;  %v3859_v32 = vld [vmem:[%s7303_s0 + $0x128] sm:$0xff]  ;;  %v3858_v33 = vld [vmem:[%s7303_s0 + $0x120] sm:$0xff] }
 0x2f4   :  { %v2201_v58 = vpop.permute.xlu1 %2200  ;;  %v2199_v59 = vpop.permute.xlu0 %2198 }
 0x2f5   :  { %2392 = vst.msk [vmem:[#allocation2 + $0x8] sm:$0xff] %vm2390_vm6, %v2201_v58  ;;  %2391 = vst.msk [vmem:[#allocation2] sm:$0xff] %vm2390_vm6, %v2199_v59 }
 0x2f6   :  { %3038 = vrot.lane.b32.xlu1 %v6074_v46, %s4277_s13  ;;  %3036 = vrot.lane.b32.xlu0 %v6079_v47, %s4277_s13  ;;  %v3891_v46 = vld [vmem:[%s7303_s0 + $0x2d8] sm:$0xff]  ;;  %v3890_v47 = vld [vmem:[%s7303_s0 + $0x2d0] sm:$0xff] }
 0x2f8   :  { %v2205_v12 = vpop.permute.xlu1 %2204  ;;  %v2203_v16 = vpop.permute.xlu0 %2202 }
 0x2f9   :  { %2394 = vst.msk [vmem:[#allocation2 + $0x18] sm:$0xff] %vm2390_vm6, %v2205_v12  ;;  %2393 = vst.msk [vmem:[#allocation2 + $0x10] sm:$0xff] %vm2390_vm6, %v2203_v16 }
 0x2fa   :  { %2240 = vrot.lane.b32.xlu1 %v3859_v32, %s4275_s14  ;;  %2238 = vrot.lane.b32.xlu0 %v3858_v33, %s4275_s14  ;;  %v3941_v32 = vld [vmem:[%s7303_s0 + $0x231] sm:$0xff]  ;;  %v3940_v33 = vld [vmem:[%s7303_s0 + $0x229] sm:$0xff] }
 0x2fc   :  { %v2209_v10 = vpop.permute.xlu1 %2208  ;;  %v2207_v11 = vpop.permute.xlu0 %2206 }
 0x2fd   :  { %2396 = vst.msk [vmem:[#allocation2 + $0x28] sm:$0xff] %vm2390_vm6, %v2209_v10  ;;  %2395 = vst.msk [vmem:[#allocation2 + $0x20] sm:$0xff] %vm2390_vm6, %v2207_v11 }
 0x2fe   :  { %2304 = vrot.lane.b32.xlu1 %v3891_v46, %s4275_s14  ;;  %2302 = vrot.lane.b32.xlu0 %v3890_v47, %s4275_s14 }
 0x300   :  { %v2213_v30 = vpop.permute.xlu1 %2212  ;;  %v2211_v31 = vpop.permute.xlu0 %2210 }
 0x301   :  { %2398 = vst.msk [vmem:[#allocation2 + $0x38] sm:$0xff] %vm2390_vm6, %v2213_v30  ;;  %2397 = vst.msk [vmem:[#allocation2 + $0x30] sm:$0xff] %vm2390_vm6, %v2211_v31 }
 0x302   :  { %2272 = vrot.lane.b32.xlu1 %v3875_v18, %s4275_s14  ;;  %2270 = vrot.lane.b32.xlu0 %v3874_v19, %s4275_s14  ;;  %v3989_v18 = vld [vmem:[%s7303_s0 + $0x142] sm:$0xff]  ;;  %v3988_v19 = vld [vmem:[%s7303_s0 + $0x13a] sm:$0xff] }
 0x304   :  { %v2217_v39 = vpop.permute.xlu1 %2216  ;;  %v2215_v42 = vpop.permute.xlu0 %2214 }
 0x305   :  { %2400 = vst.msk [vmem:[#allocation2 + $0x48] sm:$0xff] %vm2390_vm6, %v2217_v39  ;;  %2399 = vst.msk [vmem:[#allocation2 + $0x40] sm:$0xff] %vm2390_vm6, %v2215_v42 }
 0x306   :  { %2625 = vrot.lane.b32.xlu1 %v3923_v9, %s4276_s12  ;;  %2623 = vrot.lane.b32.xlu0 %v3922_v38, %s4276_s12 }
 0x308   :  { %v2221_v48 = vpop.permute.xlu1 %2220  ;;  %v2219_v25 = vpop.permute.xlu0 %2218 }
 0x309   :  { %2402 = vst.msk [vmem:[#allocation2 + $0x58] sm:$0xff] %vm2390_vm6, %v2221_v48  ;;  %2401 = vst.msk [vmem:[#allocation2 + $0x50] sm:$0xff] %vm2390_vm6, %v2219_v25 }
 0x30a   :  { %2689 = vrot.lane.b32.xlu1 %v3955_v43, %s4276_s12  ;;  %2687 = vrot.lane.b32.xlu0 %v3954_v8, %s4276_s12 }
 0x30c   :  { %v2225_v37 = vpop.permute.xlu1 %2224  ;;  %v2223_v35 = vpop.permute.xlu0 %2222 }
 0x30d   :  { %2404 = vst.msk [vmem:[#allocation2 + $0x68] sm:$0xff] %vm2390_vm6, %v2225_v37  ;;  %2403 = vst.msk [vmem:[#allocation2 + $0x60] sm:$0xff] %vm2390_vm6, %v2223_v35 }
 0x30e   :  { %2593 = vrot.lane.b32.xlu1 %v3907_v49, %s4276_s12  ;;  %2591 = vrot.lane.b32.xlu0 %v3906_v24, %s4276_s12  ;;  %v3973_v49 = vld [vmem:[%s7303_s0 + $0x82] sm:$0xff]  ;;  %v3972_v24 = vld [vmem:[%s7303_s0 + $0x7a] sm:$0xff] }
 0x310   :  { %v2229_v41 = vpop.permute.xlu1 %2228  ;;  %v2227_v26 = vpop.permute.xlu0 %2226 }
 0x311   :  { %2406 = vst.msk [vmem:[#allocation2 + $0x78] sm:$0xff] %vm2390_vm6, %v2229_v41  ;;  %2405 = vst.msk [vmem:[#allocation2 + $0x70] sm:$0xff] %vm2390_vm6, %v2227_v26  ;;  %v4004_v41 = vld [vmem:[%s7303_s0 + $0x22a] sm:$0xff] }
 0x312   :  { %2657 = vrot.lane.b32.xlu1 %v3939_v27, %s4276_s12  ;;  %2655 = vrot.lane.b32.xlu0 %v3938_v61, %s4276_s12 }
 0x314   :  { %v2233_v60 = vpop.permute.xlu1 %2232  ;;  %v2231_v56 = vpop.permute.xlu0 %2230 }
 0x315   :  { %2408 = vst.msk [vmem:[#allocation2 + $0x88] sm:$0xff] %vm2390_vm6, %v2233_v60  ;;  %2407 = vst.msk [vmem:[#allocation2 + $0x80] sm:$0xff] %vm2390_vm6, %v2231_v56  ;;  %v3863_v56 = vld [vmem:[%s7303_s0 + $0x158] sm:$0xff] }
 0x316   :  { %3010 = vrot.lane.b32.xlu1 %v5992_v6, %s4277_s13  ;;  %3008 = vrot.lane.b32.xlu0 %v5997_v7, %s4277_s13  ;;  %v3970_v6 = vld [vmem:[%s7303_s0 + $0x62] sm:$0xff] }
 0x318   :  { %v2295_v40 = vpop.permute.xlu1 %2294  ;;  %v2235_v57 = vpop.permute.xlu0 %2234 }
 0x319   :  { %2439 = vst.msk [vmem:[#allocation2 + $0x180] sm:$0xff] %vm2390_vm6, %v2295_v40  ;;  %2409 = vst.msk [vmem:[#allocation2 + $0x90] sm:$0xff] %vm2390_vm6, %v2235_v57  ;;  %v3862_v40 = vld [vmem:[%s7303_s0 + $0x150] sm:$0xff] }
 0x31a   :  { %3074 = vrot.lane.b32.xlu1 %v6188_v20, %s4277_s13  ;;  %3072 = vrot.lane.b32.xlu0 %v6193_v23, %s4277_s13 }
 0x31c   :  { %v2263_v7 = vpop.permute.xlu1 %2262  ;;  %v2297_v3 = vpop.permute.xlu0 %2296 }
 0x31d   :  { %2423 = vst.msk [vmem:[#allocation2 + $0x100] sm:$0xff] %vm2390_vm6, %v2263_v7  ;;  %2440 = vst.msk [vmem:[#allocation2 + $0x188] sm:$0xff] %vm2390_vm6, %v2297_v3  ;;  %v3894_v7 = vld [vmem:[%s7303_s0 + $0x300] sm:$0xff] }
 0x31e   :  { %2978 = vrot.lane.b32.xlu1 %v3971_v2, %s4277_s13  ;;  %2976 = vrot.lane.b32.xlu0 %v3970_v6, %s4277_s13  ;;  %v3895_v6 = vld [vmem:[%s7303_s0 + $0x308] sm:$0xff] }
 0x320   :  { %v2616_v20 = vpop.permute.xlu1 %2615  ;;  %v2265_v23 = vpop.permute.xlu0 %2264 }
 0x321   :  { %2792 = vst.msk [vmem:[#allocation2 + $0x80] sm:$0xff] %vm2775_vm7, %v2616_v20 }
 0x322   :  { %2424 = vst.msk [vmem:[#allocation2 + $0x108] sm:$0xff] %vm2390_vm6, %v2265_v23  ;;  %3042 = vrot.lane.b32.xlu1 %v6090_v52, %s4277_s13  ;;  %3040 = vrot.lane.b32.xlu0 %v6095_v53, %s4277_s13  ;;  %v3893_v52 = vld [vmem:[%s7303_s0 + $0x2f0] sm:$0xff]  ;;  %v3892_v53 = vld [vmem:[%s7303_s0 + $0x2e8] sm:$0xff] }
 0x323   :  { %v3879_v23 = vld [vmem:[%s7303_s0 + $0x248] sm:$0xff] }
 0x324   :  { %v2680_v0 = vpop.permute.xlu1 %2679  ;;  %v2618_v1 = vpop.permute.xlu0 %2617 }
 0x325   :  { %2824 = vst.msk [vmem:[#allocation2 + $0x180] sm:$0xff] %vm2775_vm7, %v2680_v0  ;;  %2793 = vst.msk [vmem:[#allocation2 + $0x88] sm:$0xff] %vm2775_vm7, %v2618_v1  ;;  %v3927_v1 = vld [vmem:[%s7303_s0 + $0x159] sm:$0xff] }
 0x326   :  { %2244 = vrot.lane.b32.xlu1 %v3861_v54, %s4275_s14  ;;  %2242 = vrot.lane.b32.xlu0 %v3860_v55, %s4275_s14  ;;  %v3878_v54 = vld [vmem:[%s7303_s0 + $0x240] sm:$0xff] }
 0x328   :  { %v2584_v4 = vpop.permute.xlu1 %2583  ;;  %v2682_v5 = vpop.permute.xlu0 %2681 }
 0x329   :  { %2776 = vst.msk [vmem:[#allocation2] sm:$0xff] %vm2775_vm7, %v2584_v4  ;;  %2825 = vst.msk [vmem:[#allocation2 + $0x188] sm:$0xff] %vm2775_vm7, %v2682_v5  ;;  %v3959_v5 = vld [vmem:[%s7303_s0 + $0x309] sm:$0xff] }
 0x32a   :  { %2308 = vrot.lane.b32.xlu1 %v3893_v52, %s4275_s14  ;;  %2306 = vrot.lane.b32.xlu0 %v3892_v53, %s4275_s14  ;;  %v3926_v52 = vld [vmem:[%s7303_s0 + $0x151] sm:$0xff] }
 0x32c   :  { %v2648_v50 = vpop.permute.xlu1 %2647  ;;  %v2586_v51 = vpop.permute.xlu0 %2585 }
 0x32d   :  { %2808 = vst.msk [vmem:[#allocation2 + $0x100] sm:$0xff] %vm2775_vm7, %v2648_v50  ;;  %2777 = vst.msk [vmem:[#allocation2 + $0x8] sm:$0xff] %vm2775_vm7, %v2586_v51  ;;  %v3911_v51 = vld [vmem:[%s7303_s0 + $0x99] sm:$0xff] }
 0x32e   :  { %2276 = vrot.lane.b32.xlu1 %v3877_v13, %s4275_s14  ;;  %2274 = vrot.lane.b32.xlu0 %v3876_v14, %s4275_s14  ;;  %v3958_v13 = vld [vmem:[%s7303_s0 + $0x301] sm:$0xff] }
 0x330   :  { %v3001_v62 = vpop.permute.xlu1 %3000  ;;  %v2650_v63 = vpop.permute.xlu0 %2649 }
 0x331   :  { %3177 = vst.msk [vmem:[#allocation2 + $0x80] sm:$0xff] %vm3160_vm8, %v3001_v62 }
 0x332   :  { %2809 = vst.msk [vmem:[#allocation2 + $0x108] sm:$0xff] %vm2775_vm7, %v2650_v63  ;;  %2629 = vrot.lane.b32.xlu1 %v3925_v21, %s4276_s12  ;;  %2627 = vrot.lane.b32.xlu0 %v3924_v22, %s4276_s12  ;;  %v3910_v21 = vld [vmem:[%s7303_s0 + $0x91] sm:$0xff] }
 0x334   :  { %v3065_v44 = vpop.permute.xlu1 %3064  ;;  %v3003_v45 = vpop.permute.xlu0 %3002 }
 0x335   :  { %3209 = vst.msk [vmem:[#allocation2 + $0x180] sm:$0xff] %vm3160_vm8, %v3065_v44  ;;  %3178 = vst.msk [vmem:[#allocation2 + $0x88] sm:$0xff] %vm3160_vm8, %v3003_v45  ;;  %v3943_v44 = vld [vmem:[%s7303_s0 + $0x249] sm:$0xff]  ;;  %v3942_v45 = vld [vmem:[%s7303_s0 + $0x241] sm:$0xff] }
 0x336   :  { %2693 = vrot.lane.b32.xlu1 %v3957_v15, %s4276_s12  ;;  %2691 = vrot.lane.b32.xlu0 %v3956_v17, %s4276_s12 }
 0x338   :  { %v2969_v58 = vpop.permute.xlu1 %2968  ;;  %v3067_v59 = vpop.permute.xlu0 %3066  ;;  %v3242_v46 = vld [vmem:[#allocation2 + $0x80] sm:$0xff] }
 0x339   :  { %3161 = vst.msk [vmem:[#allocation2] sm:$0xff] %vm3160_vm8, %v2969_v58  ;;  %3210 = vst.msk [vmem:[#allocation2 + $0x188] sm:$0xff] %vm3160_vm8, %v3067_v59 }
 0x33a   :  { %2597 = vrot.lane.b32.xlu1 %v3909_v28, %s4276_s12  ;;  %2595 = vrot.lane.b32.xlu0 %v3908_v29, %s4276_s12 }
 0x33c   :  { %v3033_v12 = vpop.permute.xlu1 %3032  ;;  %v2971_v16 = vpop.permute.xlu0 %2970  ;;  %v3243_v47 = vld [vmem:[#allocation2 + $0x88] sm:$0xff]  ;;  %v3274_v9 = vld [vmem:[#allocation2 + $0x180] sm:$0xff] }
 0x33d   :  { %3193 = vst.msk [vmem:[#allocation2 + $0x100] sm:$0xff] %vm3160_vm8, %v3033_v12  ;;  %3162 = vst.msk [vmem:[#allocation2 + $0x8] sm:$0xff] %vm3160_vm8, %v2971_v16  ;;  %v4164_v11 = vpack.c.bf16 %v3243_v47, %v3242_v46  ;;  %v3990_v12 = vld [vmem:[%s7303_s0 + $0x152] sm:$0xff] }
 0x33e   :  { %2661 = vrot.lane.b32.xlu1 %v3941_v32, %s4276_s12  ;;  %2659 = vrot.lane.b32.xlu0 %v3940_v33, %s4276_s12  ;;  %v3991_v33 = vld [vmem:[%s7303_s0 + $0x15a] sm:$0xff] }
 0x33f   :  { %4166 = vmatprep.subr.msk.bf16.mxu0 %vm6669_vm10, %v4164_v11 }
 0x340   :  { %v2237_v30 = vpop.permute.xlu1 %2236  ;;  %v3035_v31 = vpop.permute.xlu0 %3034  ;;  %v3275_v38 = vld [vmem:[#allocation2 + $0x188] sm:$0xff]  ;;  %v3226_v8 = vld [vmem:[#allocation2] sm:$0xff] }
 0x341   :  { %2410 = vst.msk [vmem:[#allocation2 + $0x98] sm:$0xff] %vm2390_vm6, %v2237_v30  ;;  %v4212_v39 = vpack.c.bf16 %v3275_v38, %v3274_v9  ;;  %v4022_v30 = vld [vmem:[%s7303_s0 + $0x302] sm:$0xff] }
 0x342   :  { %3194 = vst.msk [vmem:[#allocation2 + $0x108] sm:$0xff] %vm3160_vm8, %v3035_v31  ;;  %3014 = vrot.lane.b32.xlu1 %v3989_v18, %s4277_s13  ;;  %3012 = vrot.lane.b32.xlu0 %v3988_v19, %s4277_s13  ;;  %v4023_v19 = vld [vmem:[%s7303_s0 + $0x30a] sm:$0xff] }
 0x343   :  { %4214 = vmatprep.subr.msk.bf16.mxu1 %vm6669_vm10, %v4212_v39 }
 0x344   :  { %v2301_v42 = vpop.permute.xlu1 %2300  ;;  %v2299_v43 = vpop.permute.xlu0 %2298  ;;  %v3227_v48 = vld [vmem:[#allocation2 + $0x8] sm:$0xff]  ;;  %v3258_v27 = vld [vmem:[#allocation2 + $0x100] sm:$0xff] }
 0x345   :  { %2442 = vst.msk [vmem:[#allocation2 + $0x198] sm:$0xff] %vm2390_vm6, %v2301_v42  ;;  %2441 = vst.msk [vmem:[#allocation2 + $0x190] sm:$0xff] %vm2390_vm6, %v2299_v43  ;;  %v4167_v25 = vpack.c.bf16 %v3227_v48, %v3226_v8  ;;  %v3975_v43 = vld [vmem:[%s7303_s0 + $0x9a] sm:$0xff]  ;;  %v3974_v8 = vld [vmem:[%s7303_s0 + $0x92] sm:$0xff] }
 0x346   :  { %3078 = vrot.lane.b32.xlu1 %v6204_v34, %s4277_s13  ;;  %3076 = vrot.lane.b32.xlu0 %v6209_v36, %s4277_s13  ;;  %v4005_v36 = vld [vmem:[%s7303_s0 + $0x232] sm:$0xff] }
 0x347   :  { %4169 = vmatpush3.bf16.xpose.msk.msra.mxu0 %vm6669_vm10, %v4167_v25 }
 0x348   :  { %v2269_v37 = vpop.permute.xlu1 %2268  ;;  %v2267_v35 = vpop.permute.xlu0 %2266 }
 0x349   :  { %v3259_v61 = vld [vmem:[#allocation2 + $0x108] sm:$0xff]  ;;  %2426 = vst.msk [vmem:[#allocation2 + $0x118] sm:$0xff] %vm2390_vm6, %v2269_v37  ;;  %2425 = vst.msk [vmem:[#allocation2 + $0x110] sm:$0xff] %vm2390_vm6, %v2267_v35 }
 0x34a   :  { %v4215_v34 = vpack.c.bf16 %v3259_v61, %v3258_v27  ;;  %2982 = vrot.lane.b32.xlu1 %v3973_v49, %s4277_s13  ;;  %2980 = vrot.lane.b32.xlu0 %v3972_v24, %s4277_s13  ;;  %v4007_v49 = vld [vmem:[%s7303_s0 + $0x24a] sm:$0xff]  ;;  %v4006_v24 = vld [vmem:[%s7303_s0 + $0x242] sm:$0xff] }
 0x34b   :  { %v3865_v27 = vld [vmem:[%s7303_s0 + $0x170] sm:$0xff]  ;;  %v3864_v61 = vld [vmem:[%s7303_s0 + $0x168] sm:$0xff] }
 0x34c   :  { %4217 = vmatpush3.bf16.xpose.msk.msra.mxu1 %vm6669_vm10, %v4215_v34  ;;  %v2622_v26 = vpop.permute.xlu1 %2621  ;;  %v2620_v60 = vpop.permute.xlu0 %2619 }
 0x34d   :  { %2795 = vst.msk [vmem:[#allocation2 + $0x98] sm:$0xff] %vm2775_vm7, %v2622_v26  ;;  %2794 = vst.msk [vmem:[#allocation2 + $0x90] sm:$0xff] %vm2775_vm7, %v2620_v60  ;;  %v3896_v26 = vld [vmem:[%s7303_s0 + $0x318] sm:$0xff] }
 0x34e   :  { %3046 = vrot.lane.b32.xlu1 %v4005_v36, %s4277_s13  ;;  %3044 = vrot.lane.b32.xlu0 %v4004_v41, %s4277_s13  ;;  %v3897_v41 = vld [vmem:[%s7303_s0 + $0x320] sm:$0xff] }
 0x350   :  { %v2686_v57 = vpop.permute.xlu1 %2685  ;;  %v2684_v2 = vpop.permute.xlu0 %2683 }
 0x351   :  { %2827 = vst.msk [vmem:[#allocation2 + $0x198] sm:$0xff] %vm2775_vm7, %v2686_v57  ;;  %2826 = vst.msk [vmem:[#allocation2 + $0x190] sm:$0xff] %vm2775_vm7, %v2684_v2  ;;  %v3880_v57 = vld [vmem:[%s7303_s0 + $0x258] sm:$0xff] }
 0x352   :  { %2248 = vrot.lane.b32.xlu1 %v3863_v56, %s4275_s14  ;;  %2246 = vrot.lane.b32.xlu0 %v3862_v40, %s4275_s14  ;;  %v3881_v40 = vld [vmem:[%s7303_s0 + $0x260] sm:$0xff] }
 0x354   :  { %v2590_v3 = vpop.permute.xlu1 %2589  ;;  %v2588_v20 = vpop.permute.xlu0 %2587 }
 0x355   :  { %2779 = vst.msk [vmem:[#allocation2 + $0x18] sm:$0xff] %vm2775_vm7, %v2590_v3  ;;  %2778 = vst.msk [vmem:[#allocation2 + $0x10] sm:$0xff] %vm2775_vm7, %v2588_v20  ;;  %v3928_v3 = vld [vmem:[%s7303_s0 + $0x169] sm:$0xff] }
 0x356   :  { %2312 = vrot.lane.b32.xlu1 %v3895_v6, %s4275_s14  ;;  %2310 = vrot.lane.b32.xlu0 %v3894_v7, %s4275_s14  ;;  %v3929_v7 = vld [vmem:[%s7303_s0 + $0x171] sm:$0xff] }
 0x358   :  { %v2654_v55 = vpop.permute.xlu1 %2653  ;;  %v2652_v0 = vpop.permute.xlu0 %2651 }
 0x359   :  { %2811 = vst.msk [vmem:[#allocation2 + $0x118] sm:$0xff] %vm2775_vm7, %v2654_v55  ;;  %2810 = vst.msk [vmem:[#allocation2 + $0x110] sm:$0xff] %vm2775_vm7, %v2652_v0  ;;  %v3960_v55 = vld [vmem:[%s7303_s0 + $0x319] sm:$0xff] }
 0x35a   :  { %2280 = vrot.lane.b32.xlu1 %v3879_v23, %s4275_s14  ;;  %2278 = vrot.lane.b32.xlu0 %v3878_v54, %s4275_s14  ;;  %v3961_v54 = vld [vmem:[%s7303_s0 + $0x321] sm:$0xff] }
 0x35c   :  { %v3007_v53 = vpop.permute.xlu1 %3006  ;;  %v3005_v4 = vpop.permute.xlu0 %3004 }
 0x35d   :  { %3180 = vst.msk [vmem:[#allocation2 + $0x98] sm:$0xff] %vm3160_vm8, %v3007_v53  ;;  %3179 = vst.msk [vmem:[#allocation2 + $0x90] sm:$0xff] %vm3160_vm8, %v3005_v4  ;;  %v3912_v53 = vld [vmem:[%s7303_s0 + $0xa9] sm:$0xff] }
 0x35e   :  { %2633 = vrot.lane.b32.xlu1 %v3927_v1, %s4276_s12  ;;  %2631 = vrot.lane.b32.xlu0 %v3926_v52, %s4276_s12  ;;  %v3913_v52 = vld [vmem:[%s7303_s0 + $0xb1] sm:$0xff] }
 0x360   :  { %v3071_v14 = vpop.permute.xlu1 %3070  ;;  %v3069_v50 = vpop.permute.xlu0 %3068 }
 0x361   :  { %3212 = vst.msk [vmem:[#allocation2 + $0x198] sm:$0xff] %vm3160_vm8, %v3071_v14  ;;  %3211 = vst.msk [vmem:[#allocation2 + $0x190] sm:$0xff] %vm3160_vm8, %v3069_v50 }
 0x362   :  { %2697 = vrot.lane.b32.xlu1 %v3959_v5, %s4276_s12  ;;  %2695 = vrot.lane.b32.xlu0 %v3958_v13, %s4276_s12 }
 0x364   :  { %v2975_v22 = vpop.permute.xlu1 %2974  ;;  %v2973_v62 = vpop.permute.xlu0 %2972  ;;  %v3244_v63 = vld [vmem:[#allocation2 + $0x90] sm:$0xff]  ;;  %v3245_v15 = vld [vmem:[#allocation2 + $0x98] sm:$0xff] }
 0x365   :  { %3164 = vst.msk [vmem:[#allocation2 + $0x18] sm:$0xff] %vm3160_vm8, %v2975_v22  ;;  %3163 = vst.msk [vmem:[#allocation2 + $0x10] sm:$0xff] %vm3160_vm8, %v2973_v62  ;;  %v4170_v17 = vpack.c.bf16 %v3245_v15, %v3244_v63 }
 0x366   :  { %2601 = vrot.lane.b32.xlu1 %v3911_v51, %s4276_s12  ;;  %2599 = vrot.lane.b32.xlu0 %v3910_v21, %s4276_s12  ;;  %v3945_v51 = vld [vmem:[%s7303_s0 + $0x261] sm:$0xff]  ;;  %v3944_v21 = vld [vmem:[%s7303_s0 + $0x259] sm:$0xff] }
 0x367   :  { %4172 = vmatprep.subr.msk.bf16.mxu0 %vm6669_vm10, %v4170_v17 }
 0x368   :  { %v3039_v28 = vpop.permute.xlu1 %3038  ;;  %v3037_v29 = vpop.permute.xlu0 %3036  ;;  %v3276_v58 = vld [vmem:[#allocation2 + $0x190] sm:$0xff]  ;;  %v3277_v59 = vld [vmem:[#allocation2 + $0x198] sm:$0xff] }
 0x369   :  { %3196 = vst.msk [vmem:[#allocation2 + $0x118] sm:$0xff] %vm3160_vm8, %v3039_v28  ;;  %3195 = vst.msk [vmem:[#allocation2 + $0x110] sm:$0xff] %vm3160_vm8, %v3037_v29  ;;  %v4218_v32 = vpack.c.bf16 %v3277_v59, %v3276_v58 }
 0x36a   :  { %2665 = vrot.lane.b32.xlu1 %v3943_v44, %s4276_s12  ;;  %2663 = vrot.lane.b32.xlu0 %v3942_v45, %s4276_s12  ;;  %v3993_v44 = vld [vmem:[%s7303_s0 + $0x172] sm:$0xff]  ;;  %v3992_v45 = vld [vmem:[%s7303_s0 + $0x16a] sm:$0xff] }
 0x36b   :  { %4220 = vmatprep.subr.msk.bf16.mxu1 %vm6669_vm10, %v4218_v32 }
 0x36c   :  { %v2241_v16 = vpop.permute.xlu1 %2240  ;;  %v2239_v46 = vpop.permute.xlu0 %2238  ;;  %v3228_v47 = vld [vmem:[#allocation2 + $0x10] sm:$0xff]  ;;  %v3229_v11 = vld [vmem:[#allocation2 + $0x18] sm:$0xff] }
 0x36d   :  { %2412 = vst.msk [vmem:[#allocation2 + $0xa8] sm:$0xff] %vm2390_vm6, %v2241_v16  ;;  %2411 = vst.msk [vmem:[#allocation2 + $0xa0] sm:$0xff] %vm2390_vm6, %v2239_v46  ;;  %v4173_v18 = vpack.c.bf16 %v3229_v11, %v3228_v47 }
 0x36e   :  { %3018 = vrot.lane.b32.xlu1 %v3991_v33, %s4277_s13  ;;  %3016 = vrot.lane.b32.xlu0 %v3990_v12, %s4277_s13  ;;  %v4025_v33 = vld [vmem:[%s7303_s0 + $0x322] sm:$0xff]  ;;  %v4024_v12 = vld [vmem:[%s7303_s0 + $0x31a] sm:$0xff] }
 0x36f   :  { %4175 = vmatpush3.bf16.xpose.msk.msra.mxu0 %vm6669_vm10, %v4173_v18 }
 0x370   :  { %v2305_v31 = vpop.permute.xlu1 %2304  ;;  %v2303_v9 = vpop.permute.xlu0 %2302  ;;  %v3260_v38 = vld [vmem:[#allocation2 + $0x110] sm:$0xff]  ;;  %v3261_v39 = vld [vmem:[#allocation2 + $0x118] sm:$0xff] }
 0x371   :  { %2444 = vst.msk [vmem:[#allocation2 + $0x1a8] sm:$0xff] %vm2390_vm6, %v2305_v31  ;;  %2443 = vst.msk [vmem:[#allocation2 + $0x1a0] sm:$0xff] %vm2390_vm6, %v2303_v9  ;;  %v4221_v42 = vpack.c.bf16 %v3261_v39, %v3260_v38  ;;  %v4009_v38 = vld [vmem:[%s7303_s0 + $0x262] sm:$0xff]  ;;  %v4008_v39 = vld [vmem:[%s7303_s0 + $0x25a] sm:$0xff] }
 0x372   :  { %3082 = vrot.lane.b32.xlu1 %v4023_v19, %s4277_s13  ;;  %3080 = vrot.lane.b32.xlu0 %v4022_v30, %s4277_s13  ;;  %v3977_v19 = vld [vmem:[%s7303_s0 + $0xb2] sm:$0xff]  ;;  %v3976_v30 = vld [vmem:[%s7303_s0 + $0xaa] sm:$0xff] }
 0x373   :  { %4223 = vmatpush3.bf16.xpose.msk.msra.mxu1 %vm6669_vm10, %v4221_v42 }
 0x374   :  { %v2273_v48 = vpop.permute.xlu1 %2272  ;;  %v2271_v25 = vpop.permute.xlu0 %2270 }
 0x375   :  { %2428 = vst.msk [vmem:[#allocation2 + $0x128] sm:$0xff] %vm2390_vm6, %v2273_v48  ;;  %2427 = vst.msk [vmem:[#allocation2 + $0x120] sm:$0xff] %vm2390_vm6, %v2271_v25  ;;  %v3866_v48 = vld [vmem:[%s7303_s0 + $0x180] sm:$0xff] }
 0x376   :  { %2986 = vrot.lane.b32.xlu1 %v3975_v43, %s4277_s13  ;;  %2984 = vrot.lane.b32.xlu0 %v3974_v8, %s4277_s13  ;;  %v3867_v8 = vld [vmem:[%s7303_s0 + $0x188] sm:$0xff] }
 0x378   :  { %v2626_v37 = vpop.permute.xlu1 %2625  ;;  %v2624_v35 = vpop.permute.xlu0 %2623 }
 0x379   :  { %2797 = vst.msk [vmem:[#allocation2 + $0xa8] sm:$0xff] %vm2775_vm7, %v2626_v37  ;;  %2796 = vst.msk [vmem:[#allocation2 + $0xa0] sm:$0xff] %vm2775_vm7, %v2624_v35  ;;  %v3898_v37 = vld [vmem:[%s7303_s0 + $0x330] sm:$0xff] }
 0x37a   :  { %3050 = vrot.lane.b32.xlu1 %v4007_v49, %s4277_s13  ;;  %3048 = vrot.lane.b32.xlu0 %v4006_v24, %s4277_s13  ;;  %v3899_v24 = vld [vmem:[%s7303_s0 + $0x338] sm:$0xff] }
 0x37c   :  { %v2690_v34 = vpop.permute.xlu1 %2689  ;;  %v2688_v36 = vpop.permute.xlu0 %2687 }
 0x37d   :  { %2829 = vst.msk [vmem:[#allocation2 + $0x1a8] sm:$0xff] %vm2775_vm7, %v2690_v34  ;;  %2828 = vst.msk [vmem:[#allocation2 + $0x1a0] sm:$0xff] %vm2775_vm7, %v2688_v36  ;;  %v3882_v34 = vld [vmem:[%s7303_s0 + $0x270] sm:$0xff] }
 0x37e   :  { %2252 = vrot.lane.b32.xlu1 %v3865_v27, %s4275_s14  ;;  %2250 = vrot.lane.b32.xlu0 %v3864_v61, %s4275_s14  ;;  %v3883_v61 = vld [vmem:[%s7303_s0 + $0x278] sm:$0xff] }
 0x380   :  { %v2594_v60 = vpop.permute.xlu1 %2593  ;;  %v2592_v56 = vpop.permute.xlu0 %2591 }
 0x381   :  { %2781 = vst.msk [vmem:[#allocation2 + $0x28] sm:$0xff] %vm2775_vm7, %v2594_v60  ;;  %2780 = vst.msk [vmem:[#allocation2 + $0x20] sm:$0xff] %vm2775_vm7, %v2592_v56  ;;  %v3930_v60 = vld [vmem:[%s7303_s0 + $0x181] sm:$0xff] }
 0x382   :  { %2316 = vrot.lane.b32.xlu1 %v3897_v41, %s4275_s14  ;;  %2314 = vrot.lane.b32.xlu0 %v3896_v26, %s4275_s14  ;;  %v3931_v26 = vld [vmem:[%s7303_s0 + $0x189] sm:$0xff] }
 0x384   :  { %v2658_v2 = vpop.permute.xlu1 %2657  ;;  %v2656_v6 = vpop.permute.xlu0 %2655 }
 0x385   :  { %2813 = vst.msk [vmem:[#allocation2 + $0x128] sm:$0xff] %vm2775_vm7, %v2658_v2  ;;  %2812 = vst.msk [vmem:[#allocation2 + $0x120] sm:$0xff] %vm2775_vm7, %v2656_v6  ;;  %v3962_v2 = vld [vmem:[%s7303_s0 + $0x331] sm:$0xff] }
 0x386   :  { %2284 = vrot.lane.b32.xlu1 %v3881_v40, %s4275_s14  ;;  %2282 = vrot.lane.b32.xlu0 %v3880_v57, %s4275_s14  ;;  %v3963_v57 = vld [vmem:[%s7303_s0 + $0x339] sm:$0xff] }
 0x388   :  { %v3011_v20 = vpop.permute.xlu1 %3010  ;;  %v3009_v23 = vpop.permute.xlu0 %3008 }
 0x389   :  { %3182 = vst.msk [vmem:[#allocation2 + $0xa8] sm:$0xff] %vm3160_vm8, %v3011_v20  ;;  %3181 = vst.msk [vmem:[#allocation2 + $0xa0] sm:$0xff] %vm3160_vm8, %v3009_v23  ;;  %v3914_v20 = vld [vmem:[%s7303_s0 + $0xc1] sm:$0xff] }
 0x38a   :  { %2637 = vrot.lane.b32.xlu1 %v3929_v7, %s4276_s12  ;;  %2635 = vrot.lane.b32.xlu0 %v3928_v3, %s4276_s12  ;;  %v3915_v3 = vld [vmem:[%s7303_s0 + $0xc9] sm:$0xff] }
 0x38c   :  { %v3075_v0 = vpop.permute.xlu1 %3074  ;;  %v3073_v1 = vpop.permute.xlu0 %3072 }
 0x38d   :  { %3214 = vst.msk [vmem:[#allocation2 + $0x1a8] sm:$0xff] %vm3160_vm8, %v3075_v0  ;;  %3213 = vst.msk [vmem:[#allocation2 + $0x1a0] sm:$0xff] %vm3160_vm8, %v3073_v1 }
 0x38e   :  { %2701 = vrot.lane.b32.xlu1 %v3961_v54, %s4276_s12  ;;  %2699 = vrot.lane.b32.xlu0 %v3960_v55, %s4276_s12 }
 0x390   :  { %v2979_v4 = vpop.permute.xlu1 %2978  ;;  %v2977_v5 = vpop.permute.xlu0 %2976  ;;  %v3246_v13 = vld [vmem:[#allocation2 + $0xa0] sm:$0xff]  ;;  %v3247_v14 = vld [vmem:[#allocation2 + $0xa8] sm:$0xff] }
 0x391   :  { %3166 = vst.msk [vmem:[#allocation2 + $0x28] sm:$0xff] %vm3160_vm8, %v2979_v4  ;;  %3165 = vst.msk [vmem:[#allocation2 + $0x20] sm:$0xff] %vm3160_vm8, %v2977_v5  ;;  %v4176_v50 = vpack.c.bf16 %v3247_v14, %v3246_v13 }
 0x392   :  { %2605 = vrot.lane.b32.xlu1 %v3913_v52, %s4276_s12  ;;  %2603 = vrot.lane.b32.xlu0 %v3912_v53, %s4276_s12  ;;  %v3947_v52 = vld [vmem:[%s7303_s0 + $0x279] sm:$0xff]  ;;  %v3946_v53 = vld [vmem:[%s7303_s0 + $0x271] sm:$0xff] }
 0x393   :  { %4178 = vmatprep.subr.msk.bf16.mxu0 %vm6669_vm10, %v4176_v50 }
 0x394   :  { %v3043_v22 = vpop.permute.xlu1 %3042  ;;  %v3041_v62 = vpop.permute.xlu0 %3040  ;;  %v3278_v63 = vld [vmem:[#allocation2 + $0x1a0] sm:$0xff]  ;;  %v3279_v15 = vld [vmem:[#allocation2 + $0x1a8] sm:$0xff] }
 0x395   :  { %3198 = vst.msk [vmem:[#allocation2 + $0x128] sm:$0xff] %vm3160_vm8, %v3043_v22  ;;  %3197 = vst.msk [vmem:[#allocation2 + $0x120] sm:$0xff] %vm3160_vm8, %v3041_v62  ;;  %v4224_v17 = vpack.c.bf16 %v3279_v15, %v3278_v63 }
 0x396   :  { %2669 = vrot.lane.b32.xlu1 %v3945_v51, %s4276_s12  ;;  %2667 = vrot.lane.b32.xlu0 %v3944_v21, %s4276_s12  ;;  %v3995_v51 = vld [vmem:[%s7303_s0 + $0x18a] sm:$0xff]  ;;  %v3994_v21 = vld [vmem:[%s7303_s0 + $0x182] sm:$0xff] }
 0x397   :  { %4226 = vmatprep.subr.msk.bf16.mxu1 %vm6669_vm10, %v4224_v17 }
 0x398   :  { %v2245_v28 = vpop.permute.xlu1 %2244  ;;  %v2243_v29 = vpop.permute.xlu0 %2242  ;;  %v3230_v58 = vld [vmem:[#allocation2 + $0x20] sm:$0xff]  ;;  %v3231_v59 = vld [vmem:[#allocation2 + $0x28] sm:$0xff] }
 0x399   :  { %2414 = vst.msk [vmem:[#allocation2 + $0xb8] sm:$0xff] %vm2390_vm6, %v2245_v28  ;;  %2413 = vst.msk [vmem:[#allocation2 + $0xb0] sm:$0xff] %vm2390_vm6, %v2243_v29  ;;  %v4179_v32 = vpack.c.bf16 %v3231_v59, %v3230_v58 }
 0x39a   :  { %3022 = vrot.lane.b32.xlu1 %v3993_v44, %s4277_s13  ;;  %3020 = vrot.lane.b32.xlu0 %v3992_v45, %s4277_s13  ;;  %v4027_v44 = vld [vmem:[%s7303_s0 + $0x33a] sm:$0xff]  ;;  %v4026_v45 = vld [vmem:[%s7303_s0 + $0x332] sm:$0xff] }
 0x39b   :  { %4181 = vmatpush3.bf16.xpose.msk.msra.mxu0 %vm6669_vm10, %v4179_v32 }
 0x39c   :  { %v2309_v16 = vpop.permute.xlu1 %2308  ;;  %v2307_v46 = vpop.permute.xlu0 %2306  ;;  %v3262_v47 = vld [vmem:[#allocation2 + $0x120] sm:$0xff]  ;;  %v3263_v11 = vld [vmem:[#allocation2 + $0x128] sm:$0xff] }
 0x39d   :  { %2446 = vst.msk [vmem:[#allocation2 + $0x1b8] sm:$0xff] %vm2390_vm6, %v2309_v16  ;;  %2445 = vst.msk [vmem:[#allocation2 + $0x1b0] sm:$0xff] %vm2390_vm6, %v2307_v46  ;;  %v4227_v18 = vpack.c.bf16 %v3263_v11, %v3262_v47  ;;  %v4011_v47 = vld [vmem:[%s7303_s0 + $0x27a] sm:$0xff]  ;;  %v4010_v11 = vld [vmem:[%s7303_s0 + $0x272] sm:$0xff] }
 0x39e   :  { %3086 = vrot.lane.b32.xlu1 %v4025_v33, %s4277_s13  ;;  %3084 = vrot.lane.b32.xlu0 %v4024_v12, %s4277_s13  ;;  %v3979_v33 = vld [vmem:[%s7303_s0 + $0xca] sm:$0xff]  ;;  %v3978_v12 = vld [vmem:[%s7303_s0 + $0xc2] sm:$0xff] }
 0x39f   :  { %4229 = vmatpush3.bf16.xpose.msk.msra.mxu1 %vm6669_vm10, %v4227_v18 }
 0x3a0   :  { %v2277_v31 = vpop.permute.xlu1 %2276  ;;  %v2275_v9 = vpop.permute.xlu0 %2274 }
 0x3a1   :  { %2430 = vst.msk [vmem:[#allocation2 + $0x138] sm:$0xff] %vm2390_vm6, %v2277_v31  ;;  %2429 = vst.msk [vmem:[#allocation2 + $0x130] sm:$0xff] %vm2390_vm6, %v2275_v9  ;;  %v3868_v31 = vld [vmem:[%s7303_s0 + $0x198] sm:$0xff] }
 0x3a2   :  { %2990 = vrot.lane.b32.xlu1 %v3977_v19, %s4277_s13  ;;  %2988 = vrot.lane.b32.xlu0 %v3976_v30, %s4277_s13  ;;  %v3869_v30 = vld [vmem:[%s7303_s0 + $0x1a0] sm:$0xff] }
 0x3a4   :  { %v2630_v42 = vpop.permute.xlu1 %2629  ;;  %v2628_v43 = vpop.permute.xlu0 %2627 }
 0x3a5   :  { %2799 = vst.msk [vmem:[#allocation2 + $0xb8] sm:$0xff] %vm2775_vm7, %v2630_v42  ;;  %2798 = vst.msk [vmem:[#allocation2 + $0xb0] sm:$0xff] %vm2775_vm7, %v2628_v43  ;;  %v3900_v42 = vld [vmem:[%s7303_s0 + $0x348] sm:$0xff] }
 0x3a6   :  { %3054 = vrot.lane.b32.xlu1 %v4009_v38, %s4277_s13  ;;  %3052 = vrot.lane.b32.xlu0 %v4008_v39, %s4277_s13  ;;  %v3901_v39 = vld [vmem:[%s7303_s0 + $0x350] sm:$0xff] }
 0x3a8   :  { %v2694_v25 = vpop.permute.xlu1 %2693  ;;  %v2692_v49 = vpop.permute.xlu0 %2691 }
 0x3a9   :  { %2831 = vst.msk [vmem:[#allocation2 + $0x1b8] sm:$0xff] %vm2775_vm7, %v2694_v25  ;;  %2830 = vst.msk [vmem:[#allocation2 + $0x1b0] sm:$0xff] %vm2775_vm7, %v2692_v49  ;;  %v3884_v25 = vld [vmem:[%s7303_s0 + $0x288] sm:$0xff] }
 0x3aa   :  { %2256 = vrot.lane.b32.xlu1 %v3867_v8, %s4275_s14  ;;  %2254 = vrot.lane.b32.xlu0 %v3866_v48, %s4275_s14  ;;  %v3885_v48 = vld [vmem:[%s7303_s0 + $0x290] sm:$0xff] }
 0x3ac   :  { %v2598_v35 = vpop.permute.xlu1 %2597  ;;  %v2596_v27 = vpop.permute.xlu0 %2595 }
 0x3ad   :  { %2783 = vst.msk [vmem:[#allocation2 + $0x38] sm:$0xff] %vm2775_vm7, %v2598_v35  ;;  %2782 = vst.msk [vmem:[#allocation2 + $0x30] sm:$0xff] %vm2775_vm7, %v2596_v27  ;;  %v3932_v35 = vld [vmem:[%s7303_s0 + $0x199] sm:$0xff] }
 0x3ae   :  { %2320 = vrot.lane.b32.xlu1 %v3899_v24, %s4275_s14  ;;  %2318 = vrot.lane.b32.xlu0 %v3898_v37, %s4275_s14  ;;  %v3933_v37 = vld [vmem:[%s7303_s0 + $0x1a1] sm:$0xff] }
 0x3b0   :  { %v2662_v36 = vpop.permute.xlu1 %2661  ;;  %v2660_v41 = vpop.permute.xlu0 %2659 }
 0x3b1   :  { %2815 = vst.msk [vmem:[#allocation2 + $0x138] sm:$0xff] %vm2775_vm7, %v2662_v36  ;;  %2814 = vst.msk [vmem:[#allocation2 + $0x130] sm:$0xff] %vm2775_vm7, %v2660_v41  ;;  %v3964_v36 = vld [vmem:[%s7303_s0 + $0x349] sm:$0xff] }
 0x3b2   :  { %2288 = vrot.lane.b32.xlu1 %v3883_v61, %s4275_s14  ;;  %2286 = vrot.lane.b32.xlu0 %v3882_v34, %s4275_s14  ;;  %v3965_v34 = vld [vmem:[%s7303_s0 + $0x351] sm:$0xff] }
 0x3b4   :  { %v3015_v56 = vpop.permute.xlu1 %3014  ;;  %v3013_v40 = vpop.permute.xlu0 %3012 }
 0x3b5   :  { %3184 = vst.msk [vmem:[#allocation2 + $0xb8] sm:$0xff] %vm3160_vm8, %v3015_v56  ;;  %3183 = vst.msk [vmem:[#allocation2 + $0xb0] sm:$0xff] %vm3160_vm8, %v3013_v40  ;;  %v3916_v56 = vld [vmem:[%s7303_s0 + $0xd9] sm:$0xff] }
 0x3b6   :  { %2641 = vrot.lane.b32.xlu1 %v3931_v26, %s4276_s12  ;;  %2639 = vrot.lane.b32.xlu0 %v3930_v60, %s4276_s12  ;;  %v3917_v60 = vld [vmem:[%s7303_s0 + $0xe1] sm:$0xff] }
 0x3b8   :  { %v3079_v6 = vpop.permute.xlu1 %3078  ;;  %v3077_v7 = vpop.permute.xlu0 %3076 }
 0x3b9   :  { %3216 = vst.msk [vmem:[#allocation2 + $0x1b8] sm:$0xff] %vm3160_vm8, %v3079_v6  ;;  %3215 = vst.msk [vmem:[#allocation2 + $0x1b0] sm:$0xff] %vm3160_vm8, %v3077_v7 }
 0x3ba   :  { %2705 = vrot.lane.b32.xlu1 %v3963_v57, %s4276_s12  ;;  %2703 = vrot.lane.b32.xlu0 %v3962_v2, %s4276_s12 }
 0x3bc   :  { %v2983_v23 = vpop.permute.xlu1 %2982  ;;  %v2981_v54 = vpop.permute.xlu0 %2980  ;;  %v3248_v55 = vld [vmem:[#allocation2 + $0xb0] sm:$0xff]  ;;  %v3249_v0 = vld [vmem:[#allocation2 + $0xb8] sm:$0xff] }
 0x3bd   :  { %3168 = vst.msk [vmem:[#allocation2 + $0x38] sm:$0xff] %vm3160_vm8, %v2983_v23  ;;  %3167 = vst.msk [vmem:[#allocation2 + $0x30] sm:$0xff] %vm3160_vm8, %v2981_v54  ;;  %v4182_v1 = vpack.c.bf16 %v3249_v0, %v3248_v55 }
 0x3be   :  { %2609 = vrot.lane.b32.xlu1 %v3915_v3, %s4276_s12  ;;  %2607 = vrot.lane.b32.xlu0 %v3914_v20, %s4276_s12  ;;  %v3949_v3 = vld [vmem:[%s7303_s0 + $0x291] sm:$0xff]  ;;  %v3948_v20 = vld [vmem:[%s7303_s0 + $0x289] sm:$0xff] }
 0x3bf   :  { %4184 = vmatprep.subr.msk.bf16.mxu0 %vm6669_vm10, %v4182_v1 }
 0x3c0   :  { %v3047_v4 = vpop.permute.xlu1 %3046  ;;  %v3045_v5 = vpop.permute.xlu0 %3044  ;;  %v3280_v13 = vld [vmem:[#allocation2 + $0x1b0] sm:$0xff]  ;;  %v3281_v14 = vld [vmem:[#allocation2 + $0x1b8] sm:$0xff] }
 0x3c1   :  { %3200 = vst.msk [vmem:[#allocation2 + $0x138] sm:$0xff] %vm3160_vm8, %v3047_v4  ;;  %3199 = vst.msk [vmem:[#allocation2 + $0x130] sm:$0xff] %vm3160_vm8, %v3045_v5  ;;  %v4230_v50 = vpack.c.bf16 %v3281_v14, %v3280_v13 }
 0x3c2   :  { %2673 = vrot.lane.b32.xlu1 %v3947_v52, %s4276_s12  ;;  %2671 = vrot.lane.b32.xlu0 %v3946_v53, %s4276_s12  ;;  %v3997_v52 = vld [vmem:[%s7303_s0 + $0x1a2] sm:$0xff]  ;;  %v3996_v53 = vld [vmem:[%s7303_s0 + $0x19a] sm:$0xff] }
 0x3c3   :  { %4232 = vmatprep.subr.msk.bf16.mxu1 %vm6669_vm10, %v4230_v50 }
 0x3c4   :  { %v2249_v22 = vpop.permute.xlu1 %2248  ;;  %v2247_v62 = vpop.permute.xlu0 %2246  ;;  %v3232_v63 = vld [vmem:[#allocation2 + $0x30] sm:$0xff]  ;;  %v3233_v15 = vld [vmem:[#allocation2 + $0x38] sm:$0xff] }
 0x3c5   :  { %2416 = vst.msk [vmem:[#allocation2 + $0xc8] sm:$0xff] %vm2390_vm6, %v2249_v22  ;;  %2415 = vst.msk [vmem:[#allocation2 + $0xc0] sm:$0xff] %vm2390_vm6, %v2247_v62  ;;  %v4185_v17 = vpack.c.bf16 %v3233_v15, %v3232_v63 }
 0x3c6   :  { %3026 = vrot.lane.b32.xlu1 %v3995_v51, %s4277_s13  ;;  %3024 = vrot.lane.b32.xlu0 %v3994_v21, %s4277_s13  ;;  %v4029_v51 = vld [vmem:[%s7303_s0 + $0x352] sm:$0xff]  ;;  %v4028_v21 = vld [vmem:[%s7303_s0 + $0x34a] sm:$0xff] }
 0x3c7   :  { %4187 = vmatpush3.bf16.xpose.msk.msra.mxu0 %vm6669_vm10, %v4185_v17 }
 0x3c8   :  { %v2313_v28 = vpop.permute.xlu1 %2312  ;;  %v2311_v29 = vpop.permute.xlu0 %2310  ;;  %v3264_v58 = vld [vmem:[#allocation2 + $0x130] sm:$0xff]  ;;  %v3265_v59 = vld [vmem:[#allocation2 + $0x138] sm:$0xff] }
 0x3c9   :  { %2448 = vst.msk [vmem:[#allocation2 + $0x1c8] sm:$0xff] %vm2390_vm6, %v2313_v28  ;;  %2447 = vst.msk [vmem:[#allocation2 + $0x1c0] sm:$0xff] %vm2390_vm6, %v2311_v29  ;;  %v4233_v32 = vpack.c.bf16 %v3265_v59, %v3264_v58  ;;  %v4013_v58 = vld [vmem:[%s7303_s0 + $0x292] sm:$0xff]  ;;  %v4012_v59 = vld [vmem:[%s7303_s0 + $0x28a] sm:$0xff] }
 0x3ca   :  { %3090 = vrot.lane.b32.xlu1 %v4027_v44, %s4277_s13  ;;  %3088 = vrot.lane.b32.xlu0 %v4026_v45, %s4277_s13  ;;  %v3981_v44 = vld [vmem:[%s7303_s0 + $0xe2] sm:$0xff]  ;;  %v3980_v45 = vld [vmem:[%s7303_s0 + $0xda] sm:$0xff] }
 0x3cb   :  { %4235 = vmatpush3.bf16.xpose.msk.msra.mxu1 %vm6669_vm10, %v4233_v32 }
 0x3cc   :  { %v2281_v16 = vpop.permute.xlu1 %2280  ;;  %v2279_v46 = vpop.permute.xlu0 %2278 }
 0x3cd   :  { %2432 = vst.msk [vmem:[#allocation2 + $0x148] sm:$0xff] %vm2390_vm6, %v2281_v16  ;;  %2431 = vst.msk [vmem:[#allocation2 + $0x140] sm:$0xff] %vm2390_vm6, %v2279_v46 }
 0x3ce   :  { %2994 = vrot.lane.b32.xlu1 %v3979_v33, %s4277_s13  ;;  %2992 = vrot.lane.b32.xlu0 %v3978_v12, %s4277_s13  ;;  %v7192_v12 = vld [vmem:[%s7304_s1] sm:$0xff] }
 0x3cf   :  { %4128 = vmatprep.mubr.msk.f32.mxu0 %vm3296_vm9, %v7192_v12  ;;  %4162 = vmatprep.mubr.msk.f32.mxu1 %vm3296_vm9, %v7192_v12 }
 0x3d0   :  { %v2634_v18 = vpop.permute.xlu1 %2633  ;;  %v2632_v19 = vpop.permute.xlu0 %2631 }
 0x3d1   :  { %2801 = vst.msk [vmem:[#allocation2 + $0xc8] sm:$0xff] %vm2775_vm7, %v2634_v18  ;;  %2800 = vst.msk [vmem:[#allocation2 + $0xc0] sm:$0xff] %vm2775_vm7, %v2632_v19 }
 0x3d2   :  { %3058 = vrot.lane.b32.xlu1 %v4011_v47, %s4277_s13  ;;  %3056 = vrot.lane.b32.xlu0 %v4010_v11, %s4277_s13  ;;  %v4278_v47 = vmov 0   ;;  %v3290_v11 = vld [vmem:[%s7305_s2] sm:$0xff] }
 0x3d3   :  { %4269 = vset.pattern.permute.xlu0 %v4278_v47 }
 0x3d4   :  { %v2698_v9 = vpop.permute.xlu1 %2697  ;;  %v2696_v38 = vpop.permute.xlu0 %2695 }
 0x3d5   :  { %2833 = vst.msk [vmem:[#allocation2 + $0x1c8] sm:$0xff] %vm2775_vm7, %v2698_v9  ;;  %2832 = vst.msk [vmem:[#allocation2 + $0x1c0] sm:$0xff] %vm2775_vm7, %v2696_v38 }
 0x3d6   :  { %2260 = vrot.lane.b32.xlu1 %v3869_v30, %s4275_s14  ;;  %2258 = vrot.lane.b32.xlu0 %v3868_v31, %s4275_s14 }
 0x3d8   :  { %v2602_v43 = vpop.permute.xlu1 %2601  ;;  %v2600_v8 = vpop.permute.xlu0 %2599 }
 0x3d9   :  { %2785 = vst.msk [vmem:[#allocation2 + $0x48] sm:$0xff] %vm2775_vm7, %v2602_v43  ;;  %2784 = vst.msk [vmem:[#allocation2 + $0x40] sm:$0xff] %vm2775_vm7, %v2600_v8 }
 0x3da   :  { %2324 = vrot.lane.b32.xlu1 %v3901_v39, %s4275_s14  ;;  %2322 = vrot.lane.b32.xlu0 %v3900_v42, %s4275_s14 }
 0x3dc   :  { %v2666_v49 = vpop.permute.xlu1 %2665  ;;  %v2664_v24 = vpop.permute.xlu0 %2663 }
 0x3dd   :  { %2817 = vst.msk [vmem:[#allocation2 + $0x148] sm:$0xff] %vm2775_vm7, %v2666_v49  ;;  %2816 = vst.msk [vmem:[#allocation2 + $0x140] sm:$0xff] %vm2775_vm7, %v2664_v24 }
 0x3de   :  { %2292 = vrot.lane.b32.xlu1 %v3885_v48, %s4275_s14  ;;  %2290 = vrot.lane.b32.xlu0 %v3884_v25, %s4275_s14 }
 0x3e0   :  { %v3019_v27 = vpop.permute.xlu1 %3018  ;;  %v3017_v61 = vpop.permute.xlu0 %3016 }
 0x3e1   :  { %3186 = vst.msk [vmem:[#allocation2 + $0xc8] sm:$0xff] %vm3160_vm8, %v3019_v27  ;;  %3185 = vst.msk [vmem:[#allocation2 + $0xc0] sm:$0xff] %vm3160_vm8, %v3017_v61 }
 0x3e2   :  { %2645 = vrot.lane.b32.xlu1 %v3933_v37, %s4276_s12  ;;  %2643 = vrot.lane.b32.xlu0 %v3932_v35, %s4276_s12 }
 0x3e4   :  { %v3083_v41 = vpop.permute.xlu1 %3082  ;;  %v3081_v26 = vpop.permute.xlu0 %3080 }
 0x3e5   :  { %3218 = vst.msk [vmem:[#allocation2 + $0x1c8] sm:$0xff] %vm3160_vm8, %v3083_v41  ;;  %3217 = vst.msk [vmem:[#allocation2 + $0x1c0] sm:$0xff] %vm3160_vm8, %v3081_v26 }
 0x3e6   :  { %2709 = vrot.lane.b32.xlu1 %v3965_v34, %s4276_s12  ;;  %2707 = vrot.lane.b32.xlu0 %v3964_v36, %s4276_s12 }
 0x3e8   :  { %v2987_v40 = vpop.permute.xlu1 %2986  ;;  %v2985_v57 = vpop.permute.xlu0 %2984  ;;  %v3250_v2 = vld [vmem:[#allocation2 + $0xc0] sm:$0xff]  ;;  %v3251_v6 = vld [vmem:[#allocation2 + $0xc8] sm:$0xff] }
 0x3e9   :  { %3170 = vst.msk [vmem:[#allocation2 + $0x48] sm:$0xff] %vm3160_vm8, %v2987_v40  ;;  %3169 = vst.msk [vmem:[#allocation2 + $0x40] sm:$0xff] %vm3160_vm8, %v2985_v57  ;;  %v4188_v7 = vpack.c.bf16 %v3251_v6, %v3250_v2 }
 0x3ea   :  { %2613 = vrot.lane.b32.xlu1 %v3917_v60, %s4276_s12  ;;  %2611 = vrot.lane.b32.xlu0 %v3916_v56, %s4276_s12 }
 0x3eb   :  { %4190 = vmatprep.subr.msk.bf16.mxu0 %vm6669_vm10, %v4188_v7 }
 0x3ec   :  { %v3051_v23 = vpop.permute.xlu1 %3050  ;;  %v3049_v54 = vpop.permute.xlu0 %3048  ;;  %v3282_v55 = vld [vmem:[#allocation2 + $0x1c0] sm:$0xff]  ;;  %v3283_v0 = vld [vmem:[#allocation2 + $0x1c8] sm:$0xff] }
 0x3ed   :  { %3202 = vst.msk [vmem:[#allocation2 + $0x148] sm:$0xff] %vm3160_vm8, %v3051_v23  ;;  %3201 = vst.msk [vmem:[#allocation2 + $0x140] sm:$0xff] %vm3160_vm8, %v3049_v54  ;;  %v4236_v1 = vpack.c.bf16 %v3283_v0, %v3282_v55 }
 0x3ee   :  { %2677 = vrot.lane.b32.xlu1 %v3949_v3, %s4276_s12  ;;  %2675 = vrot.lane.b32.xlu0 %v3948_v20, %s4276_s12 }
 0x3ef   :  { %4238 = vmatprep.subr.msk.bf16.mxu1 %vm6669_vm10, %v4236_v1 }
 0x3f0   :  { %v2253_v4 = vpop.permute.xlu1 %2252  ;;  %v2251_v5 = vpop.permute.xlu0 %2250  ;;  %v3234_v13 = vld [vmem:[#allocation2 + $0x40] sm:$0xff]  ;;  %v3235_v14 = vld [vmem:[#allocation2 + $0x48] sm:$0xff] }
 0x3f1   :  { %2418 = vst.msk [vmem:[#allocation2 + $0xd8] sm:$0xff] %vm2390_vm6, %v2253_v4  ;;  %2417 = vst.msk [vmem:[#allocation2 + $0xd0] sm:$0xff] %vm2390_vm6, %v2251_v5  ;;  %v4191_v50 = vpack.c.bf16 %v3235_v14, %v3234_v13 }
 0x3f2   :  { %3030 = vrot.lane.b32.xlu1 %v3997_v52, %s4277_s13  ;;  %3028 = vrot.lane.b32.xlu0 %v3996_v53, %s4277_s13 }
 0x3f3   :  { %4193 = vmatpush3.bf16.xpose.msk.msra.mxu0 %vm6669_vm10, %v4191_v50 }
 0x3f4   :  { %v2317_v22 = vpop.permute.xlu1 %2316  ;;  %v2315_v62 = vpop.permute.xlu0 %2314  ;;  %v3266_v63 = vld [vmem:[#allocation2 + $0x140] sm:$0xff]  ;;  %v3267_v15 = vld [vmem:[#allocation2 + $0x148] sm:$0xff] }
 0x3f5   :  { %2450 = vst.msk [vmem:[#allocation2 + $0x1d8] sm:$0xff] %vm2390_vm6, %v2317_v22  ;;  %2449 = vst.msk [vmem:[#allocation2 + $0x1d0] sm:$0xff] %vm2390_vm6, %v2315_v62  ;;  %v4239_v17 = vpack.c.bf16 %v3267_v15, %v3266_v63 }
 0x3f6   :  { %3094 = vrot.lane.b32.xlu1 %v4029_v51, %s4277_s13  ;;  %3092 = vrot.lane.b32.xlu0 %v4028_v21, %s4277_s13 }
 0x3f7   :  { %4241 = vmatpush3.bf16.xpose.msk.msra.mxu1 %vm6669_vm10, %v4239_v17 }
 0x3f8   :  { %v2285_v28 = vpop.permute.xlu1 %2284  ;;  %v2283_v29 = vpop.permute.xlu0 %2282 }
 0x3f9   :  { %2434 = vst.msk [vmem:[#allocation2 + $0x158] sm:$0xff] %vm2390_vm6, %v2285_v28  ;;  %2433 = vst.msk [vmem:[#allocation2 + $0x150] sm:$0xff] %vm2390_vm6, %v2283_v29 }
 0x3fa   :  { %2998 = vrot.lane.b32.xlu1 %v3981_v44, %s4277_s13  ;;  %2996 = vrot.lane.b32.xlu0 %v3980_v45, %s4277_s13 }
 0x3fc   :  { %v2638_v32 = vpop.permute.xlu1 %2637  ;;  %v2636_v33 = vpop.permute.xlu0 %2635 }
 0x3fd   :  { %2803 = vst.msk [vmem:[#allocation2 + $0xd8] sm:$0xff] %vm2775_vm7, %v2638_v32  ;;  %2802 = vst.msk [vmem:[#allocation2 + $0xd0] sm:$0xff] %vm2775_vm7, %v2636_v33 }
 0x3fe   :  { %3062 = vrot.lane.b32.xlu1 %v4013_v58, %s4277_s13  ;;  %3060 = vrot.lane.b32.xlu0 %v4012_v59, %s4277_s13 }
 0x400   :  { %v2702_v16 = vpop.permute.xlu1 %2701  ;;  %v2700_v46 = vpop.permute.xlu0 %2699 }
 0x401   :  { %2835 = vst.msk [vmem:[#allocation2 + $0x1d8] sm:$0xff] %vm2775_vm7, %v2702_v16  ;;  %2834 = vst.msk [vmem:[#allocation2 + $0x1d0] sm:$0xff] %vm2775_vm7, %v2700_v46 }
 0x402   :  { %3293 = vperm.xlu0 %4269, %v3290_v11  }
 0x404   :  { %v2606_v18 = vpop.permute.xlu1 %2605  ;;  %v2604_v19 = vpop.permute.xlu0 %2603 }
 0x405   :  { %2787 = vst.msk [vmem:[#allocation2 + $0x58] sm:$0xff] %vm2775_vm7, %v2606_v18  ;;  %2786 = vst.msk [vmem:[#allocation2 + $0x50] sm:$0xff] %vm2775_vm7, %v2604_v19 }
 0x408   :  { %v2670_v30 = vpop.permute.xlu1 %2669  ;;  %v2668_v31 = vpop.permute.xlu0 %2667 }
 0x409   :  { %2819 = vst.msk [vmem:[#allocation2 + $0x158] sm:$0xff] %vm2775_vm7, %v2670_v30  ;;  %2818 = vst.msk [vmem:[#allocation2 + $0x150] sm:$0xff] %vm2775_vm7, %v2668_v31 }
 0x40c   :  { %v3023_v9 = vpop.permute.xlu1 %3022  ;;  %v3021_v38 = vpop.permute.xlu0 %3020 }
 0x40d   :  { %3188 = vst.msk [vmem:[#allocation2 + $0xd8] sm:$0xff] %vm3160_vm8, %v3023_v9  ;;  %3187 = vst.msk [vmem:[#allocation2 + $0xd0] sm:$0xff] %vm3160_vm8, %v3021_v38 }
 0x410   :  { %v3087_v39 = vpop.permute.xlu1 %3086  ;;  %v3085_v42 = vpop.permute.xlu0 %3084 }
 0x411   :  { %3220 = vst.msk [vmem:[#allocation2 + $0x1d8] sm:$0xff] %vm3160_vm8, %v3087_v39  ;;  %3219 = vst.msk [vmem:[#allocation2 + $0x1d0] sm:$0xff] %vm3160_vm8, %v3085_v42 }
 0x414   :  { %v2991_v43 = vpop.permute.xlu1 %2990  ;;  %v2989_v8 = vpop.permute.xlu0 %2988  ;;  %v3252_v48 = vld [vmem:[#allocation2 + $0xd0] sm:$0xff]  ;;  %v3253_v25 = vld [vmem:[#allocation2 + $0xd8] sm:$0xff] }
 0x415   :  { %3172 = vst.msk [vmem:[#allocation2 + $0x58] sm:$0xff] %vm3160_vm8, %v2991_v43  ;;  %3171 = vst.msk [vmem:[#allocation2 + $0x50] sm:$0xff] %vm3160_vm8, %v2989_v8  ;;  %v4194_v49 = vpack.c.bf16 %v3253_v25, %v3252_v48 }
 0x417   :  { %4196 = vmatprep.subr.msk.bf16.mxu0 %vm6669_vm10, %v4194_v49 }
 0x418   :  { %v3055_v24 = vpop.permute.xlu1 %3054  ;;  %v3053_v37 = vpop.permute.xlu0 %3052  ;;  %v3284_v35 = vld [vmem:[#allocation2 + $0x1d0] sm:$0xff]  ;;  %v3285_v27 = vld [vmem:[#allocation2 + $0x1d8] sm:$0xff] }
 0x419   :  { %3204 = vst.msk [vmem:[#allocation2 + $0x158] sm:$0xff] %vm3160_vm8, %v3055_v24  ;;  %3203 = vst.msk [vmem:[#allocation2 + $0x150] sm:$0xff] %vm3160_vm8, %v3053_v37  ;;  %v4242_v61 = vpack.c.bf16 %v3285_v27, %v3284_v35 }
 0x41b   :  { %4244 = vmatprep.subr.msk.bf16.mxu1 %vm6669_vm10, %v4242_v61 }
 0x41c   :  { %v2257_v34 = vpop.permute.xlu1 %2256  ;;  %v2255_v36 = vpop.permute.xlu0 %2254  ;;  %v3236_v41 = vld [vmem:[#allocation2 + $0x50] sm:$0xff]  ;;  %v3237_v26 = vld [vmem:[#allocation2 + $0x58] sm:$0xff] }
 0x41d   :  { %2420 = vst.msk [vmem:[#allocation2 + $0xe8] sm:$0xff] %vm2390_vm6, %v2257_v34  ;;  %2419 = vst.msk [vmem:[#allocation2 + $0xe0] sm:$0xff] %vm2390_vm6, %v2255_v36  ;;  %v4197_v60 = vpack.c.bf16 %v3237_v26, %v3236_v41 }
 0x41f   :  { %4199 = vmatpush3.bf16.xpose.msk.msra.mxu0 %vm6669_vm10, %v4197_v60 }
 0x420   :  { %v2321_v56 = vpop.permute.xlu1 %2320  ;;  %v2319_v40 = vpop.permute.xlu0 %2318  ;;  %v3268_v57 = vld [vmem:[#allocation2 + $0x150] sm:$0xff]  ;;  %v3269_v2 = vld [vmem:[#allocation2 + $0x158] sm:$0xff] }
 0x421   :  { %2452 = vst.msk [vmem:[#allocation2 + $0x1e8] sm:$0xff] %vm2390_vm6, %v2321_v56  ;;  %2451 = vst.msk [vmem:[#allocation2 + $0x1e0] sm:$0xff] %vm2390_vm6, %v2319_v40  ;;  %v4245_v6 = vpack.c.bf16 %v3269_v2, %v3268_v57 }
 0x423   :  { %4247 = vmatpush3.bf16.xpose.msk.msra.mxu1 %vm6669_vm10, %v4245_v6 }
 0x424   :  { %v2289_v7 = vpop.permute.xlu1 %2288  ;;  %v2287_v3 = vpop.permute.xlu0 %2286 }
 0x425   :  { %2436 = vst.msk [vmem:[#allocation2 + $0x168] sm:$0xff] %vm2390_vm6, %v2289_v7  ;;  %2435 = vst.msk [vmem:[#allocation2 + $0x160] sm:$0xff] %vm2390_vm6, %v2287_v3 }
 0x428   :  { %v2642_v20 = vpop.permute.xlu1 %2641  ;;  %v2640_v23 = vpop.permute.xlu0 %2639 }
 0x429   :  { %2805 = vst.msk [vmem:[#allocation2 + $0xe8] sm:$0xff] %vm2775_vm7, %v2642_v20  ;;  %2804 = vst.msk [vmem:[#allocation2 + $0xe0] sm:$0xff] %vm2775_vm7, %v2640_v23 }
 0x42c   :  { %v2706_v54 = vpop.permute.xlu1 %2705  ;;  %v2704_v55 = vpop.permute.xlu0 %2703 }
 0x42d   :  { %2837 = vst.msk [vmem:[#allocation2 + $0x1e8] sm:$0xff] %vm2775_vm7, %v2706_v54  ;;  %2836 = vst.msk [vmem:[#allocation2 + $0x1e0] sm:$0xff] %vm2775_vm7, %v2704_v55 }
 0x430   :  { %v2610_v0 = vpop.permute.xlu1 %2609  ;;  %v2608_v1 = vpop.permute.xlu0 %2607 }
 0x431   :  { %2789 = vst.msk [vmem:[#allocation2 + $0x68] sm:$0xff] %vm2775_vm7, %v2610_v0  ;;  %2788 = vst.msk [vmem:[#allocation2 + $0x60] sm:$0xff] %vm2775_vm7, %v2608_v1 }
 0x434   :  { %v2674_v52 = vpop.permute.xlu1 %2673  ;;  %v2672_v53 = vpop.permute.xlu0 %2671 }
 0x435   :  { %2821 = vst.msk [vmem:[#allocation2 + $0x168] sm:$0xff] %vm2775_vm7, %v2674_v52  ;;  %2820 = vst.msk [vmem:[#allocation2 + $0x160] sm:$0xff] %vm2775_vm7, %v2672_v53 }
 0x438   :  { %v3027_v4 = vpop.permute.xlu1 %3026  ;;  %v3025_v5 = vpop.permute.xlu0 %3024 }
 0x439   :  { %3190 = vst.msk [vmem:[#allocation2 + $0xe8] sm:$0xff] %vm3160_vm8, %v3027_v4  ;;  %3189 = vst.msk [vmem:[#allocation2 + $0xe0] sm:$0xff] %vm3160_vm8, %v3025_v5 }
 0x43c   :  { %v3091_v13 = vpop.permute.xlu1 %3090  ;;  %v3089_v14 = vpop.permute.xlu0 %3088 }
 0x43d   :  { %3222 = vst.msk [vmem:[#allocation2 + $0x1e8] sm:$0xff] %vm3160_vm8, %v3091_v13  ;;  %3221 = vst.msk [vmem:[#allocation2 + $0x1e0] sm:$0xff] %vm3160_vm8, %v3089_v14 }
 0x440   :  { %v2995_v50 = vpop.permute.xlu1 %2994  ;;  %v2993_v51 = vpop.permute.xlu0 %2992  ;;  %v3254_v21 = vld [vmem:[#allocation2 + $0xe0] sm:$0xff]  ;;  %v3255_v22 = vld [vmem:[#allocation2 + $0xe8] sm:$0xff] }
 0x441   :  { %3174 = vst.msk [vmem:[#allocation2 + $0x68] sm:$0xff] %vm3160_vm8, %v2995_v50  ;;  %3173 = vst.msk [vmem:[#allocation2 + $0x60] sm:$0xff] %vm3160_vm8, %v2993_v51  ;;  %v4200_v62 = vpack.c.bf16 %v3255_v22, %v3254_v21 }
 0x443   :  { %4202 = vmatprep.subr.msk.bf16.mxu0 %vm6669_vm10, %v4200_v62 }
 0x444   :  { %v3059_v63 = vpop.permute.xlu1 %3058  ;;  %v3057_v15 = vpop.permute.xlu0 %3056  ;;  %v3286_v17 = vld [vmem:[#allocation2 + $0x1e0] sm:$0xff]  ;;  %v3287_v44 = vld [vmem:[#allocation2 + $0x1e8] sm:$0xff] }
 0x445   :  { %3206 = vst.msk [vmem:[#allocation2 + $0x168] sm:$0xff] %vm3160_vm8, %v3059_v63  ;;  %3205 = vst.msk [vmem:[#allocation2 + $0x160] sm:$0xff] %vm3160_vm8, %v3057_v15  ;;  %v4248_v45 = vpack.c.bf16 %v3287_v44, %v3286_v17 }
 0x447   :  { %4250 = vmatprep.subr.msk.bf16.mxu1 %vm6669_vm10, %v4248_v45 }
 0x448   :  { %v2261_v28 = vpop.permute.xlu1 %2260  ;;  %v2259_v29 = vpop.permute.xlu0 %2258  ;;  %v3238_v58 = vld [vmem:[#allocation2 + $0x60] sm:$0xff]  ;;  %v3239_v59 = vld [vmem:[#allocation2 + $0x68] sm:$0xff] }
 0x449   :  { %2422 = vst.msk [vmem:[#allocation2 + $0xf8] sm:$0xff] %vm2390_vm6, %v2261_v28  ;;  %2421 = vst.msk [vmem:[#allocation2 + $0xf0] sm:$0xff] %vm2390_vm6, %v2259_v29  ;;  %v4203_v32 = vpack.c.bf16 %v3239_v59, %v3238_v58 }
 0x44b   :  { %4205 = vmatpush3.bf16.xpose.msk.msra.mxu0 %vm6669_vm10, %v4203_v32 }
 0x44c   :  { %v2325_v33 = vpop.permute.xlu1 %2324  ;;  %v2323_v16 = vpop.permute.xlu0 %2322  ;;  %v3270_v46 = vld [vmem:[#allocation2 + $0x160] sm:$0xff]  ;;  %v3271_v47 = vld [vmem:[#allocation2 + $0x168] sm:$0xff] }
 0x44d   :  { %2454 = vst.msk [vmem:[#allocation2 + $0x1f8] sm:$0xff] %vm2390_vm6, %v2325_v33  ;;  %2453 = vst.msk [vmem:[#allocation2 + $0x1f0] sm:$0xff] %vm2390_vm6, %v2323_v16  ;;  %v4251_v11 = vpack.c.bf16 %v3271_v47, %v3270_v46 }
 0x44f   :  { %4253 = vmatpush3.bf16.xpose.msk.msra.mxu1 %vm6669_vm10, %v4251_v11 }
 0x450   :  { %v2293_v18 = vpop.permute.xlu1 %2292  ;;  %v2291_v19 = vpop.permute.xlu0 %2290 }
 0x451   :  { %2438 = vst.msk [vmem:[#allocation2 + $0x178] sm:$0xff] %vm2390_vm6, %v2293_v18  ;;  %2437 = vst.msk [vmem:[#allocation2 + $0x170] sm:$0xff] %vm2390_vm6, %v2291_v19 }
 0x454   :  { %v2646_v30 = vpop.permute.xlu1 %2645  ;;  %v2644_v31 = vpop.permute.xlu0 %2643 }
 0x455   :  { %2807 = vst.msk [vmem:[#allocation2 + $0xf8] sm:$0xff] %vm2775_vm7, %v2646_v30  ;;  %2806 = vst.msk [vmem:[#allocation2 + $0xf0] sm:$0xff] %vm2775_vm7, %v2644_v31 }
 0x458   :  { %v2710_v9 = vpop.permute.xlu1 %2709  ;;  %v2708_v38 = vpop.permute.xlu0 %2707 }
 0x459   :  { %2839 = vst.msk [vmem:[#allocation2 + $0x1f8] sm:$0xff] %vm2775_vm7, %v2710_v9  ;;  %2838 = vst.msk [vmem:[#allocation2 + $0x1f0] sm:$0xff] %vm2775_vm7, %v2708_v38 }
 0x45c   :  { %v2614_v39 = vpop.permute.xlu1 %2613  ;;  %v2612_v42 = vpop.permute.xlu0 %2611 }
 0x45d   :  { %2791 = vst.msk [vmem:[#allocation2 + $0x78] sm:$0xff] %vm2775_vm7, %v2614_v39  ;;  %2790 = vst.msk [vmem:[#allocation2 + $0x70] sm:$0xff] %vm2775_vm7, %v2612_v42 }
 0x460   :  { %v2678_v43 = vpop.permute.xlu1 %2677  ;;  %v2676_v8 = vpop.permute.xlu0 %2675 }
 0x461   :  { %2823 = vst.msk [vmem:[#allocation2 + $0x178] sm:$0xff] %vm2775_vm7, %v2678_v43  ;;  %2822 = vst.msk [vmem:[#allocation2 + $0x170] sm:$0xff] %vm2775_vm7, %v2676_v8 }
 0x464   :  { %v3031_v48 = vpop.permute.xlu1 %3030  ;;  %v3029_v25 = vpop.permute.xlu0 %3028 }
 0x465   :  { %3192 = vst.msk [vmem:[#allocation2 + $0xf8] sm:$0xff] %vm3160_vm8, %v3031_v48  ;;  %3191 = vst.msk [vmem:[#allocation2 + $0xf0] sm:$0xff] %vm3160_vm8, %v3029_v25 }
 0x468   :  { %v3095_v49 = vpop.permute.xlu1 %3094  ;;  %v3093_v24 = vpop.permute.xlu0 %3092 }
 0x469   :  { %3224 = vst.msk [vmem:[#allocation2 + $0x1f8] sm:$0xff] %vm3160_vm8, %v3095_v49  ;;  %3223 = vst.msk [vmem:[#allocation2 + $0x1f0] sm:$0xff] %vm3160_vm8, %v3093_v24 }
 0x46c   :  { %v2999_v37 = vpop.permute.xlu1 %2998  ;;  %v2997_v35 = vpop.permute.xlu0 %2996  ;;  %v3256_v27 = vld [vmem:[#allocation2 + $0xf0] sm:$0xff]  ;;  %v3257_v61 = vld [vmem:[#allocation2 + $0xf8] sm:$0xff] }
 0x46d   :  { %3176 = vst.msk [vmem:[#allocation2 + $0x78] sm:$0xff] %vm3160_vm8, %v2999_v37  ;;  %3175 = vst.msk [vmem:[#allocation2 + $0x70] sm:$0xff] %vm3160_vm8, %v2997_v35  ;;  %v4206_v34 = vpack.c.bf16 %v3257_v61, %v3256_v27 }
 0x46f   :  { %4208 = vmatprep.subr.msk.bf16.mxu0 %vm6669_vm10, %v4206_v34 }
 0x470   :  { %v3063_v36 = vpop.permute.xlu1 %3062  ;;  %v3061_v41 = vpop.permute.xlu0 %3060  ;;  %v3288_v26 = vld [vmem:[#allocation2 + $0x1f0] sm:$0xff]  ;;  %v3289_v60 = vld [vmem:[#allocation2 + $0x1f8] sm:$0xff] }
 0x471   :  { %3208 = vst.msk [vmem:[#allocation2 + $0x178] sm:$0xff] %vm3160_vm8, %v3063_v36  ;;  %3207 = vst.msk [vmem:[#allocation2 + $0x170] sm:$0xff] %vm3160_vm8, %v3061_v41  ;;  %v4254_v56 = vpack.c.bf16 %v3289_v60, %v3288_v26 }
 0x473   :  { %4256 = vmatprep.subr.msk.bf16.mxu1 %vm6669_vm10, %v4254_v56 }
 0x474   :  { %v3240_v40 = vld [vmem:[#allocation2 + $0x70] sm:$0xff]  ;;  %v3241_v57 = vld [vmem:[#allocation2 + $0x78] sm:$0xff] }
 0x475   :  { %v4209_v2 = vpack.c.bf16 %v3241_v57, %v3240_v40 }
 0x477   :  { %4211 = vmatpush3.bf16.xpose.msk.msra.mxu0 %vm6669_vm10, %v4209_v2 }
 0x478   :  { %v3272_v6 = vld [vmem:[#allocation2 + $0x170] sm:$0xff]  ;;  %v3273_v7 = vld [vmem:[#allocation2 + $0x178] sm:$0xff] }
 0x479   :  { %v4257_v3 = vpack.c.bf16 %v3273_v7, %v3272_v6 }
 0x47b   :  { %4259 = vmatpush3.bf16.xpose.msk.msra.mxu1 %vm6669_vm10, %v4257_v3 }
 0x47e   :  { %4129 = vmatmul.mubr.msk.f32.vlgmr.msra.gmra.mrb[0].mxu0 %vm3296_vm9, %v7192_v12 }
 0x481   :  { %v3294_v20 = vpop.permute.xlu0 %3293 }
 0x482   :  { %4163 = vmatmul.mubr.msk.f32.vlgmr.msra.gmra.mrb[0].mxu1 %vm3296_vm9, %v7192_v12 }
 0x551   :  { %v3558_v23 = vpop.f32.mrb[0].mxu0 }
 0x552   :  { %v3559_v54 = vadd.f32 %v3558_v23, %v3294_v20  ;;  %v3560_v55 = vpop.f32.mrb[1].mxu0 }
 0x553   :  { %v3561_v0 = vadd.f32 %v3560_v55, %v3294_v20 }
 0x554   :  { %v3634_v1 = vmax.f32 %v3559_v54, 0.0 }
 0x555   :  { %v3635_v52 = vmax.f32 %v3561_v0, 0.0  ;;  %v3629_v53 = vpop.f32.mrb[0].mxu1 }
 0x556   :  { %3638 = vst [vmem:[%s7306_s3] sm:$0xff] %v3634_v1  ;;  %v3630_v10 = vadd.f32 %v3629_v53, %v3294_v20  ;;  %v3631_v4 = vpop.f32.mrb[1].mxu1 }
 0x557   :  { %3639 = vst [vmem:[%s7306_s3 + $0x8] sm:$0xff] %v3635_v52  ;;  %v3632_v5 = vadd.f32 %v3631_v4, %v3294_v20 }
 0x558   :  { %v3636_v12 = vmax.f32 %v3630_v10, 0.0 }
 0x559   :  { %v3637_v13 = vmax.f32 %v3632_v5, 0.0 }
 0x55a   :  { %3640 = vst [vmem:[%s7306_s3 + $0x10] sm:$0xff] %v3636_v12 }
 0x55b   :  { %3641 = vst [vmem:[%s7306_s3 + $0x18] sm:$0xff] %v3637_v13 }

</bundles_post_ra>
